<compile_context>
chip_gen: v6e
topology: v6e:2x2x1
jax: 0.10.0
libtpu: 0.0.40
codegen_flags: <defaults>
</compile_context>

<pallas_src>
import numpy as np
import jax
import jax.numpy as jnp
from jax.experimental import pallas as pl
from jax.experimental.pallas import tpu as pltpu

# ---------------- configuration (small, consistent with the module) ----------
B = 2                   # batch
DIM = 32                # channels C
RES = 8                 # input_resolution (H = W = 8)
WS = 4                  # window_size
SHIFT = 2               # shift_size (0 <= shift < window_size)
NUM_HEADS = 4
HEAD_DIM = DIM // NUM_HEADS
N = WS * WS             # tokens per window (= 16)
NW = (RES // WS) ** 2   # windows per image (= 4)
TOK = NW * N            # windowed tokens per image (= 64)
GT = B * TOK            # total tokens in the slab (= 128)
GW = B * NW             # total windows (= 8)
GB = NUM_HEADS * GW     # batched attention problems (= 32)
SCALE = HEAD_DIM ** (-0.5)


# ---------------- parameter / buffer setup (deterministic) -------------------
def make_params():
    key = jax.random.PRNGKey(0)
    k0, k1, k2, k3, k4 = jax.random.split(key, 5)
    table = jax.random.normal(k0, ((2 * WS - 1) * (2 * WS - 1), NUM_HEADS),
                              jnp.float32) * 0.02
    w_qkv = jax.random.normal(k1, (DIM, 3 * DIM), jnp.float32) * 0.05
    b_qkv = jax.random.normal(k2, (3 * DIM,), jnp.float32) * 0.05
    w_proj = jax.random.normal(k3, (DIM, DIM), jnp.float32) * 0.05
    b_proj = jax.random.normal(k4, (DIM,), jnp.float32) * 0.05
    return table, w_qkv, b_qkv, w_proj, b_proj


def relative_position_bias(table):
    # Same construction as the PyTorch module (numpy gather at build time).
    coords_h = np.arange(WS)
    coords_w = np.arange(WS)
    coords = np.stack(np.meshgrid(coords_h, coords_w, indexing="ij"))   # (2,WS,WS)
    coords_flat = coords.reshape(2, -1)                                 # (2,N)
    rel = coords_flat[:, :, None] - coords_flat[:, None, :]             # (2,N,N)
    rel = rel.transpose(1, 2, 0).copy()
    rel[:, :, 0] += WS - 1
    rel[:, :, 1] += WS - 1
    rel[:, :, 0] *= 2 * WS - 1
    idx = rel.sum(-1)                                                   # (N,N)
    bias = table[idx.reshape(-1)].reshape(N, N, NUM_HEADS)
    return jnp.transpose(bias, (2, 0, 1)).astype(jnp.float32)           # (nh,N,N)


def build_attn_mask():
    # PyTorch shifted-window mask, built with numpy at trace time.
    if SHIFT == 0:
        return jnp.zeros((NW, N, N), jnp.float32)
    img_mask = np.zeros((1, RES, RES, 1), np.float32)
    h_slices = (slice(0, -WS), slice(-WS, -SHIFT), slice(-SHIFT, None))
    w_slices = (slice(0, -WS), slice(-WS, -SHIFT), slice(-SHIFT, None))
    cnt = 0
    for h in h_slices:
        for w in w_slices:
            img_mask[:, h, w, :] = cnt
            cnt += 1
    mw = img_mask.reshape(1, RES // WS, WS, RES // WS, WS, 1)
    mw = mw.transpose(0, 1, 3, 2, 4, 5).reshape(-1, WS * WS)            # (nW,N)
    am = mw[:, None, :] - mw[:, :, None]
    am = np.where(am != 0, -100.0, 0.0).astype(np.float32)              # (nW,N,N)
    return jnp.asarray(am)


def fused_bias_mask(table):
    # (GB, N, N) = (nh*B*nW, 16, 16), leading index = head*GW + batch*NW + window,
    # matching exactly the kernel's batched-attention leading dim -> one plain add.
    bias = relative_position_bias(table)              # (nh, N, N)
    mask = build_attn_mask()                          # (nW, N, N)
    bm = bias[:, None, :, :] + mask[None, :, :, :]    # (nh, nW, N, N)
    bm = jnp.tile(bm, (1, B, 1, 1))                   # (nh, B*nW, N, N)
    return bm.reshape(GB, N, N)


def split_qkv_heads(w_qkv, b_qkv):
    # Host-side: split the fused QKV weight into per-head (nh, DIM, hd) blocks
    # and fold the attention scale into the q weight/bias.
    def split(mat, vec, scale=1.0):
        w = mat.reshape(DIM, NUM_HEADS, HEAD_DIM).transpose(1, 0, 2) * scale  # (nh,DIM,hd)
        b = vec.reshape(NUM_HEADS, 1, HEAD_DIM) * scale                       # (nh,1,hd)
        return w.astype(jnp.float32), b.astype(jnp.float32)
    wq, bq = split(w_qkv[:, 0 * DIM:1 * DIM], b_qkv[0 * DIM:1 * DIM], SCALE)
    wk, bk = split(w_qkv[:, 1 * DIM:2 * DIM], b_qkv[1 * DIM:2 * DIM])
    wv, bv = split(w_qkv[:, 2 * DIM:3 * DIM], b_qkv[2 * DIM:3 * DIM])
    return wq, wk, wv, bq, bk, bv


# ---------------- Pallas kernel: whole batch in one invocation ---------------
def swin_attn_kernel(x_ref, wq_ref, wk_ref, wv_ref, bq_ref, bk_ref, bv_ref,
                     wp_ref, bp_ref, bm_ref, o_ref):
    x = x_ref[...]                                               # (GT, DIM) = (128, 32)

    # Per-head QKV projections.  Weight refs are pre-split per head on the host
    # (leading-dim indexing is free); no lane-dim slicing of activations.
    qs, ks, vs = [], [], []
    for h in range(NUM_HEADS):
        q_h = jnp.dot(x, wq_ref[h], preferred_element_type=jnp.float32) + bq_ref[h]
        k_h = jnp.dot(x, wk_ref[h], preferred_element_type=jnp.float32) + bk_ref[h]
        v_h = jnp.dot(x, wv_ref[h], preferred_element_type=jnp.float32) + bv_ref[h]
        qs.append(q_h.reshape(GW, N, HEAD_DIM))                  # (8, 16, 8)
        ks.append(k_h.reshape(GW, N, HEAD_DIM))
        vs.append(v_h.reshape(GW, N, HEAD_DIM))

    # Head-batched layout: leading index = head * GW + window (matches bm_ref).
    q = jnp.concatenate(qs, axis=0)                              # (GB, N, hd) = (32,16,8)
    k = jnp.concatenate(ks, axis=0)
    v = jnp.concatenate(vs, axis=0)

    # One batched attention for all heads x windows.
    attn = jnp.einsum("bnd,bmd->bnm", q, k,
                      preferred_element_type=jnp.float32)        # (32, 16, 16)
    attn = attn + bm_ref[...]          # fused rel-pos bias + shift mask (pre-laid-out)

    m = jnp.max(attn, axis=-1, keepdims=True)
    e = jnp.exp(attn - m)
    s = jnp.sum(e, axis=-1, keepdims=True)
    p = e * pl.reciprocal(s, approx=True)                        # EUP reciprocal

    o = jnp.einsum("bnm,bmd->bnd", p, v,
                   preferred_element_type=jnp.float32)           # (32, 16, 8)

    # Re-assemble heads on the lane dim, then ONE (128,32)@(32,32) projection.
    o = o.reshape(NUM_HEADS, GT, HEAD_DIM)                       # (4, 128, 8)
    heads = jnp.concatenate([o[h] for h in range(NUM_HEADS)], axis=-1)   # (128, 32)
    out = jnp.dot(heads, wp_ref[...], preferred_element_type=jnp.float32) + bp_ref[...]
    o_ref[...] = out.astype(o_ref.dtype)


def window_attention_pallas(xw, wq, wk, wv, bq, bk, bv, w_proj, b_proj2d, bm):
    # xw: (GT, DIM) -- all windows of the whole batch.  Single invocation,
    # everything whole-array resident in VMEM (total footprint ~100 KiB).
    n_in = 10
    return pl.pallas_call(
        swin_attn_kernel,
        out_shape=jax.ShapeDtypeStruct((GT, DIM), jnp.float32),
        in_specs=[pl.BlockSpec(memory_space=pltpu.MemorySpace.VMEM)
                  for _ in range(n_in)],
        out_specs=pl.BlockSpec(memory_space=pltpu.MemorySpace.VMEM),
    )(xw, wq, wk, wv, bq, bk, bv, w_proj, b_proj2d, bm)


# ---------------- SwinTransformerBlock forward (glue + kernel) ----------------
def swin_block_forward(x, kparams):
    wq, wk, wv, bq, bk, bv, w_proj, b_proj2d, bm = kparams
    x = x.reshape(B, RES, RES, DIM)
    if SHIFT > 0:
        x = jnp.roll(x, shift=(-SHIFT, -SHIFT), axis=(1, 2))
    # window partition -> (B*nW*N, C)
    xw = x.reshape(B, RES // WS, WS, RES // WS, WS, DIM)
    xw = xw.transpose(0, 1, 3, 2, 4, 5).reshape(GT, DIM)

    ow = window_attention_pallas(xw, wq, wk, wv, bq, bk, bv, w_proj, b_proj2d, bm)

    # window reverse -> (B, H, W, C)
    o = ow.reshape(B, RES // WS, RES // WS, WS, WS, DIM)
    o = o.transpose(0, 1, 3, 2, 4, 5).reshape(B, RES, RES, DIM)
    if SHIFT > 0:
        o = jnp.roll(o, shift=(SHIFT, SHIFT), axis=(1, 2))
    return o.reshape(B, RES * RES, DIM)


# ---------------- pure-JAX reference (mirrors the PyTorch forward) ------------
def swin_block_reference(x, w_qkv, b_qkv, w_proj, b_proj, bias, mask):
    x = x.reshape(B, RES, RES, DIM)
    if SHIFT > 0:
        x = jnp.roll(x, shift=(-SHIFT, -SHIFT), axis=(1, 2))
    xw = x.reshape(B, RES // WS, WS, RES // WS, WS, DIM)
    xw = xw.transpose(0, 1, 3, 2, 4, 5).reshape(B * NW, N, DIM)
    qkv = xw @ w_qkv + b_qkv
    qkv = qkv.reshape(B * NW, N, 3, NUM_HEADS, HEAD_DIM).transpose(2, 0, 3, 1, 4)
    q, k, v = qkv[0] * SCALE, qkv[1], qkv[2]                   # (B_, nh, N, hd)
    attn = jnp.einsum("bhnd,bhmd->bhnm", q, k) + bias[None]
    attn = attn.reshape(B, NW, NUM_HEADS, N, N) + mask[None, :, None]
    attn = attn.reshape(B * NW, NUM_HEADS, N, N)
    attn = jax.nn.softmax(attn, axis=-1)
    o = jnp.einsum("bhnm,bhmd->bhnd", attn, v)
    o = o.transpose(0, 2, 1, 3).reshape(B * NW, N, DIM)
    o = o @ w_proj + b_proj
    o = o.reshape(B, RES // WS, RES // WS, WS, WS, DIM)
    o = o.transpose(0, 1, 3, 2, 4, 5).reshape(B, RES, RES, DIM)
    if SHIFT > 0:
        o = jnp.roll(o, shift=(SHIFT, SHIFT), axis=(1, 2))
    return o.reshape(B, RES * RES, DIM)


if __name__ == "__main__":
    table, w_qkv, b_qkv, w_proj, b_proj = make_params()

    wq, wk, wv, bq, bk, bv = split_qkv_heads(w_qkv, b_qkv)
    bm = fused_bias_mask(table)                                 # (GB, N, N)
    kparams = (wq, wk, wv, bq, bk, bv, w_proj, b_proj.reshape(1, DIM), bm)

    x = jax.random.normal(jax.random.PRNGKey(0), (B, RES * RES, DIM), jnp.float32)

    fwd = jax.jit(swin_block_forward)
    out = jax.block_until_ready(fwd(x, kparams))

    bias = relative_position_bias(table)
    mask = build_attn_mask()
    ref = jax.block_until_ready(
        swin_block_reference(x, w_qkv, b_qkv, w_proj, b_proj, bias, mask))

    assert out.shape == (B, RES * RES, DIM)
    np.testing.assert_allclose(np.asarray(out), np.asarray(ref),
                               rtol=2e-3, atol=2e-3)
    print("KERNEL_OK")
</pallas_src>

<mosaic_0001>
module attributes {stable_mosaic.version = 11 : i64} {
  func.func @swin_attn_kernel(%arg0: memref<128x32xf32, #tpu.memory_space<vmem>>, %arg1: memref<4x32x8xf32, #tpu.memory_space<vmem>>, %arg2: memref<4x32x8xf32, #tpu.memory_space<vmem>>, %arg3: memref<4x32x8xf32, #tpu.memory_space<vmem>>, %arg4: memref<4x1x8xf32, #tpu.memory_space<vmem>>, %arg5: memref<4x1x8xf32, #tpu.memory_space<vmem>>, %arg6: memref<4x1x8xf32, #tpu.memory_space<vmem>>, %arg7: memref<32x32xf32, #tpu.memory_space<vmem>>, %arg8: memref<1x32xf32, #tpu.memory_space<vmem>>, %arg9: memref<32x16x16xf32, #tpu.memory_space<vmem>>, %arg10: memref<128x32xf32, #tpu.memory_space<vmem>>) attributes {dimension_semantics = [], scalar_prefetch = 0 : i64, scratch_operands = 0 : i64, tpu.core_type = #tpu.core_type<tc>} {
    %c0 = arith.constant 0 : index
    %c0_0 = arith.constant 0 : index
    %0 = vector.load %arg0[%c0, %c0_0] : memref<128x32xf32, #tpu.memory_space<vmem>>, vector<128x32xf32>
    %c0_1 = arith.constant 0 : index
    %c0_2 = arith.constant 0 : index
    %c0_3 = arith.constant 0 : index
    %1 = vector.load %arg1[%c0_1, %c0_2, %c0_3] : memref<4x32x8xf32, #tpu.memory_space<vmem>>, vector<1x32x8xf32>
    %2 = vector.shape_cast %1 : vector<1x32x8xf32> to vector<32x8xf32>
    %cst = arith.constant dense<0.000000e+00> : vector<128x8xf32>
    %3 = tpu.matmul %0, %2, %cst {dimension_numbers = #tpu.dot_dimension_numbers<[1], [0], [0], [1], [0, 0, 1, 1], [], []>} : vector<128x32xf32>, vector<32x8xf32>, vector<128x8xf32> -> vector<128x8xf32>
    %c0_4 = arith.constant 0 : index
    %c0_5 = arith.constant 0 : index
    %c0_6 = arith.constant 0 : index
    %4 = vector.load %arg4[%c0_4, %c0_5, %c0_6] : memref<4x1x8xf32, #tpu.memory_space<vmem>>, vector<1x1x8xf32>
    %5 = vector.shape_cast %4 : vector<1x1x8xf32> to vector<1x8xf32>
    %6 = vector.broadcast %5 : vector<1x8xf32> to vector<128x8xf32>
    %7 = arith.addf %3, %6 : vector<128x8xf32>
    %c0_7 = arith.constant 0 : index
    %c0_8 = arith.constant 0 : index
    %c0_9 = arith.constant 0 : index
    %8 = vector.load %arg2[%c0_7, %c0_8, %c0_9] : memref<4x32x8xf32, #tpu.memory_space<vmem>>, vector<1x32x8xf32>
    %9 = vector.shape_cast %8 : vector<1x32x8xf32> to vector<32x8xf32>
    %cst_10 = arith.constant dense<0.000000e+00> : vector<128x8xf32>
    %10 = tpu.matmul %0, %9, %cst_10 {dimension_numbers = #tpu.dot_dimension_numbers<[1], [0], [0], [1], [0, 0, 1, 1], [], []>} : vector<128x32xf32>, vector<32x8xf32>, vector<128x8xf32> -> vector<128x8xf32>
    %c0_11 = arith.constant 0 : index
    %c0_12 = arith.constant 0 : index
    %c0_13 = arith.constant 0 : index
    %11 = vector.load %arg5[%c0_11, %c0_12, %c0_13] : memref<4x1x8xf32, #tpu.memory_space<vmem>>, vector<1x1x8xf32>
    %12 = vector.shape_cast %11 : vector<1x1x8xf32> to vector<1x8xf32>
    %13 = vector.broadcast %12 : vector<1x8xf32> to vector<128x8xf32>
    %14 = arith.addf %10, %13 : vector<128x8xf32>
    %c0_14 = arith.constant 0 : index
    %c0_15 = arith.constant 0 : index
    %c0_16 = arith.constant 0 : index
    %15 = vector.load %arg3[%c0_14, %c0_15, %c0_16] : memref<4x32x8xf32, #tpu.memory_space<vmem>>, vector<1x32x8xf32>
    %16 = vector.shape_cast %15 : vector<1x32x8xf32> to vector<32x8xf32>
    %cst_17 = arith.constant dense<0.000000e+00> : vector<128x8xf32>
    %17 = tpu.matmul %0, %16, %cst_17 {dimension_numbers = #tpu.dot_dimension_numbers<[1], [0], [0], [1], [0, 0, 1, 1], [], []>} : vector<128x32xf32>, vector<32x8xf32>, vector<128x8xf32> -> vector<128x8xf32>
    %c0_18 = arith.constant 0 : index
    %c0_19 = arith.constant 0 : index
    %c0_20 = arith.constant 0 : index
    %18 = vector.load %arg6[%c0_18, %c0_19, %c0_20] : memref<4x1x8xf32, #tpu.memory_space<vmem>>, vector<1x1x8xf32>
    %19 = vector.shape_cast %18 : vector<1x1x8xf32> to vector<1x8xf32>
    %20 = vector.broadcast %19 : vector<1x8xf32> to vector<128x8xf32>
    %21 = arith.addf %17, %20 : vector<128x8xf32>
    %22 = vector.shape_cast %7 : vector<128x8xf32> to vector<8x16x8xf32>
    %23 = vector.shape_cast %14 : vector<128x8xf32> to vector<8x16x8xf32>
    %24 = vector.shape_cast %21 : vector<128x8xf32> to vector<8x16x8xf32>
    %c1 = arith.constant 1 : index
    %c0_21 = arith.constant 0 : index
    %c0_22 = arith.constant 0 : index
    %25 = vector.load %arg1[%c1, %c0_21, %c0_22] : memref<4x32x8xf32, #tpu.memory_space<vmem>>, vector<1x32x8xf32>
    %26 = vector.shape_cast %25 : vector<1x32x8xf32> to vector<32x8xf32>
    %cst_23 = arith.constant dense<0.000000e+00> : vector<128x8xf32>
    %27 = tpu.matmul %0, %26, %cst_23 {dimension_numbers = #tpu.dot_dimension_numbers<[1], [0], [0], [1], [0, 0, 1, 1], [], []>} : vector<128x32xf32>, vector<32x8xf32>, vector<128x8xf32> -> vector<128x8xf32>
    %c1_24 = arith.constant 1 : index
    %c0_25 = arith.constant 0 : index
    %c0_26 = arith.constant 0 : index
    %28 = vector.load %arg4[%c1_24, %c0_25, %c0_26] : memref<4x1x8xf32, #tpu.memory_space<vmem>>, vector<1x1x8xf32>
    %29 = vector.shape_cast %28 : vector<1x1x8xf32> to vector<1x8xf32>
    %30 = vector.broadcast %29 : vector<1x8xf32> to vector<128x8xf32>
    %31 = arith.addf %27, %30 : vector<128x8xf32>
    %c1_27 = arith.constant 1 : index
    %c0_28 = arith.constant 0 : index
    %c0_29 = arith.constant 0 : index
    %32 = vector.load %arg2[%c1_27, %c0_28, %c0_29] : memref<4x32x8xf32, #tpu.memory_space<vmem>>, vector<1x32x8xf32>
    %33 = vector.shape_cast %32 : vector<1x32x8xf32> to vector<32x8xf32>
    %cst_30 = arith.constant dense<0.000000e+00> : vector<128x8xf32>
    %34 = tpu.matmul %0, %33, %cst_30 {dimension_numbers = #tpu.dot_dimension_numbers<[1], [0], [0], [1], [0, 0, 1, 1], [], []>} : vector<128x32xf32>, vector<32x8xf32>, vector<128x8xf32> -> vector<128x8xf32>
    %c1_31 = arith.constant 1 : index
    %c0_32 = arith.constant 0 : index
    %c0_33 = arith.constant 0 : index
    %35 = vector.load %arg5[%c1_31, %c0_32, %c0_33] : memref<4x1x8xf32, #tpu.memory_space<vmem>>, vector<1x1x8xf32>
    %36 = vector.shape_cast %35 : vector<1x1x8xf32> to vector<1x8xf32>
    %37 = vector.broadcast %36 : vector<1x8xf32> to vector<128x8xf32>
    %38 = arith.addf %34, %37 : vector<128x8xf32>
    %c1_34 = arith.constant 1 : index
    %c0_35 = arith.constant 0 : index
    %c0_36 = arith.constant 0 : index
    %39 = vector.load %arg3[%c1_34, %c0_35, %c0_36] : memref<4x32x8xf32, #tpu.memory_space<vmem>>, vector<1x32x8xf32>
    %40 = vector.shape_cast %39 : vector<1x32x8xf32> to vector<32x8xf32>
    %cst_37 = arith.constant dense<0.000000e+00> : vector<128x8xf32>
    %41 = tpu.matmul %0, %40, %cst_37 {dimension_numbers = #tpu.dot_dimension_numbers<[1], [0], [0], [1], [0, 0, 1, 1], [], []>} : vector<128x32xf32>, vector<32x8xf32>, vector<128x8xf32> -> vector<128x8xf32>
    %c1_38 = arith.constant 1 : index
    %c0_39 = arith.constant 0 : index
    %c0_40 = arith.constant 0 : index
    %42 = vector.load %arg6[%c1_38, %c0_39, %c0_40] : memref<4x1x8xf32, #tpu.memory_space<vmem>>, vector<1x1x8xf32>
    %43 = vector.shape_cast %42 : vector<1x1x8xf32> to vector<1x8xf32>
    %44 = vector.broadcast %43 : vector<1x8xf32> to vector<128x8xf32>
    %45 = arith.addf %41, %44 : vector<128x8xf32>
    %46 = vector.shape_cast %31 : vector<128x8xf32> to vector<8x16x8xf32>
    %47 = vector.shape_cast %38 : vector<128x8xf32> to vector<8x16x8xf32>
    %48 = vector.shape_cast %45 : vector<128x8xf32> to vector<8x16x8xf32>
    %c2 = arith.constant 2 : index
    %c0_41 = arith.constant 0 : index
    %c0_42 = arith.constant 0 : index
    %49 = vector.load %arg1[%c2, %c0_41, %c0_42] : memref<4x32x8xf32, #tpu.memory_space<vmem>>, vector<1x32x8xf32>
    %50 = vector.shape_cast %49 : vector<1x32x8xf32> to vector<32x8xf32>
    %cst_43 = arith.constant dense<0.000000e+00> : vector<128x8xf32>
    %51 = tpu.matmul %0, %50, %cst_43 {dimension_numbers = #tpu.dot_dimension_numbers<[1], [0], [0], [1], [0, 0, 1, 1], [], []>} : vector<128x32xf32>, vector<32x8xf32>, vector<128x8xf32> -> vector<128x8xf32>
    %c2_44 = arith.constant 2 : index
    %c0_45 = arith.constant 0 : index
    %c0_46 = arith.constant 0 : index
    %52 = vector.load %arg4[%c2_44, %c0_45, %c0_46] : memref<4x1x8xf32, #tpu.memory_space<vmem>>, vector<1x1x8xf32>
    %53 = vector.shape_cast %52 : vector<1x1x8xf32> to vector<1x8xf32>
    %54 = vector.broadcast %53 : vector<1x8xf32> to vector<128x8xf32>
    %55 = arith.addf %51, %54 : vector<128x8xf32>
    %c2_47 = arith.constant 2 : index
    %c0_48 = arith.constant 0 : index
    %c0_49 = arith.constant 0 : index
    %56 = vector.load %arg2[%c2_47, %c0_48, %c0_49] : memref<4x32x8xf32, #tpu.memory_space<vmem>>, vector<1x32x8xf32>
    %57 = vector.shape_cast %56 : vector<1x32x8xf32> to vector<32x8xf32>
    %cst_50 = arith.constant dense<0.000000e+00> : vector<128x8xf32>
    %58 = tpu.matmul %0, %57, %cst_50 {dimension_numbers = #tpu.dot_dimension_numbers<[1], [0], [0], [1], [0, 0, 1, 1], [], []>} : vector<128x32xf32>, vector<32x8xf32>, vector<128x8xf32> -> vector<128x8xf32>
    %c2_51 = arith.constant 2 : index
    %c0_52 = arith.constant 0 : index
    %c0_53 = arith.constant 0 : index
    %59 = vector.load %arg5[%c2_51, %c0_52, %c0_53] : memref<4x1x8xf32, #tpu.memory_space<vmem>>, vector<1x1x8xf32>
    %60 = vector.shape_cast %59 : vector<1x1x8xf32> to vector<1x8xf32>
    %61 = vector.broadcast %60 : vector<1x8xf32> to vector<128x8xf32>
    %62 = arith.addf %58, %61 : vector<128x8xf32>
    %c2_54 = arith.constant 2 : index
    %c0_55 = arith.constant 0 : index
    %c0_56 = arith.constant 0 : index
    %63 = vector.load %arg3[%c2_54, %c0_55, %c0_56] : memref<4x32x8xf32, #tpu.memory_space<vmem>>, vector<1x32x8xf32>
    %64 = vector.shape_cast %63 : vector<1x32x8xf32> to vector<32x8xf32>
    %cst_57 = arith.constant dense<0.000000e+00> : vector<128x8xf32>
    %65 = tpu.matmul %0, %64, %cst_57 {dimension_numbers = #tpu.dot_dimension_numbers<[1], [0], [0], [1], [0, 0, 1, 1], [], []>} : vector<128x32xf32>, vector<32x8xf32>, vector<128x8xf32> -> vector<128x8xf32>
    %c2_58 = arith.constant 2 : index
    %c0_59 = arith.constant 0 : index
    %c0_60 = arith.constant 0 : index
    %66 = vector.load %arg6[%c2_58, %c0_59, %c0_60] : memref<4x1x8xf32, #tpu.memory_space<vmem>>, vector<1x1x8xf32>
    %67 = vector.shape_cast %66 : vector<1x1x8xf32> to vector<1x8xf32>
    %68 = vector.broadcast %67 : vector<1x8xf32> to vector<128x8xf32>
    %69 = arith.addf %65, %68 : vector<128x8xf32>
    %70 = vector.shape_cast %55 : vector<128x8xf32> to vector<8x16x8xf32>
    %71 = vector.shape_cast %62 : vector<128x8xf32> to vector<8x16x8xf32>
    %72 = vector.shape_cast %69 : vector<128x8xf32> to vector<8x16x8xf32>
    %c3 = arith.constant 3 : index
    %c0_61 = arith.constant 0 : index
    %c0_62 = arith.constant 0 : index
    %73 = vector.load %arg1[%c3, %c0_61, %c0_62] : memref<4x32x8xf32, #tpu.memory_space<vmem>>, vector<1x32x8xf32>
    %74 = vector.shape_cast %73 : vector<1x32x8xf32> to vector<32x8xf32>
    %cst_63 = arith.constant dense<0.000000e+00> : vector<128x8xf32>
    %75 = tpu.matmul %0, %74, %cst_63 {dimension_numbers = #tpu.dot_dimension_numbers<[1], [0], [0], [1], [0, 0, 1, 1], [], []>} : vector<128x32xf32>, vector<32x8xf32>, vector<128x8xf32> -> vector<128x8xf32>
    %c3_64 = arith.constant 3 : index
    %c0_65 = arith.constant 0 : index
    %c0_66 = arith.constant 0 : index
    %76 = vector.load %arg4[%c3_64, %c0_65, %c0_66] : memref<4x1x8xf32, #tpu.memory_space<vmem>>, vector<1x1x8xf32>
    %77 = vector.shape_cast %76 : vector<1x1x8xf32> to vector<1x8xf32>
    %78 = vector.broadcast %77 : vector<1x8xf32> to vector<128x8xf32>
    %79 = arith.addf %75, %78 : vector<128x8xf32>
    %c3_67 = arith.constant 3 : index
    %c0_68 = arith.constant 0 : index
    %c0_69 = arith.constant 0 : index
    %80 = vector.load %arg2[%c3_67, %c0_68, %c0_69] : memref<4x32x8xf32, #tpu.memory_space<vmem>>, vector<1x32x8xf32>
    %81 = vector.shape_cast %80 : vector<1x32x8xf32> to vector<32x8xf32>
    %cst_70 = arith.constant dense<0.000000e+00> : vector<128x8xf32>
    %82 = tpu.matmul %0, %81, %cst_70 {dimension_numbers = #tpu.dot_dimension_numbers<[1], [0], [0], [1], [0, 0, 1, 1], [], []>} : vector<128x32xf32>, vector<32x8xf32>, vector<128x8xf32> -> vector<128x8xf32>
    %c3_71 = arith.constant 3 : index
    %c0_72 = arith.constant 0 : index
    %c0_73 = arith.constant 0 : index
    %83 = vector.load %arg5[%c3_71, %c0_72, %c0_73] : memref<4x1x8xf32, #tpu.memory_space<vmem>>, vector<1x1x8xf32>
    %84 = vector.shape_cast %83 : vector<1x1x8xf32> to vector<1x8xf32>
    %85 = vector.broadcast %84 : vector<1x8xf32> to vector<128x8xf32>
    %86 = arith.addf %82, %85 : vector<128x8xf32>
    %c3_74 = arith.constant 3 : index
    %c0_75 = arith.constant 0 : index
    %c0_76 = arith.constant 0 : index
    %87 = vector.load %arg3[%c3_74, %c0_75, %c0_76] : memref<4x32x8xf32, #tpu.memory_space<vmem>>, vector<1x32x8xf32>
    %88 = vector.shape_cast %87 : vector<1x32x8xf32> to vector<32x8xf32>
    %cst_77 = arith.constant dense<0.000000e+00> : vector<128x8xf32>
    %89 = tpu.matmul %0, %88, %cst_77 {dimension_numbers = #tpu.dot_dimension_numbers<[1], [0], [0], [1], [0, 0, 1, 1], [], []>} : vector<128x32xf32>, vector<32x8xf32>, vector<128x8xf32> -> vector<128x8xf32>
    %c3_78 = arith.constant 3 : index
    %c0_79 = arith.constant 0 : index
    %c0_80 = arith.constant 0 : index
    %90 = vector.load %arg6[%c3_78, %c0_79, %c0_80] : memref<4x1x8xf32, #tpu.memory_space<vmem>>, vector<1x1x8xf32>
    %91 = vector.shape_cast %90 : vector<1x1x8xf32> to vector<1x8xf32>
    %92 = vector.broadcast %91 : vector<1x8xf32> to vector<128x8xf32>
    %93 = arith.addf %89, %92 : vector<128x8xf32>
    %94 = vector.shape_cast %79 : vector<128x8xf32> to vector<8x16x8xf32>
    %95 = vector.shape_cast %86 : vector<128x8xf32> to vector<8x16x8xf32>
    %96 = vector.shape_cast %93 : vector<128x8xf32> to vector<8x16x8xf32>
    %97 = tpu.concatenate %22, %46, %70, %94 in 0 : vector<8x16x8xf32>, vector<8x16x8xf32>, vector<8x16x8xf32>, vector<8x16x8xf32> -> vector<32x16x8xf32>
    %98 = tpu.concatenate %23, %47, %71, %95 in 0 : vector<8x16x8xf32>, vector<8x16x8xf32>, vector<8x16x8xf32>, vector<8x16x8xf32> -> vector<32x16x8xf32>
    %99 = tpu.concatenate %24, %48, %72, %96 in 0 : vector<8x16x8xf32>, vector<8x16x8xf32>, vector<8x16x8xf32>, vector<8x16x8xf32> -> vector<32x16x8xf32>
    "tpu.trace_start"() <{level = 10 : i32, message = "bnd,bmd->bnm"}> : () -> ()
    %cst_81 = arith.constant dense<0.000000e+00> : vector<32x16x16xf32>
    %100 = tpu.matmul %97, %98, %cst_81 {dimension_numbers = #tpu.dot_dimension_numbers<[2], [2], [1], [1], [0, 0, 0, 1, 1, 1], [0], [0]>} : vector<32x16x8xf32>, vector<32x16x8xf32>, vector<32x16x16xf32> -> vector<32x16x16xf32>
    "tpu.trace_stop"() : () -> ()
    %c0_82 = arith.constant 0 : index
    %c0_83 = arith.constant 0 : index
    %c0_84 = arith.constant 0 : index
    %101 = vector.load %arg9[%c0_82, %c0_83, %c0_84] : memref<32x16x16xf32, #tpu.memory_space<vmem>>, vector<32x16x16xf32>
    %102 = arith.addf %100, %101 : vector<32x16x16xf32>
    %cst_85 = arith.constant dense<0xFF800000> : vector<32x16xf32>
    %103 = vector.multi_reduction <maximumf>, %102, %cst_85 [2] : vector<32x16x16xf32> to vector<32x16xf32>
    %104 = vector.shape_cast %103 : vector<32x16xf32> to vector<32x16x1xf32>
    %105 = vector.broadcast %104 : vector<32x16x1xf32> to vector<32x16x16xf32>
    %106 = arith.subf %102, %105 : vector<32x16x16xf32>
    %107 = math.exp %106 : vector<32x16x16xf32>
    %cst_86 = arith.constant dense<0.000000e+00> : vector<32x16xf32>
    %108 = vector.multi_reduction <add>, %107, %cst_86 [2] : vector<32x16x16xf32> to vector<32x16xf32>
    %109 = vector.shape_cast %108 : vector<32x16xf32> to vector<32x16x1xf32>
    %110 = tpu.reciprocal %109 {approx = true} : vector<32x16x1xf32> -> vector<32x16x1xf32>
    %111 = vector.broadcast %110 : vector<32x16x1xf32> to vector<32x16x16xf32>
    %112 = arith.mulf %107, %111 : vector<32x16x16xf32>
    "tpu.trace_start"() <{level = 10 : i32, message = "bnm,bmd->bnd"}> : () -> ()
    %cst_87 = arith.constant dense<0.000000e+00> : vector<32x16x8xf32>
    %113 = tpu.matmul %112, %99, %cst_87 {dimension_numbers = #tpu.dot_dimension_numbers<[2], [1], [1], [2], [0, 0, 0, 1, 1, 2], [0], [0]>} : vector<32x16x16xf32>, vector<32x16x8xf32>, vector<32x16x8xf32> -> vector<32x16x8xf32>
    "tpu.trace_stop"() : () -> ()
    %114 = vector.shape_cast %113 : vector<32x16x8xf32> to vector<4x128x8xf32>
    %115 = vector.extract_strided_slice %114 {offsets = [0, 0, 0], sizes = [1, 128, 8], strides = [1, 1, 1]} : vector<4x128x8xf32> to vector<1x128x8xf32>
    %116 = vector.shape_cast %115 : vector<1x128x8xf32> to vector<128x8xf32>
    %117 = vector.extract_strided_slice %114 {offsets = [1, 0, 0], sizes = [1, 128, 8], strides = [1, 1, 1]} : vector<4x128x8xf32> to vector<1x128x8xf32>
    %118 = vector.shape_cast %117 : vector<1x128x8xf32> to vector<128x8xf32>
    %119 = vector.extract_strided_slice %114 {offsets = [2, 0, 0], sizes = [1, 128, 8], strides = [1, 1, 1]} : vector<4x128x8xf32> to vector<1x128x8xf32>
    %120 = vector.shape_cast %119 : vector<1x128x8xf32> to vector<128x8xf32>
    %121 = vector.extract_strided_slice %114 {offsets = [3, 0, 0], sizes = [1, 128, 8], strides = [1, 1, 1]} : vector<4x128x8xf32> to vector<1x128x8xf32>
    %122 = vector.shape_cast %121 : vector<1x128x8xf32> to vector<128x8xf32>
    %123 = tpu.concatenate %116, %118, %120, %122 in 1 : vector<128x8xf32>, vector<128x8xf32>, vector<128x8xf32>, vector<128x8xf32> -> vector<128x32xf32>
    %c0_88 = arith.constant 0 : index
    %c0_89 = arith.constant 0 : index
    %124 = vector.load %arg7[%c0_88, %c0_89] : memref<32x32xf32, #tpu.memory_space<vmem>>, vector<32x32xf32>
    %cst_90 = arith.constant dense<0.000000e+00> : vector<128x32xf32>
    %125 = tpu.matmul %123, %124, %cst_90 {dimension_numbers = #tpu.dot_dimension_numbers<[1], [0], [0], [1], [0, 0, 1, 1], [], []>} : vector<128x32xf32>, vector<32x32xf32>, vector<128x32xf32> -> vector<128x32xf32>
    %c0_91 = arith.constant 0 : index
    %c0_92 = arith.constant 0 : index
    %126 = vector.load %arg8[%c0_91, %c0_92] : memref<1x32xf32, #tpu.memory_space<vmem>>, vector<1x32xf32>
    %127 = vector.broadcast %126 : vector<1x32xf32> to vector<128x32xf32>
    %128 = arith.addf %125, %127 : vector<128x32xf32>
    %c0_93 = arith.constant 0 : index
    %c0_94 = arith.constant 0 : index
    %129 = vector.load %arg10[%c0_93, %c0_94] : memref<128x32xf32, #tpu.memory_space<vmem>>, vector<128x32xf32>
    tpu.vector_store %arg10[%c0_93, %c0_94], %128 {strides = array<i32>} : memref<128x32xf32, #tpu.memory_space<vmem>>, vector<128x32xf32>,
    return
  }
}

</mosaic_0001>

<bundles_post_ra>
// kernel: swin_block_forward.1
= control target key start
LH: loop header
LB: loop body
LE: loop exit
PB: predicated region body
PF: predicated region fallthrough
CT: control target
= control target key end

     0   :  { %vm62_vm0 = vcmask 261120   ;;  %vm2054_vm1 = vcmask 64512   ;;  %vm4839_vm2 = vcmask 130048   ;;  %s10709_s14 = smov 16   ;;  %s10710_s22 = smov 24   ;;  %vm8360_vm3 = vcmask 195584   ;;  %s13251_s1 = inlined_call_operand.vmem [shape: f32[4,32,8], index: 1, kind: input, shape index: {}]   ;;  %s13252_s0 = inlined_call_operand.vmem [shape: f32[128,32], index: 0, kind: input, shape index: {}]   ;;  %s13253_s2 = inlined_call_operand.vmem [shape: f32[4,32,8], index: 2, kind: input, shape index: {}]   ;;  %s13254_s3 = inlined_call_operand.vmem [shape: f32[4,32,8], index: 3, kind: input, shape index: {}]   ;;  %s13255_s4 = inlined_call_operand.vmem [shape: f32[4,1,8], index: 4, kind: input, shape index: {}]   ;;  %s13256_s5 = inlined_call_operand.vmem [shape: f32[4,1,8], index: 5, kind: input, shape index: {}]   ;;  %s13257_s6 = inlined_call_operand.vmem [shape: f32[4,1,8], index: 6, kind: input, shape index: {}]   ;;  %s13258_s9 = inlined_call_operand.vmem [shape: f32[32,16,16], index: 9, kind: input, shape index: {}]   ;;  %s13259_s7 = inlined_call_operand.vmem [shape: f32[32,32], index: 7, kind: input, shape index: {}]   ;;  %s13260_s8 = inlined_call_operand.vmem [shape: f32[1,32], index: 8, kind: input, shape index: {}]   ;;  %s13261_s10 = inlined_call_operand.vmem [shape: f32[128,32], index: 10, kind: output, shape index: {}]  }
   0x1   :  { %v54_v0 = vld [vmem:[%s13251_s1 + $0x18] sm:$0xff]  ;;  %v53_v1 = vld [vmem:[%s13251_s1 + $0x10] sm:$0xff]  ;;  %v52_v2 = vld [vmem:[%s13251_s1 + $0x8] sm:$0xff] }
   0x2   :  { %9575 = vmatprep.subr.mxu0 %v54_v0  ;;  %10439 = vmatprep.subr.mxu1 %v54_v0  ;;  %v51_v3 = vld [vmem:[%s13251_s1] sm:$0xff]  ;;  %v10791_v6 = vld [vmem:[%s13252_s0 + $0x8] sm:$0xff]  ;;  %v259_v8 = vld [vmem:[%s13253_s2 + $0x18] sm:$0xff] }
   0x3   :  { %9576 = vmatpush3.msra.mxu0 %v54_v0  ;;  %10443 = vmatpush3.msra.mxu1 %v54_v0  ;;  %v10781_v4 = vld [vmem:[%s13252_s0] sm:$0xff]  ;;  %v10796_v7 = vld [vmem:[%s13252_s0 + $0x48] sm:$0xff]  ;;  %v415_v9 = vld [vmem:[%s13254_s3 + $0x18] sm:$0xff] }
   0x4   :  { %9577 = vmatprep.subr.mxu0 %v53_v1  ;;  %10440 = vmatprep.subr.mxu1 %v53_v1  ;;  %v10786_v5 = vld [vmem:[%s13252_s0 + $0x40] sm:$0xff]  ;;  %v10815_v10 = vld [vmem:[%s13252_s0 + $0x10] sm:$0xff]  ;;  %v10825_v12 = vld [vmem:[%s13252_s0 + $0x18] sm:$0xff] }
   0x5   :  { %9578 = vmatpush3.msra.mxu0 %v53_v1  ;;  %10444 = vmatpush3.msra.mxu1 %v53_v1  ;;  %v10820_v11 = vld [vmem:[%s13252_s0 + $0x50] sm:$0xff]  ;;  %v10830_v13 = vld [vmem:[%s13252_s0 + $0x58] sm:$0xff]  ;;  %v10849_v16 = vld [vmem:[%s13252_s0 + $0x20] sm:$0xff] }
   0x6   :  { %9579 = vmatprep.subr.mxu0 %v52_v2  ;;  %10441 = vmatprep.subr.mxu1 %v52_v2  ;;  %v258_v14 = vld [vmem:[%s13253_s2 + $0x10] sm:$0xff]  ;;  %v10854_v17 = vld [vmem:[%s13252_s0 + $0x60] sm:$0xff]  ;;  %v10859_v18 = vld [vmem:[%s13252_s0 + $0x28] sm:$0xff] }
   0x7   :  { %9580 = vmatpush3.msra.mxu0 %v52_v2  ;;  %10445 = vmatpush3.msra.mxu1 %v52_v2  ;;  %v414_v15 = vld [vmem:[%s13254_s3 + $0x10] sm:$0xff]  ;;  %v10864_v19 = vld [vmem:[%s13252_s0 + $0x68] sm:$0xff]  ;;  %v10893_v24 = vld [vmem:[%s13252_s0 + $0x38] sm:$0xff] }
   0x8   :  { %9581 = vmatprep.subr.mxu0 %v51_v3  ;;  %10442 = vmatprep.subr.mxu1 %v51_v3  ;;  %v257_v20 = vld [vmem:[%s13253_s2 + $0x8] sm:$0xff]  ;;  %v10883_v22 = vld [vmem:[%s13252_s0 + $0x30] sm:$0xff]  ;;  %v10898_v25 = vld [vmem:[%s13252_s0 + $0x78] sm:$0xff] }
   0x9   :  { %9582 = vmatpush3.msra.mxu0 %v51_v3  ;;  %10446 = vmatpush3.msra.mxu1 %v51_v3  ;;  %v413_v21 = vld [vmem:[%s13254_s3 + $0x8] sm:$0xff]  ;;  %v10888_v23 = vld [vmem:[%s13252_s0 + $0x70] sm:$0xff]  ;;  %v256_v26 = vld [vmem:[%s13253_s2] sm:$0xff] }
   0xa   :  { %9583 = vmatprep.mubr.msk.f32.mxu0 %vm62_vm0, %v10781_v4  ;;  %9595 = vmatprep.mubr.msk.f32.mxu1 %vm62_vm0, %v10786_v5  ;;  %v412_v27 = vld [vmem:[%s13254_s3] sm:$0xff]  ;;  %v8655_v28 = vld [vmem:[%s13251_s1 + $0x38] sm:$0xff]  ;;  %v8654_v30 = vld [vmem:[%s13251_s1 + $0x30] sm:$0xff] }
   0xb   :  { %9584 = vmatmul.mubr.msk.f32.vlgmr.msra.gmra.mxu0 %vm62_vm0, %v10791_v6  ;;  %9596 = vmatmul.mubr.msk.f32.vlgmr.msra.gmra.mxu1 %vm62_vm0, %v10796_v7  ;;  %v8677_v29 = vld [vmem:[%s13253_s2 + $0x38] sm:$0xff]  ;;  %v8676_v31 = vld [vmem:[%s13253_s2 + $0x30] sm:$0xff]  ;;  %v8653_v32 = vld [vmem:[%s13251_s1 + $0x28] sm:$0xff] }
   0xc   :  { %9607 = vmatprep.subr.mxu1 %v259_v8  ;;  %9639 = vmatprep.subr.mxu0 %v415_v9  ;;  %v8675_v33 = vld [vmem:[%s13253_s2 + $0x28] sm:$0xff]  ;;  %v8652_v34 = vld [vmem:[%s13251_s1 + $0x20] sm:$0xff]  ;;  %v8699_v36 = vld [vmem:[%s13254_s3 + $0x38] sm:$0xff] }
   0xd   :  { %9608 = vmatpush3.msra.mxu1 %v259_v8  ;;  %9640 = vmatpush3.msra.mxu0 %v415_v9  ;;  %v8674_v35 = vld [vmem:[%s13253_s2 + $0x20] sm:$0xff]  ;;  %v8721_v37 = vld [vmem:[%s13251_s1 + $0x58] sm:$0xff]  ;;  %v8698_v38 = vld [vmem:[%s13254_s3 + $0x30] sm:$0xff] }
   0xe   :  { %9586 = vmatprep.mubr.msk.f32.mxu0 %vm62_vm0, %v10815_v10  ;;  %9598 = vmatprep.mubr.msk.f32.mxu1 %vm62_vm0, %v10820_v11  ;;  %v8720_v39 = vld [vmem:[%s13251_s1 + $0x50] sm:$0xff]  ;;  %v8697_v40 = vld [vmem:[%s13254_s3 + $0x28] sm:$0xff]  ;;  %v8696_v42 = vld [vmem:[%s13254_s3 + $0x20] sm:$0xff] }
   0xf   :  { %9587 = vmatmul.mubr.msk.f32.gmra.mxu0 %vm62_vm0, %v10825_v12  ;;  %9599 = vmatmul.mubr.msk.f32.gmra.mxu1 %vm62_vm0, %v10830_v13  ;;  %v8719_v41 = vld [vmem:[%s13251_s1 + $0x48] sm:$0xff]  ;;  %v8718_v43 = vld [vmem:[%s13251_s1 + $0x40] sm:$0xff]  ;;  %v8743_v44 = vld [vmem:[%s13253_s2 + $0x58] sm:$0xff] }
  0x10   :  { %9609 = vmatprep.subr.mxu1 %v258_v14  ;;  %9641 = vmatprep.subr.mxu0 %v414_v15  ;;  %v8765_v45 = vld [vmem:[%s13254_s3 + $0x58] sm:$0xff]  ;;  %v8742_v46 = vld [vmem:[%s13253_s2 + $0x50] sm:$0xff]  ;;  %v8741_v48 = vld [vmem:[%s13253_s2 + $0x48] sm:$0xff] }
  0x11   :  { %9610 = vmatpush3.msra.mxu1 %v258_v14  ;;  %9642 = vmatpush3.msra.mxu0 %v414_v15  ;;  %v8764_v47 = vld [vmem:[%s13254_s3 + $0x50] sm:$0xff]  ;;  %v8763_v49 = vld [vmem:[%s13254_s3 + $0x48] sm:$0xff]  ;;  %v8740_v50 = vld [vmem:[%s13253_s2 + $0x40] sm:$0xff] }
  0x12   :  { %9589 = vmatprep.mubr.msk.f32.mxu0 %vm62_vm0, %v10849_v16  ;;  %9601 = vmatprep.mubr.msk.f32.mxu1 %vm62_vm0, %v10854_v17  ;;  %v8762_v51 = vld [vmem:[%s13254_s3 + $0x40] sm:$0xff]  ;;  %v8809_v52 = vld [vmem:[%s13253_s2 + $0x78] sm:$0xff]  ;;  %v8808_v54 = vld [vmem:[%s13253_s2 + $0x70] sm:$0xff] }
  0x13   :  { %9590 = vmatmul.mubr.msk.f32.gmra.mxu0 %vm62_vm0, %v10859_v18  ;;  %9602 = vmatmul.mubr.msk.f32.gmra.mxu1 %vm62_vm0, %v10864_v19  ;;  %v8787_v53 = vld [vmem:[%s13251_s1 + $0x78] sm:$0xff]  ;;  %v8786_v55 = vld [vmem:[%s13251_s1 + $0x70] sm:$0xff]  ;;  %v8807_v56 = vld [vmem:[%s13253_s2 + $0x68] sm:$0xff] }
  0x14   :  { %9611 = vmatprep.subr.mxu1 %v257_v20  ;;  %9643 = vmatprep.subr.mxu0 %v413_v21  ;;  %v8785_v57 = vld [vmem:[%s13251_s1 + $0x68] sm:$0xff]  ;;  %v8806_v58 = vld [vmem:[%s13253_s2 + $0x60] sm:$0xff]  ;;  %v8831_v60 = vld [vmem:[%s13254_s3 + $0x78] sm:$0xff] }
  0x15   :  { %9612 = vmatpush3.msra.mxu1 %v257_v20  ;;  %9644 = vmatpush3.msra.mxu0 %v413_v21  ;;  %v8784_v59 = vld [vmem:[%s13251_s1 + $0x60] sm:$0xff]  ;;  %v8830_v61 = vld [vmem:[%s13254_s3 + $0x70] sm:$0xff]  ;;  %v8829_v62 = vld [vmem:[%s13254_s3 + $0x68] sm:$0xff] }
  0x16   :  { %9592 = vmatprep.mubr.msk.f32.mxu0 %vm62_vm0, %v10883_v22  ;;  %9604 = vmatprep.mubr.msk.f32.mxu1 %vm62_vm0, %v10888_v23  ;;  %v8828_v63 = vld [vmem:[%s13254_s3 + $0x60] sm:$0xff] }
  0x17   :  { %9593 = vmatmul.mubr.msk.f32.gmra.mxu0 %vm62_vm0, %v10893_v24  ;;  %9605 = vmatmul.mubr.msk.f32.gmra.mxu1 %vm62_vm0, %v10898_v25  ;;  %v11369_v2 = vld [vmem:[%s13255_s4] ss:$0 sm:$0xff] }
  0x18   :  { %9613 = vmatprep.subr.mxu1 %v256_v26  ;;  %9645 = vmatprep.subr.mxu0 %v412_v27 }
  0x19   :  { %9614 = vmatpush3.msra.mxu1 %v256_v26  ;;  %9646 = vmatpush3.msra.mxu0 %v412_v27 }
  0x1a   :  { %9615 = vmatprep.mubr.msk.f32.mxu1 %vm62_vm0, %v10781_v4  ;;  %9647 = vmatprep.mubr.msk.f32.mxu0 %vm62_vm0, %v10781_v4 }
  0x1b   :  { %9616 = vmatmul.mubr.msk.f32.vlgmr.msra.gmra.mxu1 %vm62_vm0, %v10791_v6  ;;  %9648 = vmatmul.mubr.msk.f32.vlgmr.msra.gmra.mxu0 %vm62_vm0, %v10791_v6 }
  0x1c   :  { %9671 = vmatprep.subr.mxu1 %v8655_v28  ;;  %9703 = vmatprep.subr.mxu0 %v8677_v29 }
  0x1d   :  { %9672 = vmatpush3.msra.mxu1 %v8655_v28  ;;  %9704 = vmatpush3.msra.mxu0 %v8677_v29 }
  0x1e   :  { %9618 = vmatprep.mubr.msk.f32.mxu1 %vm62_vm0, %v10815_v10  ;;  %9650 = vmatprep.mubr.msk.f32.mxu0 %vm62_vm0, %v10815_v10 }
  0x1f   :  { %9619 = vmatmul.mubr.msk.f32.gmra.mxu1 %vm62_vm0, %v10825_v12  ;;  %9651 = vmatmul.mubr.msk.f32.gmra.mxu0 %vm62_vm0, %v10825_v12 }
  0x20   :  { %9621 = vmatprep.mubr.msk.f32.mxu1 %vm62_vm0, %v10849_v16  ;;  %9653 = vmatprep.mubr.msk.f32.mxu0 %vm62_vm0, %v10849_v16 }
  0x21   :  { %9673 = vmatprep.subr.mxu1 %v8654_v30  ;;  %9705 = vmatprep.subr.mxu0 %v8676_v31 }
  0x22   :  { %9674 = vmatpush3.msra.mxu1 %v8654_v30  ;;  %9706 = vmatpush3.msra.mxu0 %v8676_v31 }
  0x23   :  { %9622 = vmatmul.mubr.msk.f32.gmra.mxu1 %vm62_vm0, %v10859_v18  ;;  %9654 = vmatmul.mubr.msk.f32.gmra.mxu0 %vm62_vm0, %v10859_v18 }
  0x24   :  { %9624 = vmatprep.mubr.msk.f32.mxu1 %vm62_vm0, %v10883_v22  ;;  %9656 = vmatprep.mubr.msk.f32.mxu0 %vm62_vm0, %v10883_v22 }
  0x25   :  { %9675 = vmatprep.subr.mxu1 %v8653_v32  ;;  %9707 = vmatprep.subr.mxu0 %v8675_v33 }
  0x26   :  { %9676 = vmatpush3.msra.mxu1 %v8653_v32  ;;  %9708 = vmatpush3.msra.mxu0 %v8675_v33 }
  0x27   :  { %9625 = vmatmul.mubr.msk.f32.gmra.mxu1 %vm62_vm0, %v10893_v24  ;;  %9657 = vmatmul.mubr.msk.f32.gmra.mxu0 %vm62_vm0, %v10893_v24 }
  0x28   :  { %9627 = vmatprep.mubr.msk.f32.mxu1 %vm62_vm0, %v10786_v5  ;;  %9659 = vmatprep.mubr.msk.f32.mxu0 %vm62_vm0, %v10786_v5 }
  0x29   :  { %9677 = vmatprep.subr.mxu1 %v8652_v34  ;;  %9709 = vmatprep.subr.mxu0 %v8674_v35 }
  0x2a   :  { %9678 = vmatpush3.msra.mxu1 %v8652_v34  ;;  %9710 = vmatpush3.msra.mxu0 %v8674_v35 }
  0x2b   :  { %9628 = vmatmul.mubr.msk.f32.gmra.mxu1 %vm62_vm0, %v10796_v7  ;;  %9660 = vmatmul.mubr.msk.f32.gmra.mxu0 %vm62_vm0, %v10796_v7 }
  0x2c   :  { %9630 = vmatprep.mubr.msk.f32.mxu1 %vm62_vm0, %v10820_v11  ;;  %9662 = vmatprep.mubr.msk.f32.mxu0 %vm62_vm0, %v10820_v11 }
  0x2d   :  { %9735 = vmatprep.subr.mxu1 %v8699_v36  ;;  %9767 = vmatprep.subr.mxu0 %v8721_v37 }
  0x2f   :  { %9631 = vmatmul.mubr.msk.f32.gmra.mxu1 %vm62_vm0, %v10830_v13  ;;  %9663 = vmatmul.mubr.msk.f32.gmra.mxu0 %vm62_vm0, %v10830_v13 }
  0x30   :  { %9633 = vmatprep.mubr.msk.f32.mxu1 %vm62_vm0, %v10854_v17  ;;  %9665 = vmatprep.mubr.msk.f32.mxu0 %vm62_vm0, %v10854_v17 }
  0x33   :  { %9634 = vmatmul.mubr.msk.f32.gmra.mxu1 %vm62_vm0, %v10864_v19  ;;  %9666 = vmatmul.mubr.msk.f32.gmra.mxu0 %vm62_vm0, %v10864_v19 }
  0x34   :  { %9636 = vmatprep.mubr.msk.f32.mxu1 %vm62_vm0, %v10888_v23  ;;  %9668 = vmatprep.mubr.msk.f32.mxu0 %vm62_vm0, %v10888_v23 }
  0x37   :  { %9637 = vmatmul.mubr.msk.f32.gmra.mxu1 %vm62_vm0, %v10898_v25  ;;  %9669 = vmatmul.mubr.msk.f32.gmra.mxu0 %vm62_vm0, %v10898_v25 }
  0x38   :  { %9679 = vmatprep.mubr.msk.f32.mxu1 %vm62_vm0, %v10781_v4  ;;  %9711 = vmatprep.mubr.msk.f32.mxu0 %vm62_vm0, %v10781_v4 }
  0x3b   :  { %9680 = vmatmul.mubr.msk.f32.vlgmr.msra.gmra.mxu1 %vm62_vm0, %v10791_v6  ;;  %9712 = vmatmul.mubr.msk.f32.vlgmr.msra.gmra.mxu0 %vm62_vm0, %v10791_v6 }
  0x3c   :  { %9736 = vmatpush3.msra.mxu1 %v8699_v36  ;;  %9768 = vmatpush3.msra.mxu0 %v8721_v37 }
  0x3d   :  { %9682 = vmatprep.mubr.msk.f32.mxu1 %vm62_vm0, %v10815_v10  ;;  %9714 = vmatprep.mubr.msk.f32.mxu0 %vm62_vm0, %v10815_v10 }
  0x3e   :  { %9737 = vmatprep.subr.mxu1 %v8698_v38  ;;  %9769 = vmatprep.subr.mxu0 %v8720_v39 }
  0x3f   :  { %9683 = vmatmul.mubr.msk.f32.gmra.mxu1 %vm62_vm0, %v10825_v12  ;;  %9715 = vmatmul.mubr.msk.f32.gmra.mxu0 %vm62_vm0, %v10825_v12 }
  0x40   :  { %9685 = vmatprep.mubr.msk.f32.mxu1 %vm62_vm0, %v10849_v16  ;;  %9717 = vmatprep.mubr.msk.f32.mxu0 %vm62_vm0, %v10849_v16 }
  0x41   :  { %9738 = vmatpush3.msra.mxu1 %v8698_v38  ;;  %9770 = vmatpush3.msra.mxu0 %v8720_v39 }
  0x42   :  { %9739 = vmatprep.subr.mxu1 %v8697_v40  ;;  %9771 = vmatprep.subr.mxu0 %v8719_v41 }
  0x43   :  { %9686 = vmatmul.mubr.msk.f32.gmra.mxu1 %vm62_vm0, %v10859_v18  ;;  %9718 = vmatmul.mubr.msk.f32.gmra.mxu0 %vm62_vm0, %v10859_v18 }
  0x44   :  { %9688 = vmatprep.mubr.msk.f32.mxu1 %vm62_vm0, %v10883_v22  ;;  %9720 = vmatprep.mubr.msk.f32.mxu0 %vm62_vm0, %v10883_v22 }
  0x45   :  { %9740 = vmatpush3.msra.mxu1 %v8697_v40  ;;  %9772 = vmatpush3.msra.mxu0 %v8719_v41 }
  0x46   :  { %9741 = vmatprep.subr.mxu1 %v8696_v42  ;;  %9773 = vmatprep.subr.mxu0 %v8718_v43 }
  0x47   :  { %9689 = vmatmul.mubr.msk.f32.gmra.mxu1 %vm62_vm0, %v10893_v24  ;;  %9721 = vmatmul.mubr.msk.f32.gmra.mxu0 %vm62_vm0, %v10893_v24 }
  0x48   :  { %9691 = vmatprep.mubr.msk.f32.mxu1 %vm62_vm0, %v10786_v5  ;;  %9723 = vmatprep.mubr.msk.f32.mxu0 %vm62_vm0, %v10786_v5 }
  0x49   :  { %9742 = vmatpush3.msra.mxu1 %v8696_v42  ;;  %9774 = vmatpush3.msra.mxu0 %v8718_v43 }
  0x4a   :  { %9799 = vmatprep.subr.mxu1 %v8743_v44  ;;  %9831 = vmatprep.subr.mxu0 %v8765_v45 }
  0x4b   :  { %9692 = vmatmul.mubr.msk.f32.gmra.mxu1 %vm62_vm0, %v10796_v7  ;;  %9724 = vmatmul.mubr.msk.f32.gmra.mxu0 %vm62_vm0, %v10796_v7 }
  0x4c   :  { %9694 = vmatprep.mubr.msk.f32.mxu1 %vm62_vm0, %v10820_v11  ;;  %9726 = vmatprep.mubr.msk.f32.mxu0 %vm62_vm0, %v10820_v11 }
  0x4f   :  { %9695 = vmatmul.mubr.msk.f32.gmra.mxu1 %vm62_vm0, %v10830_v13  ;;  %9727 = vmatmul.mubr.msk.f32.gmra.mxu0 %vm62_vm0, %v10830_v13 }
  0x50   :  { %9697 = vmatprep.mubr.msk.f32.mxu1 %vm62_vm0, %v10854_v17  ;;  %9729 = vmatprep.mubr.msk.f32.mxu0 %vm62_vm0, %v10854_v17 }
  0x53   :  { %9698 = vmatmul.mubr.msk.f32.gmra.mxu1 %vm62_vm0, %v10864_v19  ;;  %9730 = vmatmul.mubr.msk.f32.gmra.mxu0 %vm62_vm0, %v10864_v19 }
  0x54   :  { %9700 = vmatprep.mubr.msk.f32.mxu1 %vm62_vm0, %v10888_v23  ;;  %9732 = vmatprep.mubr.msk.f32.mxu0 %vm62_vm0, %v10888_v23 }
  0x57   :  { %9701 = vmatmul.mubr.msk.f32.gmra.mxu1 %vm62_vm0, %v10898_v25  ;;  %9733 = vmatmul.mubr.msk.f32.gmra.mxu0 %vm62_vm0, %v10898_v25 }
  0x58   :  { %9743 = vmatprep.mubr.msk.f32.mxu1 %vm62_vm0, %v10781_v4  ;;  %9775 = vmatprep.mubr.msk.f32.mxu0 %vm62_vm0, %v10781_v4 }
  0x5b   :  { %9744 = vmatmul.mubr.msk.f32.vlgmr.msra.gmra.mxu1 %vm62_vm0, %v10791_v6  ;;  %9776 = vmatmul.mubr.msk.f32.vlgmr.msra.gmra.mxu0 %vm62_vm0, %v10791_v6 }
  0x5c   :  { %9800 = vmatpush3.msra.mxu1 %v8743_v44  ;;  %9832 = vmatpush3.msra.mxu0 %v8765_v45 }
  0x5d   :  { %9746 = vmatprep.mubr.msk.f32.mxu1 %vm62_vm0, %v10815_v10  ;;  %9778 = vmatprep.mubr.msk.f32.mxu0 %vm62_vm0, %v10815_v10 }
  0x5e   :  { %9801 = vmatprep.subr.mxu1 %v8742_v46  ;;  %9833 = vmatprep.subr.mxu0 %v8764_v47 }
  0x5f   :  { %9747 = vmatmul.mubr.msk.f32.gmra.mxu1 %vm62_vm0, %v10825_v12  ;;  %9779 = vmatmul.mubr.msk.f32.gmra.mxu0 %vm62_vm0, %v10825_v12 }
  0x60   :  { %9749 = vmatprep.mubr.msk.f32.mxu1 %vm62_vm0, %v10849_v16  ;;  %9781 = vmatprep.mubr.msk.f32.mxu0 %vm62_vm0, %v10849_v16 }
  0x61   :  { %9802 = vmatpush3.msra.mxu1 %v8742_v46  ;;  %9834 = vmatpush3.msra.mxu0 %v8764_v47 }
  0x62   :  { %9803 = vmatprep.subr.mxu1 %v8741_v48  ;;  %9835 = vmatprep.subr.mxu0 %v8763_v49 }
  0x63   :  { %9750 = vmatmul.mubr.msk.f32.gmra.mxu1 %vm62_vm0, %v10859_v18  ;;  %9782 = vmatmul.mubr.msk.f32.gmra.mxu0 %vm62_vm0, %v10859_v18 }
  0x64   :  { %9752 = vmatprep.mubr.msk.f32.mxu1 %vm62_vm0, %v10883_v22  ;;  %9784 = vmatprep.mubr.msk.f32.mxu0 %vm62_vm0, %v10883_v22 }
  0x65   :  { %9804 = vmatpush3.msra.mxu1 %v8741_v48  ;;  %9836 = vmatpush3.msra.mxu0 %v8763_v49  ;;  %v11454_v48 = vld [vmem:[%s13257_s6] ss:$0 sm:$0xff] }
  0x66   :  { %9805 = vmatprep.subr.mxu1 %v8740_v50  ;;  %9837 = vmatprep.subr.mxu0 %v8762_v51 }
  0x67   :  { %9753 = vmatmul.mubr.msk.f32.gmra.mxu1 %vm62_vm0, %v10893_v24  ;;  %9785 = vmatmul.mubr.msk.f32.gmra.mxu0 %vm62_vm0, %v10893_v24 }
  0x68   :  { %9755 = vmatprep.mubr.msk.f32.mxu1 %vm62_vm0, %v10786_v5  ;;  %9787 = vmatprep.mubr.msk.f32.mxu0 %vm62_vm0, %v10786_v5 }
  0x69   :  { %9806 = vmatpush3.msra.mxu1 %v8740_v50  ;;  %9838 = vmatpush3.msra.mxu0 %v8762_v51 }
  0x6a   :  { %9895 = vmatprep.subr.mxu0 %v8809_v52  ;;  %9863 = vmatprep.subr.mxu1 %v8787_v53 }
  0x6b   :  { %9756 = vmatmul.mubr.msk.f32.gmra.mxu1 %vm62_vm0, %v10796_v7  ;;  %9788 = vmatmul.mubr.msk.f32.gmra.mxu0 %vm62_vm0, %v10796_v7 }
  0x6c   :  { %9758 = vmatprep.mubr.msk.f32.mxu1 %vm62_vm0, %v10820_v11  ;;  %9790 = vmatprep.mubr.msk.f32.mxu0 %vm62_vm0, %v10820_v11 }
  0x6f   :  { %9759 = vmatmul.mubr.msk.f32.gmra.mxu1 %vm62_vm0, %v10830_v13  ;;  %9791 = vmatmul.mubr.msk.f32.gmra.mxu0 %vm62_vm0, %v10830_v13 }
  0x70   :  { %9761 = vmatprep.mubr.msk.f32.mxu1 %vm62_vm0, %v10854_v17  ;;  %9793 = vmatprep.mubr.msk.f32.mxu0 %vm62_vm0, %v10854_v17 }
  0x73   :  { %9762 = vmatmul.mubr.msk.f32.gmra.mxu1 %vm62_vm0, %v10864_v19  ;;  %9794 = vmatmul.mubr.msk.f32.gmra.mxu0 %vm62_vm0, %v10864_v19 }
  0x74   :  { %9764 = vmatprep.mubr.msk.f32.mxu1 %vm62_vm0, %v10888_v23  ;;  %9796 = vmatprep.mubr.msk.f32.mxu0 %vm62_vm0, %v10888_v23 }
  0x77   :  { %9765 = vmatmul.mubr.msk.f32.gmra.mxu1 %vm62_vm0, %v10898_v25  ;;  %9797 = vmatmul.mubr.msk.f32.gmra.mxu0 %vm62_vm0, %v10898_v25 }
  0x78   :  { %9807 = vmatprep.mubr.msk.f32.mxu1 %vm62_vm0, %v10781_v4  ;;  %9839 = vmatprep.mubr.msk.f32.mxu0 %vm62_vm0, %v10781_v4 }
  0x7b   :  { %9808 = vmatmul.mubr.msk.f32.vlgmr.msra.gmra.mxu1 %vm62_vm0, %v10791_v6  ;;  %9840 = vmatmul.mubr.msk.f32.vlgmr.msra.gmra.mxu0 %vm62_vm0, %v10791_v6 }
  0x7c   :  { %9896 = vmatpush3.msra.mxu0 %v8809_v52  ;;  %9810 = vmatprep.mubr.msk.f32.mxu1 %vm62_vm0, %v10815_v10 }
  0x7d   :  { %9842 = vmatprep.mubr.msk.f32.mxu0 %vm62_vm0, %v10815_v10  ;;  %9864 = vmatpush3.msra.mxu1 %v8787_v53 }
  0x7e   :  { %9897 = vmatprep.subr.mxu0 %v8808_v54  ;;  %9865 = vmatprep.subr.mxu1 %v8786_v55 }
  0x7f   :  { %9811 = vmatmul.mubr.msk.f32.gmra.mxu1 %vm62_vm0, %v10825_v12  ;;  %9843 = vmatmul.mubr.msk.f32.gmra.mxu0 %vm62_vm0, %v10825_v12 }
  0x80   :  { %9813 = vmatprep.mubr.msk.f32.mxu1 %vm62_vm0, %v10849_v16  ;;  %9845 = vmatprep.mubr.msk.f32.mxu0 %vm62_vm0, %v10849_v16 }
  0x81   :  { %9898 = vmatpush3.msra.mxu0 %v8808_v54  ;;  %9866 = vmatpush3.msra.mxu1 %v8786_v55 }
  0x82   :  { %9899 = vmatprep.subr.mxu0 %v8807_v56  ;;  %9867 = vmatprep.subr.mxu1 %v8785_v57 }
  0x83   :  { %9814 = vmatmul.mubr.msk.f32.gmra.mxu1 %vm62_vm0, %v10859_v18  ;;  %9846 = vmatmul.mubr.msk.f32.gmra.mxu0 %vm62_vm0, %v10859_v18 }
  0x84   :  { %9816 = vmatprep.mubr.msk.f32.mxu1 %vm62_vm0, %v10883_v22  ;;  %9848 = vmatprep.mubr.msk.f32.mxu0 %vm62_vm0, %v10883_v22 }
  0x85   :  { %9900 = vmatpush3.msra.mxu0 %v8807_v56  ;;  %9868 = vmatpush3.msra.mxu1 %v8785_v57 }
  0x86   :  { %9901 = vmatprep.subr.mxu0 %v8806_v58  ;;  %9869 = vmatprep.subr.mxu1 %v8784_v59 }
  0x87   :  { %9817 = vmatmul.mubr.msk.f32.gmra.mxu1 %vm62_vm0, %v10893_v24  ;;  %9849 = vmatmul.mubr.msk.f32.gmra.mxu0 %vm62_vm0, %v10893_v24 }
  0x88   :  { %9819 = vmatprep.mubr.msk.f32.mxu1 %vm62_vm0, %v10786_v5  ;;  %9851 = vmatprep.mubr.msk.f32.mxu0 %vm62_vm0, %v10786_v5 }
  0x89   :  { %9902 = vmatpush3.msra.mxu0 %v8806_v58  ;;  %9870 = vmatpush3.msra.mxu1 %v8784_v59 }
  0x8a   :  { %9927 = vmatprep.subr.mxu1 %v8831_v60 }
  0x8b   :  { %9820 = vmatmul.mubr.msk.f32.gmra.mxu1 %vm62_vm0, %v10796_v7  ;;  %9852 = vmatmul.mubr.msk.f32.gmra.mxu0 %vm62_vm0, %v10796_v7 }
  0x8c   :  { %9822 = vmatprep.mubr.msk.f32.mxu1 %vm62_vm0, %v10820_v11  ;;  %9854 = vmatprep.mubr.msk.f32.mxu0 %vm62_vm0, %v10820_v11 }
  0x8f   :  { %9823 = vmatmul.mubr.msk.f32.gmra.mxu1 %vm62_vm0, %v10830_v13  ;;  %9855 = vmatmul.mubr.msk.f32.gmra.mxu0 %vm62_vm0, %v10830_v13 }
  0x90   :  { %9825 = vmatprep.mubr.msk.f32.mxu1 %vm62_vm0, %v10854_v17  ;;  %9857 = vmatprep.mubr.msk.f32.mxu0 %vm62_vm0, %v10854_v17 }
  0x93   :  { %9826 = vmatmul.mubr.msk.f32.gmra.mxu1 %vm62_vm0, %v10864_v19  ;;  %9858 = vmatmul.mubr.msk.f32.gmra.mxu0 %vm62_vm0, %v10864_v19 }
  0x94   :  { %9828 = vmatprep.mubr.msk.f32.mxu1 %vm62_vm0, %v10888_v23  ;;  %9860 = vmatprep.mubr.msk.f32.mxu0 %vm62_vm0, %v10888_v23 }
  0x97   :  { %9829 = vmatmul.mubr.msk.f32.gmra.mxu1 %vm62_vm0, %v10898_v25  ;;  %9861 = vmatmul.mubr.msk.f32.gmra.mxu0 %vm62_vm0, %v10898_v25 }
  0x98   :  { %9871 = vmatprep.mubr.msk.f32.mxu1 %vm62_vm0, %v10781_v4  ;;  %9903 = vmatprep.mubr.msk.f32.mxu0 %vm62_vm0, %v10781_v4 }
  0x9b   :  { %9872 = vmatmul.mubr.msk.f32.vlgmr.msra.gmra.mxu1 %vm62_vm0, %v10791_v6  ;;  %9904 = vmatmul.mubr.msk.f32.vlgmr.msra.gmra.mxu0 %vm62_vm0, %v10791_v6 }
  0x9c   :  { %9874 = vmatprep.mubr.msk.f32.mxu1 %vm62_vm0, %v10815_v10  ;;  %9906 = vmatprep.mubr.msk.f32.mxu0 %vm62_vm0, %v10815_v10 }
  0x9d   :  { %9928 = vmatpush3.msra.mxu1 %v8831_v60 }
  0x9e   :  { %9929 = vmatprep.subr.mxu1 %v8830_v61 }
  0x9f   :  { %9875 = vmatmul.mubr.msk.f32.gmra.mxu1 %vm62_vm0, %v10825_v12  ;;  %9907 = vmatmul.mubr.msk.f32.gmra.mxu0 %vm62_vm0, %v10825_v12 }
  0xa0   :  { %9877 = vmatprep.mubr.msk.f32.mxu1 %vm62_vm0, %v10849_v16  ;;  %9909 = vmatprep.mubr.msk.f32.mxu0 %vm62_vm0, %v10849_v16 }
  0xa1   :  { %9930 = vmatpush3.msra.mxu1 %v8830_v61 }
  0xa2   :  { %9931 = vmatprep.subr.mxu1 %v8829_v62 }
  0xa3   :  { %9878 = vmatmul.mubr.msk.f32.gmra.mxu1 %vm62_vm0, %v10859_v18  ;;  %9910 = vmatmul.mubr.msk.f32.gmra.mxu0 %vm62_vm0, %v10859_v18 }
  0xa4   :  { %9880 = vmatprep.mubr.msk.f32.mxu1 %vm62_vm0, %v10883_v22  ;;  %9912 = vmatprep.mubr.msk.f32.mxu0 %vm62_vm0, %v10883_v22 }
  0xa5   :  { %9932 = vmatpush3.msra.mxu1 %v8829_v62 }
  0xa6   :  { %9933 = vmatprep.subr.mxu1 %v8828_v63 }
  0xa7   :  { %9881 = vmatmul.mubr.msk.f32.gmra.mxu1 %vm62_vm0, %v10893_v24  ;;  %9913 = vmatmul.mubr.msk.f32.gmra.mxu0 %vm62_vm0, %v10893_v24 }
  0xa8   :  { %9883 = vmatprep.mubr.msk.f32.mxu1 %vm62_vm0, %v10786_v5  ;;  %9915 = vmatprep.mubr.msk.f32.mxu0 %vm62_vm0, %v10786_v5 }
  0xa9   :  { %9934 = vmatpush3.msra.mxu1 %v8828_v63 }
  0xab   :  { %9884 = vmatmul.mubr.msk.f32.gmra.mxu1 %vm62_vm0, %v10796_v7  ;;  %9916 = vmatmul.mubr.msk.f32.gmra.mxu0 %vm62_vm0, %v10796_v7 }
  0xac   :  { %9886 = vmatprep.mubr.msk.f32.mxu1 %vm62_vm0, %v10820_v11  ;;  %9918 = vmatprep.mubr.msk.f32.mxu0 %vm62_vm0, %v10820_v11 }
  0xaf   :  { %9887 = vmatmul.mubr.msk.f32.gmra.mxu1 %vm62_vm0, %v10830_v13  ;;  %9919 = vmatmul.mubr.msk.f32.gmra.mxu0 %vm62_vm0, %v10830_v13 }
  0xb0   :  { %9889 = vmatprep.mubr.msk.f32.mxu1 %vm62_vm0, %v10854_v17  ;;  %9921 = vmatprep.mubr.msk.f32.mxu0 %vm62_vm0, %v10854_v17 }
  0xb3   :  { %9890 = vmatmul.mubr.msk.f32.gmra.mxu1 %vm62_vm0, %v10864_v19  ;;  %9922 = vmatmul.mubr.msk.f32.gmra.mxu0 %vm62_vm0, %v10864_v19 }
  0xb4   :  { %9892 = vmatprep.mubr.msk.f32.mxu1 %vm62_vm0, %v10888_v23  ;;  %9924 = vmatprep.mubr.msk.f32.mxu0 %vm62_vm0, %v10888_v23 }
  0xb7   :  { %9893 = vmatmul.mubr.msk.f32.gmra.mxu1 %vm62_vm0, %v10898_v25  ;;  %9925 = vmatmul.mubr.msk.f32.gmra.mxu0 %vm62_vm0, %v10898_v25 }
  0xb8   :  { %9935 = vmatprep.mubr.msk.f32.mxu1 %vm62_vm0, %v10781_v4 }
  0xbb   :  { %9936 = vmatmul.mubr.msk.f32.vlgmr.msra.gmra.mxu1 %vm62_vm0, %v10791_v6 }
  0xbc   :  { %9938 = vmatprep.mubr.msk.f32.mxu1 %vm62_vm0, %v10815_v10 }
  0xbf   :  { %9939 = vmatmul.mubr.msk.f32.gmra.mxu1 %vm62_vm0, %v10825_v12 }
  0xc0   :  { %9941 = vmatprep.mubr.msk.f32.mxu1 %vm62_vm0, %v10849_v16 }
  0xc3   :  { %9942 = vmatmul.mubr.msk.f32.gmra.mxu1 %vm62_vm0, %v10859_v18 }
  0xc4   :  { %9944 = vmatprep.mubr.msk.f32.mxu1 %vm62_vm0, %v10883_v22 }
  0xc7   :  { %9945 = vmatmul.mubr.msk.f32.gmra.mxu1 %vm62_vm0, %v10893_v24 }
  0xc8   :  { %9947 = vmatprep.mubr.msk.f32.mxu1 %vm62_vm0, %v10786_v5 }
  0xcb   :  { %v9585_v0 = vpop.f32.mrf.mxu0  ;;  %v11360_v1 = vpop.f32.mrf.mxu1  ;;  %9948 = vmatmul.mubr.msk.f32.gmra.mxu1 %vm62_vm0, %v10796_v7 }
  0xcc   :  { %9950 = vmatprep.mubr.msk.f32.mxu1 %vm62_vm0, %v10820_v11  ;;  %v183_v34 = vadd.f32 %v9585_v0, %v11369_v2 }
  0xcd   :  { %v177_v3 = vpop.f32.mrf.mxu0  ;;  %v11371_v4 = vpop.f32.mrf.mxu1 }
  0xce   :  { %v178_v5 = vadd.f32 %v11369_v2, %v177_v3  ;;  %v218_v56 = vadd.f32 %v11369_v2, %v11371_v4 }
  0xcf   :  { %v9588_v6 = vpop.f32.mrf.mxu0  ;;  %v11374_v8 = vpop.f32.mrf.mxu1  ;;  %9951 = vmatmul.mubr.msk.f32.gmra.mxu1 %vm62_vm0, %v10830_v13 }
  0xd0   :  { %9963 = vmatprep.mubr.msk.f32.mxu0 %vm2054_vm1, %v178_v5  ;;  %9953 = vmatprep.mubr.msk.f32.mxu1 %vm62_vm0, %v10854_v17  ;;  %v193_v42 = vadd.f32 %v9588_v6, %v11369_v2 }
  0xd1   :  { %v187_v7 = vpop.f32.mrf.mxu0  ;;  %v11381_v9 = vpop.f32.mrf.mxu1 }
  0xd2   :  { %v188_v14 = vadd.f32 %v11369_v2, %v187_v7  ;;  %v228_v3 = vadd.f32 %v11369_v2, %v11381_v9  ;;  %v223_v7 = vadd.f32 %v11360_v1, %v11369_v2 }
  0xd3   :  { %v11383_v10 = vpop.f32.mrf.mxu0  ;;  %v11385_v11 = vpop.f32.mrf.mxu1  ;;  %9954 = vmatmul.mubr.msk.f32.gmra.mxu1 %vm62_vm0, %v10864_v19  ;;  %v11406_v19 = vld [vmem:[%s13256_s5] ss:$0 sm:$0xff] }
  0xd4   :  { %9956 = vmatprep.mubr.msk.f32.mxu1 %vm62_vm0, %v10888_v23  ;;  %v203_v51 = vadd.f32 %v11383_v10, %v11369_v2 }
  0xd5   :  { %v197_v12 = vpop.f32.mrf.mxu0  ;;  %v11391_v13 = vpop.f32.mrf.mxu1 }
  0xd6   :  { %v198_v38 = vadd.f32 %v11369_v2, %v197_v12 }
  0xd7   :  { %v11394_v15 = vpop.f32.mrf.mxu0  ;;  %v11396_v16 = vpop.f32.mrf.mxu1  ;;  %9957 = vmatmul.mubr.msk.f32.gmra.mxu1 %vm62_vm0, %v10898_v25 }
  0xd8   :  { %9970 = vmatprep.mubr.msk.f32.mxu1 %vm2054_vm1, %v188_v14  ;;  %v213_v60 = vadd.f32 %v11394_v15, %v11369_v2  ;;  %v238_v15 = vadd.f32 %v11369_v2, %v11391_v13 }
  0xd9   :  { %v207_v17 = vpop.f32.mrf.mxu0  ;;  %v11401_v18 = vpop.f32.mrf.mxu1 }
  0xda   :  { %v208_v46 = vadd.f32 %v11369_v2, %v207_v17 }
  0xdb   :  { %v9617_v20 = vpop.f32.mrf.mxu1  ;;  %v11408_v21 = vpop.f32.mrf.mxu0 }
  0xdc   :  { %v339_v22 = vadd.f32 %v9617_v20, %v11406_v19 }
  0xdd   :  { %v333_v23 = vpop.f32.mrf.mxu1  ;;  %v11411_v24 = vpop.f32.mrf.mxu0 }
  0xde   :  { %v334_v25 = vadd.f32 %v11406_v19, %v333_v23  ;;  %9959 = vmatprep.subr.msk.mxu0 %vm2054_vm1, %v339_v22 }
  0xdf   :  { %v9620_v26 = vpop.f32.mrf.mxu1  ;;  %v11415_v27 = vpop.f32.mrf.mxu0  ;;  %9960 = vmatpush3.xpose.msk.msra.mxu0 %vm2054_vm1, %v339_v22  ;;  %v233_v22 = vadd.f32 %v11374_v8, %v11369_v2  ;;  %v248_v8 = vadd.f32 %v11369_v2, %v11401_v18  ;;  %v11539_v18 = vld [vmem:[%s13255_s4 + $0x1] ss:$0 sm:$0xff] }
  0xe0   :  { %v349_v28 = vadd.f32 %v9620_v26, %v11406_v19  ;;  %9961 = vmatprep.subr.msk.mxu0 %vm2054_vm1, %v334_v25 }
  0xe1   :  { %v343_v29 = vpop.f32.mrf.mxu1  ;;  %v11420_v30 = vpop.f32.mrf.mxu0 }
  0xe2   :  { %v344_v31 = vadd.f32 %v11406_v19, %v343_v29  ;;  %9966 = vmatprep.subr.msk.mxu1 %vm2054_vm1, %v349_v28 }
  0xe3   :  { %v9623_v32 = vpop.f32.mrf.mxu1  ;;  %v11424_v33 = vpop.f32.mrf.mxu0  ;;  %9962 = vmatpush3.xpose.msk.msra.mxu0 %vm2054_vm1, %v334_v25  ;;  %9967 = vmatpush3.xpose.msk.msra.mxu1 %vm2054_vm1, %v349_v28  ;;  %v11522_v28 = vld [vmem:[%s13256_s5 + $0x1] ss:$0 sm:$0xff] }
  0xe4   :  { %v359_v35 = vadd.f32 %v9623_v32, %v11406_v19  ;;  %9968 = vmatprep.subr.msk.mxu1 %vm2054_vm1, %v344_v31 }
  0xe5   :  { %v353_v36 = vpop.f32.mrf.mxu1  ;;  %v11431_v37 = vpop.f32.mrf.mxu0 }
  0xe6   :  { %13291 = vst [vmem:[#allocation2_spill] sm:$0xff] %v11431_v37  ;;  %v354_v39 = vadd.f32 %v11406_v19, %v353_v36  ;;  %9964 = vmatmul.mubr.msk.f32.vlgmr.msra.gmra.mxu0 %vm2054_vm1, %v183_v34  ;;  %9973 = vmatprep.subr.msk.mxu0 %vm2054_vm1, %v359_v35  ;;  %v243_v34 = vadd.f32 %v11385_v11, %v11369_v2 }
  0xe7   :  { %v9626_v40 = vpop.f32.mrf.mxu1  ;;  %v11437_v41 = vpop.f32.mrf.mxu0  ;;  %9969 = vmatpush3.xpose.msk.msra.mxu1 %vm2054_vm1, %v344_v31  ;;  %9974 = vmatpush3.xpose.msk.msra.mxu0 %vm2054_vm1, %v359_v35 }
  0xe8   :  { %v369_v43 = vadd.f32 %v9626_v40, %v11406_v19  ;;  %9977 = vmatprep.mubr.msk.f32.mxu0 %vm2054_vm1, %v198_v38  ;;  %9975 = vmatprep.subr.msk.mxu0 %vm2054_vm1, %v354_v39 }
  0xe9   :  { %v363_v44 = vpop.f32.mrf.mxu1  ;;  %v11445_v45 = vpop.f32.mrf.mxu0 }
  0xea   :  { %13292 = vst [vmem:[#allocation3_spill] sm:$0xff] %v11445_v45  ;;  %v364_v47 = vadd.f32 %v11406_v19, %v363_v44  ;;  %9971 = vmatmul.mubr.msk.f32.vlgmr.msra.gmra.mxu1 %vm2054_vm1, %v193_v42  ;;  %9980 = vmatprep.subr.msk.mxu1 %vm2054_vm1, %v369_v43  ;;  %v253_v42 = vadd.f32 %v11396_v16, %v11369_v2 }
  0xeb   :  { %v9629_v49 = vpop.f32.mrf.mxu1  ;;  %v9661_v50 = vpop.f32.mrf.mxu0  ;;  %9976 = vmatpush3.xpose.msk.msra.mxu0 %vm2054_vm1, %v354_v39  ;;  %9981 = vmatpush3.xpose.msk.msra.mxu1 %vm2054_vm1, %v369_v43 }
  0xec   :  { %v379_v52 = vadd.f32 %v9629_v49, %v11406_v19  ;;  %v11462_v53 = vadd.f32 %v9661_v50, %v11454_v48  ;;  %9984 = vmatprep.mubr.msk.f32.mxu1 %vm2054_vm1, %v208_v46  ;;  %9982 = vmatprep.subr.msk.mxu1 %vm2054_vm1, %v364_v47 }
  0xed   :  { %v373_v54 = vpop.f32.mrf.mxu1  ;;  %v11466_v55 = vpop.f32.mrf.mxu0 }
  0xee   :  { %13293 = vst [vmem:[#allocation4_spill] sm:$0xff] %v11462_v53  ;;  %13294 = vst [vmem:[#allocation5_spill] sm:$0xff] %v11466_v55  ;;  %v374_v57 = vadd.f32 %v11406_v19, %v373_v54  ;;  %9978 = vmatmul.mubr.msk.f32.vlgmr.msra.gmra.mxu0 %vm2054_vm1, %v203_v51  ;;  %9987 = vmatprep.subr.msk.mxu0 %vm2054_vm1, %v379_v52 }
  0xef   :  { %v9632_v58 = vpop.f32.mrf.mxu1  ;;  %v9664_v59 = vpop.f32.mrf.mxu0  ;;  %9983 = vmatpush3.xpose.msk.msra.mxu1 %vm2054_vm1, %v364_v47  ;;  %9988 = vmatpush3.xpose.msk.msra.mxu0 %vm2054_vm1, %v379_v52 }
  0xf0   :  { %v389_v61 = vadd.f32 %v9632_v58, %v11406_v19  ;;  %v11479_v62 = vadd.f32 %v9664_v59, %v11454_v48  ;;  %9991 = vmatprep.mubr.msk.f32.mxu0 %vm2054_vm1, %v218_v56  ;;  %9989 = vmatprep.subr.msk.mxu0 %vm2054_vm1, %v374_v57 }
  0xf1   :  { %v383_v63 = vpop.f32.mrf.mxu1  ;;  %v11483_v0 = vpop.f32.mrf.mxu0 }
  0xf2   :  { %13295 = vst [vmem:[#allocation6_spill] sm:$0xff] %v11479_v62  ;;  %13296 = vst [vmem:[#allocation7_spill] sm:$0xff] %v11483_v0  ;;  %v384_v4 = vadd.f32 %v11406_v19, %v383_v63  ;;  %9985 = vmatmul.mubr.msk.f32.vlgmr.msra.gmra.mxu1 %vm2054_vm1, %v213_v60  ;;  %9994 = vmatprep.subr.msk.mxu1 %vm2054_vm1, %v389_v61 }
  0xf3   :  { %v9635_v5 = vpop.f32.mrf.mxu1  ;;  %v9667_v6 = vpop.f32.mrf.mxu0  ;;  %9990 = vmatpush3.xpose.msk.msra.mxu0 %vm2054_vm1, %v374_v57  ;;  %9995 = vmatpush3.xpose.msk.msra.mxu1 %vm2054_vm1, %v389_v61 }
  0xf4   :  { %v399_v10 = vadd.f32 %v9635_v5, %v11406_v19  ;;  %v11496_v12 = vadd.f32 %v9667_v6, %v11454_v48  ;;  %9998 = vmatprep.mubr.msk.f32.mxu1 %vm2054_vm1, %v228_v3  ;;  %9996 = vmatprep.subr.msk.mxu1 %vm2054_vm1, %v384_v4 }
  0xf5   :  { %v393_v9 = vpop.f32.mrf.mxu1  ;;  %v11500_v14 = vpop.f32.mrf.mxu0 }
  0xf6   :  { %13297 = vst [vmem:[#allocation8_spill] sm:$0xff] %v11496_v12  ;;  %13298 = vst [vmem:[#allocation9_spill] sm:$0xff] %v11500_v14  ;;  %v394_v17 = vadd.f32 %v11406_v19, %v393_v9  ;;  %9992 = vmatmul.mubr.msk.f32.vlgmr.msra.gmra.mxu0 %vm2054_vm1, %v223_v7  ;;  %10001 = vmatprep.subr.msk.mxu0 %vm2054_vm1, %v399_v10 }
  0xf7   :  { %v9638_v1 = vpop.f32.mrf.mxu1  ;;  %v9670_v20 = vpop.f32.mrf.mxu0  ;;  %9997 = vmatpush3.xpose.msk.msra.mxu1 %vm2054_vm1, %v384_v4  ;;  %10002 = vmatpush3.xpose.msk.msra.mxu0 %vm2054_vm1, %v399_v10 }
  0xf8   :  { %v409_v23 = vadd.f32 %v9638_v1, %v11406_v19  ;;  %v11513_v25 = vadd.f32 %v9670_v20, %v11454_v48  ;;  %10005 = vmatprep.mubr.msk.f32.mxu0 %vm2054_vm1, %v238_v15  ;;  %10003 = vmatprep.subr.msk.mxu0 %vm2054_vm1, %v394_v17 }
  0xf9   :  { %v403_v13 = vpop.f32.mrf.mxu1  ;;  %v11517_v26 = vpop.f32.mrf.mxu0 }
  0xfa   :  { %13299 = vst [vmem:[#allocation10_spill] sm:$0xff] %v11513_v25  ;;  %13300 = vst [vmem:[#allocation11_spill] sm:$0xff] %v11517_v26  ;;  %v404_v29 = vadd.f32 %v11406_v19, %v403_v13  ;;  %9999 = vmatmul.mubr.msk.f32.vlgmr.msra.gmra.mxu1 %vm2054_vm1, %v233_v22  ;;  %10008 = vmatprep.subr.msk.mxu1 %vm2054_vm1, %v409_v23 }
  0xfb   :  { %v9681_v31 = vpop.f32.mrf.mxu1  ;;  %v9713_v32 = vpop.f32.mrf.mxu0  ;;  %10004 = vmatpush3.xpose.msk.msra.mxu0 %vm2054_vm1, %v394_v17  ;;  %10009 = vmatpush3.xpose.msk.msra.mxu1 %vm2054_vm1, %v409_v23 }
  0xfc   :  { %v811_v35 = vadd.f32 %v9713_v32, %v11522_v28  ;;  %10012 = vmatprep.mubr.msk.f32.mxu1 %vm2054_vm1, %v248_v8  ;;  %10010 = vmatprep.subr.msk.mxu1 %vm2054_vm1, %v404_v29  ;;  %v653_v2 = vadd.f32 %v9681_v31, %v11539_v18 }
  0xfd   :  { %v647_v19 = vpop.f32.mrf.mxu1  ;;  %v805_v36 = vpop.f32.mrf.mxu0 }
  0xfe   :  { %v648_v38 = vadd.f32 %v11539_v18, %v647_v19  ;;  %v806_v39 = vadd.f32 %v11522_v28, %v805_v36  ;;  %10006 = vmatmul.mubr.msk.f32.vlgmr.msra.gmra.mxu0 %vm2054_vm1, %v243_v34  ;;  %10015 = vmatprep.subr.msk.mxu0 %vm2054_vm1, %v811_v35 }
  0xff   :  { %v9684_v11 = vpop.f32.mrf.mxu1  ;;  %v9716_v40 = vpop.f32.mrf.mxu0  ;;  %10011 = vmatpush3.xpose.msk.msra.mxu1 %vm2054_vm1, %v404_v29  ;;  %10016 = vmatpush3.xpose.msk.msra.mxu0 %vm2054_vm1, %v811_v35 }
 0x100   :  { %v821_v43 = vadd.f32 %v9716_v40, %v11522_v28  ;;  %10017 = vmatprep.subr.msk.mxu0 %vm2054_vm1, %v806_v39  ;;  %10019 = vmatprep.mubr.msk.f32.mxu0 %vm2054_vm1, %v648_v38  ;;  %v663_v60 = vadd.f32 %v9684_v11, %v11539_v18 }
 0x101   :  { %v657_v44 = vpop.f32.mrf.mxu1  ;;  %v815_v46 = vpop.f32.mrf.mxu0 }
 0x102   :  { %v658_v47 = vadd.f32 %v11539_v18, %v657_v44  ;;  %v816_v49 = vadd.f32 %v11522_v28, %v815_v46  ;;  %10013 = vmatmul.mubr.msk.f32.vlgmr.msra.gmra.mxu1 %vm2054_vm1, %v253_v42  ;;  %10022 = vmatprep.subr.msk.mxu1 %vm2054_vm1, %v821_v43 }
 0x103   :  { %v9687_v50 = vpop.f32.mrf.mxu1  ;;  %v9719_v51 = vpop.f32.mrf.mxu0  ;;  %10018 = vmatpush3.xpose.msk.msra.mxu0 %vm2054_vm1, %v806_v39  ;;  %10023 = vmatpush3.xpose.msk.msra.mxu1 %vm2054_vm1, %v821_v43 }
 0x104   :  { %v831_v16 = vadd.f32 %v9719_v51, %v11522_v28  ;;  %10024 = vmatprep.subr.msk.mxu1 %vm2054_vm1, %v816_v49  ;;  %10026 = vmatprep.mubr.msk.f32.mxu1 %vm2054_vm1, %v658_v47  ;;  %v673_v10 = vadd.f32 %v9687_v50, %v11539_v18 }
 0x105   :  { %v667_v52 = vpop.f32.mrf.mxu1  ;;  %v825_v54 = vpop.f32.mrf.mxu0 }
 0x106   :  { %v668_v56 = vadd.f32 %v11539_v18, %v667_v52  ;;  %v826_v57 = vadd.f32 %v11522_v28, %v825_v54  ;;  %10020 = vmatmul.mubr.msk.f32.vlgmr.msra.gmra.mxu0 %vm2054_vm1, %v653_v2  ;;  %10029 = vmatprep.subr.msk.mxu0 %vm2054_vm1, %v831_v16 }
 0x107   :  { %v9690_v58 = vpop.f32.mrf.mxu1  ;;  %v9722_v59 = vpop.f32.mrf.mxu0  ;;  %10025 = vmatpush3.xpose.msk.msra.mxu1 %vm2054_vm1, %v816_v49  ;;  %10030 = vmatpush3.xpose.msk.msra.mxu0 %vm2054_vm1, %v831_v16 }
 0x108   :  { %v841_v61 = vadd.f32 %v9722_v59, %v11522_v28  ;;  %10031 = vmatprep.subr.msk.mxu0 %vm2054_vm1, %v826_v57  ;;  %10033 = vmatprep.mubr.msk.f32.mxu0 %vm2054_vm1, %v668_v56  ;;  %v683_v13 = vadd.f32 %v9690_v58, %v11539_v18 }
 0x109   :  { %v677_v63 = vpop.f32.mrf.mxu1  ;;  %v835_v3 = vpop.f32.mrf.mxu0 }
 0x10a   :  { %v678_v4 = vadd.f32 %v11539_v18, %v677_v63  ;;  %v836_v5 = vadd.f32 %v11522_v28, %v835_v3  ;;  %10027 = vmatmul.mubr.msk.f32.vlgmr.msra.gmra.mxu1 %vm2054_vm1, %v663_v60  ;;  %10036 = vmatprep.subr.msk.mxu1 %vm2054_vm1, %v841_v61 }
 0x10b   :  { %v9693_v6 = vpop.f32.mrf.mxu1  ;;  %v9725_v7 = vpop.f32.mrf.mxu0  ;;  %10032 = vmatpush3.xpose.msk.msra.mxu0 %vm2054_vm1, %v826_v57  ;;  %10037 = vmatpush3.xpose.msk.msra.mxu1 %vm2054_vm1, %v841_v61 }
 0x10c   :  { %v851_v9 = vadd.f32 %v9725_v7, %v11522_v28  ;;  %10038 = vmatprep.subr.msk.mxu1 %vm2054_vm1, %v836_v5  ;;  %10040 = vmatprep.mubr.msk.f32.mxu1 %vm2054_vm1, %v678_v4  ;;  %v693_v36 = vadd.f32 %v9693_v6, %v11539_v18 }
 0x10d   :  { %v687_v15 = vpop.f32.mrf.mxu1  ;;  %v845_v17 = vpop.f32.mrf.mxu0 }
 0x10e   :  { %v688_v1 = vadd.f32 %v11539_v18, %v687_v15  ;;  %v846_v20 = vadd.f32 %v11522_v28, %v845_v17  ;;  %10034 = vmatmul.mubr.msk.f32.vlgmr.msra.gmra.mxu0 %vm2054_vm1, %v673_v10  ;;  %10043 = vmatprep.subr.msk.mxu0 %vm2054_vm1, %v851_v9 }
 0x10f   :  { %v9696_v22 = vpop.f32.mrf.mxu1  ;;  %v9728_v23 = vpop.f32.mrf.mxu0  ;;  %10039 = vmatpush3.xpose.msk.msra.mxu1 %vm2054_vm1, %v836_v5  ;;  %10044 = vmatpush3.xpose.msk.msra.mxu0 %vm2054_vm1, %v851_v9 }
 0x110   :  { %v861_v8 = vadd.f32 %v9728_v23, %v11522_v28  ;;  %10045 = vmatprep.subr.msk.mxu0 %vm2054_vm1, %v846_v20  ;;  %10047 = vmatprep.mubr.msk.f32.mxu0 %vm2054_vm1, %v688_v1  ;;  %v703_v46 = vadd.f32 %v9696_v22, %v11539_v18 }
 0x111   :  { %v697_v29 = vpop.f32.mrf.mxu1  ;;  %v855_v31 = vpop.f32.mrf.mxu0 }
 0x112   :  { %v698_v32 = vadd.f32 %v11539_v18, %v697_v29  ;;  %v856_v34 = vadd.f32 %v11522_v28, %v855_v31  ;;  %10041 = vmatmul.mubr.msk.f32.vlgmr.msra.gmra.mxu1 %vm2054_vm1, %v683_v13  ;;  %10050 = vmatprep.subr.msk.mxu1 %vm2054_vm1, %v861_v8 }
 0x113   :  { %v9699_v35 = vpop.f32.mrf.mxu1  ;;  %v9731_v19 = vpop.f32.mrf.mxu0  ;;  %10046 = vmatpush3.xpose.msk.msra.mxu0 %vm2054_vm1, %v846_v20  ;;  %10051 = vmatpush3.xpose.msk.msra.mxu1 %vm2054_vm1, %v861_v8 }
 0x114   :  { %v871_v38 = vadd.f32 %v9731_v19, %v11522_v28  ;;  %10052 = vmatprep.subr.msk.mxu1 %vm2054_vm1, %v856_v34  ;;  %10054 = vmatprep.mubr.msk.f32.mxu1 %vm2054_vm1, %v698_v32  ;;  %v713_v54 = vadd.f32 %v9699_v35, %v11539_v18 }
 0x115   :  { %v707_v39 = vpop.f32.mrf.mxu1  ;;  %v865_v11 = vpop.f32.mrf.mxu0 }
 0x116   :  { %v708_v40 = vadd.f32 %v11539_v18, %v707_v39  ;;  %v866_v42 = vadd.f32 %v11522_v28, %v865_v11  ;;  %10048 = vmatmul.mubr.msk.f32.vlgmr.msra.gmra.mxu0 %vm2054_vm1, %v693_v36  ;;  %10057 = vmatprep.subr.msk.mxu0 %vm2054_vm1, %v871_v38 }
 0x117   :  { %v9702_v43 = vpop.f32.mrf.mxu1  ;;  %v9734_v44 = vpop.f32.mrf.mxu0  ;;  %10053 = vmatpush3.xpose.msk.msra.mxu1 %vm2054_vm1, %v856_v34  ;;  %10058 = vmatpush3.xpose.msk.msra.mxu0 %vm2054_vm1, %v871_v38 }
 0x118   :  { %v881_v47 = vadd.f32 %v9734_v44, %v11522_v28  ;;  %10059 = vmatprep.subr.msk.mxu0 %vm2054_vm1, %v866_v42  ;;  %10061 = vmatprep.mubr.msk.f32.mxu0 %vm2054_vm1, %v708_v40  ;;  %v723_v61 = vadd.f32 %v9702_v43, %v11539_v18  ;;  %v11693_v40 = vld [vmem:[%s13256_s5 + $0x2] ss:$0 sm:$0xff] }
 0x119   :  { %v717_v49 = vpop.f32.mrf.mxu1  ;;  %v875_v50 = vpop.f32.mrf.mxu0 }
 0x11a   :  { %v718_v51 = vadd.f32 %v11539_v18, %v717_v49  ;;  %v876_v2 = vadd.f32 %v11522_v28, %v875_v50  ;;  %10055 = vmatmul.mubr.msk.f32.vlgmr.msra.gmra.mxu1 %vm2054_vm1, %v703_v46  ;;  %10064 = vmatprep.subr.msk.mxu1 %vm2054_vm1, %v881_v47  ;;  %v11628_v28 = vld [vmem:[%s13255_s4 + $0x2] ss:$0 sm:$0xff] }
 0x11b   :  { %v11616_v16 = vpop.f32.mrf.mxu1  ;;  %v11618_v52 = vpop.f32.mrf.mxu0  ;;  %10060 = vmatpush3.xpose.msk.msra.mxu0 %vm2054_vm1, %v866_v42  ;;  %10065 = vmatpush3.xpose.msk.msra.mxu1 %vm2054_vm1, %v881_v47 }
 0x11c   :  { %13301 = vst [vmem:[#allocation12_spill] sm:$0xff] %v11616_v16  ;;  %10066 = vmatprep.subr.msk.mxu1 %vm2054_vm1, %v876_v2  ;;  %10068 = vmatprep.mubr.msk.f32.mxu1 %vm2054_vm1, %v718_v51 }
 0x11d   :  { %v11630_v56 = vpop.f32.mrf.mxu1  ;;  %v1121_v57 = vpop.f32.mrf.mxu0 }
 0x11e   :  { %13302 = vst [vmem:[#allocation13_spill] sm:$0xff] %v11630_v56  ;;  %v1122_v58 = vadd.f32 %v11628_v28, %v1121_v57  ;;  %10062 = vmatmul.mubr.msk.f32.vlgmr.msra.gmra.mxu0 %vm2054_vm1, %v713_v54 }
 0x11f   :  { %v11634_v59 = vpop.f32.mrf.mxu1  ;;  %v11636_v60 = vpop.f32.mrf.mxu0  ;;  %10067 = vmatpush3.xpose.msk.msra.mxu1 %vm2054_vm1, %v876_v2 }
 0x120   :  { %13303 = vst [vmem:[#allocation14_spill] sm:$0xff] %v11634_v59  ;;  %10075 = vmatprep.mubr.msk.f32.mxu0 %vm2054_vm1, %v1122_v58 }
 0x121   :  { %v11641_v63 = vpop.f32.mrf.mxu1  ;;  %v1131_v3 = vpop.f32.mrf.mxu0 }
 0x122   :  { %13304 = vst [vmem:[#allocation15_spill] sm:$0xff] %v11641_v63  ;;  %v1132_v4 = vadd.f32 %v11628_v28, %v1131_v3  ;;  %10069 = vmatmul.mubr.msk.f32.vlgmr.msra.gmra.mxu1 %vm2054_vm1, %v723_v61 }
 0x123   :  { %v11645_v5 = vpop.f32.mrf.mxu1  ;;  %v11647_v6 = vpop.f32.mrf.mxu0 }
 0x124   :  { %13305 = vst [vmem:[#allocation16_spill] sm:$0xff] %v11645_v5  ;;  %10082 = vmatprep.mubr.msk.f32.mxu1 %vm2054_vm1, %v1132_v4  ;;  %v1127_v4 = vadd.f32 %v11618_v52, %v11628_v28  ;;  %v1137_v52 = vadd.f32 %v11636_v60, %v11628_v28  ;;  %v1147_v60 = vadd.f32 %v11647_v6, %v11628_v28 }
 0x125   :  { %v11650_v7 = vpop.f32.mrf.mxu1  ;;  %v1141_v10 = vpop.f32.mrf.mxu0 }
 0x126   :  { %13306 = vst [vmem:[#allocation17_spill] sm:$0xff] %v11650_v7 }
 0x127   :  { %v11652_v9 = vpop.f32.mrf.mxu1  ;;  %v11654_v18 = vpop.f32.mrf.mxu0 }
 0x128   :  { %13307 = vst [vmem:[#allocation18_spill] sm:$0xff] %v11652_v9 }
 0x129   :  { %v11656_v15 = vpop.f32.mrf.mxu1  ;;  %v1151_v17 = vpop.f32.mrf.mxu0 }
 0x12a   :  { %13308 = vst [vmem:[#allocation19_spill] sm:$0xff] %v11656_v15 }
 0x12b   :  { %v11658_v1 = vpop.f32.mrf.mxu1  ;;  %v11660_v20 = vpop.f32.mrf.mxu0 }
 0x12c   :  { %13309 = vst [vmem:[#allocation20_spill] sm:$0xff] %v11658_v1 }
 0x12d   :  { %v11662_v22 = vpop.f32.mrf.mxu1  ;;  %v11664_v23 = vpop.f32.mrf.mxu0 }
 0x12e   :  { %13310 = vst [vmem:[#allocation21_spill] sm:$0xff] %v11662_v22 }
 0x12f   :  { %v11666_v13 = vpop.f32.mrf.mxu1  ;;  %v11668_v8 = vpop.f32.mrf.mxu0 }
 0x130   :  { %13311 = vst [vmem:[#allocation22_spill] sm:$0xff] %v11666_v13  ;;  %v2024_v13 = vld [vmem:[%s13258_s9 + $0x110] sm:$0xff] }
 0x131   :  { %v11670_v29 = vpop.f32.mrf.mxu1  ;;  %v11672_v31 = vpop.f32.mrf.mxu0 }
 0x132   :  { %13312 = vst [vmem:[#allocation23_spill] sm:$0xff] %v11670_v29 }
 0x133   :  { %v11674_v32 = vpop.f32.mrf.mxu1  ;;  %v11676_v34 = vpop.f32.mrf.mxu0 }
 0x134   :  { %13313 = vst [vmem:[#allocation24_spill] sm:$0xff] %v11674_v32 }
 0x135   :  { %v11678_v35 = vpop.f32.mrf.mxu1  ;;  %v11680_v19 = vpop.f32.mrf.mxu0 }
 0x136   :  { %13314 = vst [vmem:[#allocation25_spill] sm:$0xff] %v11678_v35 }
 0x137   :  { %v11682_v36 = vpop.f32.mrf.mxu1  ;;  %v11684_v38 = vpop.f32.mrf.mxu0 }
 0x138   :  { %13315 = vst [vmem:[#allocation26_spill] sm:$0xff] %v11682_v36 }
 0x139   :  { %v11686_v39 = vpop.f32.mrf.mxu1  ;;  %v11688_v11 = vpop.f32.mrf.mxu0 }
 0x13a   :  { %13316 = vst [vmem:[#allocation27_spill] sm:$0xff] %v11686_v39  ;;  %v2019_v39 = vld [vmem:[%s13258_s9 + $0xe8] sm:$0xff] }
 0x13b   :  { %v9809_v42 = vpop.f32.mrf.mxu1  ;;  %v11695_v43 = vpop.f32.mrf.mxu0 }
 0x13c   :  { %13317 = vst [vmem:[#allocation28_spill] sm:$0xff] %v11695_v43  ;;  %v1285_v44 = vadd.f32 %v9809_v42, %v11693_v40 }
 0x13d   :  { %v1279_v46 = vpop.f32.mrf.mxu1  ;;  %v11698_v47 = vpop.f32.mrf.mxu0 }
 0x13e   :  { %13318 = vst [vmem:[#allocation29_spill] sm:$0xff] %v11698_v47  ;;  %v1280_v49 = vadd.f32 %v11693_v40, %v1279_v46  ;;  %10071 = vmatprep.subr.msk.mxu0 %vm2054_vm1, %v1285_v44 }
 0x13f   :  { %v9812_v50 = vpop.f32.mrf.mxu1  ;;  %v11702_v51 = vpop.f32.mrf.mxu0  ;;  %10072 = vmatpush3.xpose.msk.msra.mxu0 %vm2054_vm1, %v1285_v44 }
 0x140   :  { %13319 = vst [vmem:[#allocation30_spill] sm:$0xff] %v11702_v51  ;;  %v1295_v2 = vadd.f32 %v9812_v50, %v11693_v40  ;;  %10073 = vmatprep.subr.msk.mxu0 %vm2054_vm1, %v1280_v49  ;;  %v1142_v50 = vadd.f32 %v11628_v28, %v1141_v10 }
 0x141   :  { %v1289_v54 = vpop.f32.mrf.mxu1  ;;  %v11707_v57 = vpop.f32.mrf.mxu0 }
 0x142   :  { %13320 = vst [vmem:[#allocation31_spill] sm:$0xff] %v11707_v57  ;;  %v1290_v58 = vadd.f32 %v11693_v40, %v1289_v54  ;;  %10078 = vmatprep.subr.msk.mxu1 %vm2054_vm1, %v1295_v2  ;;  %v2015_v57 = vld [vmem:[%s13258_s9 + $0xc8] sm:$0xff] }
 0x143   :  { %v9815_v61 = vpop.f32.mrf.mxu1  ;;  %v11711_v3 = vpop.f32.mrf.mxu0  ;;  %10074 = vmatpush3.xpose.msk.msra.mxu0 %vm2054_vm1, %v1280_v49  ;;  %10079 = vmatpush3.xpose.msk.msra.mxu1 %vm2054_vm1, %v1295_v2 }
 0x144   :  { %13321 = vst [vmem:[#allocation32_spill] sm:$0xff] %v11711_v3  ;;  %v1305_v42 = vadd.f32 %v9815_v61, %v11693_v40  ;;  %10080 = vmatprep.subr.msk.mxu1 %vm2054_vm1, %v1290_v58 }
 0x145   :  { %v1299_v44 = vpop.f32.mrf.mxu1  ;;  %v11719_v46 = vpop.f32.mrf.mxu0 }
 0x146   :  { %13322 = vst [vmem:[#allocation33_spill] sm:$0xff] %v11719_v46  ;;  %v1300_v54 = vadd.f32 %v11693_v40, %v1299_v44  ;;  %10076 = vmatmul.mubr.msk.f32.vlgmr.msra.gmra.mxu0 %vm2054_vm1, %v1127_v4  ;;  %10085 = vmatprep.subr.msk.mxu0 %vm2054_vm1, %v1305_v42  ;;  %v1152_v44 = vadd.f32 %v11628_v28, %v1151_v17 }
 0x147   :  { %v9818_v49 = vpop.f32.mrf.mxu1  ;;  %v11725_v2 = vpop.f32.mrf.mxu0  ;;  %10081 = vmatpush3.xpose.msk.msra.mxu1 %vm2054_vm1, %v1290_v58  ;;  %10086 = vmatpush3.xpose.msk.msra.mxu0 %vm2054_vm1, %v1305_v42 }
 0x148   :  { %13323 = vst [vmem:[#allocation34_spill] sm:$0xff] %v11725_v2  ;;  %v1315_v61 = vadd.f32 %v9818_v49, %v11693_v40  ;;  %10089 = vmatprep.mubr.msk.f32.mxu0 %vm2054_vm1, %v1142_v50  ;;  %10087 = vmatprep.subr.msk.mxu0 %vm2054_vm1, %v1300_v54 }
 0x149   :  { %v1309_v10 = vpop.f32.mrf.mxu1  ;;  %v11734_v4 = vpop.f32.mrf.mxu0 }
 0x14a   :  { %13324 = vst [vmem:[#allocation35_spill] sm:$0xff] %v11734_v4  ;;  %v1310_v46 = vadd.f32 %v11693_v40, %v1309_v10  ;;  %10083 = vmatmul.mubr.msk.f32.vlgmr.msra.gmra.mxu1 %vm2054_vm1, %v1137_v52  ;;  %10092 = vmatprep.subr.msk.mxu1 %vm2054_vm1, %v1315_v61  ;;  %v1162_v52 = vadd.f32 %v11628_v28, %v11664_v23 }
 0x14b   :  { %v9821_v58 = vpop.f32.mrf.mxu1  ;;  %v11740_v42 = vpop.f32.mrf.mxu0  ;;  %10088 = vmatpush3.xpose.msk.msra.mxu0 %vm2054_vm1, %v1300_v54  ;;  %10093 = vmatpush3.xpose.msk.msra.mxu1 %vm2054_vm1, %v1315_v61  ;;  %v1157_v61 = vadd.f32 %v11654_v18, %v11628_v28 }
 0x14c   :  { %13325 = vst [vmem:[#allocation36_spill] sm:$0xff] %v11740_v42  ;;  %v1325_v50 = vadd.f32 %v9821_v58, %v11693_v40  ;;  %10096 = vmatprep.mubr.msk.f32.mxu1 %vm2054_vm1, %v1152_v44  ;;  %10094 = vmatprep.subr.msk.mxu1 %vm2054_vm1, %v1310_v46 }
 0x14d   :  { %v1319_v17 = vpop.f32.mrf.mxu1  ;;  %v11749_v49 = vpop.f32.mrf.mxu0 }
 0x14e   :  { %13326 = vst [vmem:[#allocation37_spill] sm:$0xff] %v11749_v49  ;;  %v1320_v10 = vadd.f32 %v11693_v40, %v1319_v17  ;;  %10090 = vmatmul.mubr.msk.f32.vlgmr.msra.gmra.mxu0 %vm2054_vm1, %v1147_v60  ;;  %10099 = vmatprep.subr.msk.mxu0 %vm2054_vm1, %v1325_v50  ;;  %v1172_v60 = vadd.f32 %v11628_v28, %v11672_v31 }
 0x14f   :  { %v9824_v54 = vpop.f32.mrf.mxu1  ;;  %v11756_v6 = vpop.f32.mrf.mxu0  ;;  %10095 = vmatpush3.xpose.msk.msra.mxu1 %vm2054_vm1, %v1310_v46  ;;  %10100 = vmatpush3.xpose.msk.msra.mxu0 %vm2054_vm1, %v1325_v50  ;;  %v1167_v50 = vadd.f32 %v11660_v20, %v11628_v28 }
 0x150   :  { %13327 = vst [vmem:[#allocation38_spill] sm:$0xff] %v11756_v6  ;;  %v1335_v44 = vadd.f32 %v9824_v54, %v11693_v40  ;;  %10103 = vmatprep.mubr.msk.f32.mxu0 %vm2054_vm1, %v1162_v52  ;;  %10101 = vmatprep.subr.msk.mxu0 %vm2054_vm1, %v1320_v10  ;;  %v2011_v6 = vld [vmem:[%s13258_s9 + $0xa8] sm:$0xff] }
 0x151   :  { %v1329_v23 = vpop.f32.mrf.mxu1  ;;  %v11765_v58 = vpop.f32.mrf.mxu0 }
 0x152   :  { %13328 = vst [vmem:[#allocation39_spill] sm:$0xff] %v11765_v58  ;;  %v1330_v17 = vadd.f32 %v11693_v40, %v1329_v23  ;;  %10097 = vmatmul.mubr.msk.f32.vlgmr.msra.gmra.mxu1 %vm2054_vm1, %v1157_v61  ;;  %10106 = vmatprep.subr.msk.mxu1 %vm2054_vm1, %v1335_v44  ;;  %v1182_v61 = vadd.f32 %v11628_v28, %v11680_v19  ;;  %v8767_v19 = vld [vmem:[%s13257_s6 + $0x2] ss:$0 sm:$0xff] }
 0x153   :  { %v9827_v46 = vpop.f32.mrf.mxu1  ;;  %v11772_v18 = vpop.f32.mrf.mxu0  ;;  %10102 = vmatpush3.xpose.msk.msra.mxu0 %vm2054_vm1, %v1320_v10  ;;  %10107 = vmatpush3.xpose.msk.msra.mxu1 %vm2054_vm1, %v1335_v44  ;;  %v1177_v44 = vadd.f32 %v11668_v8, %v11628_v28  ;;  %v1192_v8 = vadd.f32 %v11628_v28, %v11688_v11  ;;  %v1187_v11 = vadd.f32 %v11676_v34, %v11628_v28 }
 0x154   :  { %13329 = vst [vmem:[#allocation40_spill] sm:$0xff] %v11772_v18  ;;  %v1345_v52 = vadd.f32 %v9827_v46, %v11693_v40  ;;  %10110 = vmatprep.mubr.msk.f32.mxu1 %vm2054_vm1, %v1172_v60  ;;  %10108 = vmatprep.subr.msk.mxu1 %vm2054_vm1, %v1330_v17 }
 0x155   :  { %v1339_v31 = vpop.f32.mrf.mxu1  ;;  %v11781_v54 = vpop.f32.mrf.mxu0 }
 0x156   :  { %13330 = vst [vmem:[#allocation41_spill] sm:$0xff] %v11781_v54  ;;  %v1340_v23 = vadd.f32 %v11693_v40, %v1339_v31  ;;  %10104 = vmatmul.mubr.msk.f32.vlgmr.msra.gmra.mxu0 %vm2054_vm1, %v1167_v50  ;;  %10113 = vmatprep.subr.msk.mxu0 %vm2054_vm1, %v1345_v52  ;;  %v11817_v54 = vld [vmem:[%s13255_s4 + $0x3] ss:$0 sm:$0xff] }
 0x157   :  { %v9830_v10 = vpop.f32.mrf.mxu1  ;;  %v11788_v20 = vpop.f32.mrf.mxu0  ;;  %10109 = vmatpush3.xpose.msk.msra.mxu1 %vm2054_vm1, %v1330_v17  ;;  %10114 = vmatpush3.xpose.msk.msra.mxu0 %vm2054_vm1, %v1345_v52  ;;  %v11803_v17 = vld [vmem:[%s13256_s5 + $0x3] ss:$0 sm:$0xff] }
 0x158   :  { %13331 = vst [vmem:[#allocation42_spill] sm:$0xff] %v11788_v20  ;;  %v1355_v60 = vadd.f32 %v9830_v10, %v11693_v40  ;;  %10117 = vmatprep.mubr.msk.f32.mxu0 %vm2054_vm1, %v1182_v61  ;;  %10115 = vmatprep.subr.msk.mxu0 %vm2054_vm1, %v1340_v23  ;;  %v2007_v20 = vld [vmem:[%s13258_s9 + $0x88] sm:$0xff] }
 0x159   :  { %v1507_v46 = vpop.f32.mrf.mxu0  ;;  %v1349_v50 = vpop.f32.mrf.mxu1 }
 0x15a   :  { %v11807_v52 = vadd.f32 %v8767_v19, %v1507_v46  ;;  %10111 = vmatmul.mubr.msk.f32.vlgmr.msra.gmra.mxu1 %vm2054_vm1, %v1177_v44  ;;  %10120 = vmatprep.subr.msk.mxu1 %vm2054_vm1, %v1355_v60  ;;  %v1350_v31 = vadd.f32 %v11693_v40, %v1349_v50  ;;  %v1197_v50 = vadd.f32 %v11684_v38, %v11628_v28 }
 0x15b   :  { %v9905_v61 = vpop.f32.mrf.mxu0  ;;  %10116 = vmatpush3.xpose.msk.msra.mxu0 %vm2054_vm1, %v1340_v23  ;;  %10121 = vmatpush3.xpose.msk.msra.mxu1 %vm2054_vm1, %v1355_v60  ;;  %v9873_v10 = vpop.f32.mrf.mxu1 }
 0x15c   :  { %13332 = vst [vmem:[#allocation43_spill] sm:$0xff] %v11807_v52  ;;  %v1759_v44 = vadd.f32 %v9905_v61, %v11803_v17  ;;  %10124 = vmatprep.mubr.msk.f32.mxu1 %vm2054_vm1, %v1192_v8  ;;  %10122 = vmatprep.subr.msk.mxu1 %vm2054_vm1, %v1350_v31  ;;  %v1601_v38 = vadd.f32 %v9873_v10, %v11817_v54 }
 0x15d   :  { %v1753_v40 = vpop.f32.mrf.mxu0  ;;  %v1595_v19 = vpop.f32.mrf.mxu1 }
 0x15e   :  { %v1754_v23 = vadd.f32 %v11803_v17, %v1753_v40  ;;  %10118 = vmatmul.mubr.msk.f32.vlgmr.msra.gmra.mxu0 %vm2054_vm1, %v1187_v11  ;;  %10127 = vmatprep.subr.msk.mxu0 %vm2054_vm1, %v1759_v44  ;;  %v1596_v60 = vadd.f32 %v11817_v54, %v1595_v19 }
 0x15f   :  { %v9908_v46 = vpop.f32.mrf.mxu0  ;;  %10123 = vmatpush3.xpose.msk.msra.mxu1 %vm2054_vm1, %v1350_v31  ;;  %10128 = vmatpush3.xpose.msk.msra.mxu0 %vm2054_vm1, %v1759_v44  ;;  %v9876_v34 = vpop.f32.mrf.mxu1 }
 0x160   :  { %v1769_v8 = vadd.f32 %v9908_v46, %v11803_v17  ;;  %10129 = vmatprep.subr.msk.mxu0 %vm2054_vm1, %v1754_v23  ;;  %10131 = vmatprep.mubr.msk.f32.mxu0 %vm2054_vm1, %v1596_v60 }
 0x161   :  { %v1763_v61 = vpop.f32.mrf.mxu0  ;;  %v1605_v11 = vpop.f32.mrf.mxu1 }
 0x162   :  { %v1764_v40 = vadd.f32 %v11803_v17, %v1763_v61  ;;  %10125 = vmatmul.mubr.msk.f32.vlgmr.msra.gmra.mxu1 %vm2054_vm1, %v1197_v50  ;;  %10134 = vmatprep.subr.msk.mxu1 %vm2054_vm1, %v1769_v8  ;;  %v1606_v31 = vadd.f32 %v11817_v54, %v1605_v11  ;;  %v1611_v50 = vadd.f32 %v9876_v34, %v11817_v54 }
 0x163   :  { %v9911_v44 = vpop.f32.mrf.mxu0  ;;  %10130 = vmatpush3.xpose.msk.msra.mxu0 %vm2054_vm1, %v1754_v23  ;;  %10135 = vmatpush3.xpose.msk.msra.mxu1 %vm2054_vm1, %v1769_v8  ;;  %v9879_v28 = vpop.f32.mrf.mxu1 }
 0x164   :  { %v1779_v19 = vadd.f32 %v9911_v44, %v11803_v17  ;;  %10136 = vmatprep.subr.msk.mxu1 %vm2054_vm1, %v1764_v40  ;;  %10138 = vmatprep.mubr.msk.f32.mxu1 %vm2054_vm1, %v1606_v31  ;;  %v1621_v44 = vadd.f32 %v9879_v28, %v11817_v54 }
 0x165   :  { %v1773_v60 = vpop.f32.mrf.mxu0  ;;  %v1615_v46 = vpop.f32.mrf.mxu1 }
 0x166   :  { %v1774_v61 = vadd.f32 %v11803_v17, %v1773_v60  ;;  %10132 = vmatmul.mubr.msk.f32.vlgmr.msra.gmra.mxu0 %vm2054_vm1, %v1601_v38  ;;  %10141 = vmatprep.subr.msk.mxu0 %vm2054_vm1, %v1779_v19  ;;  %v1616_v23 = vadd.f32 %v11817_v54, %v1615_v46 }
 0x167   :  { %v9914_v8 = vpop.f32.mrf.mxu0  ;;  %10137 = vmatpush3.xpose.msk.msra.mxu1 %vm2054_vm1, %v1764_v40  ;;  %10142 = vmatpush3.xpose.msk.msra.mxu0 %vm2054_vm1, %v1779_v19  ;;  %v9882_v10 = vpop.f32.mrf.mxu1 }
 0x168   :  { %v1789_v11 = vadd.f32 %v9914_v8, %v11803_v17  ;;  %10143 = vmatprep.subr.msk.mxu0 %vm2054_vm1, %v1774_v61  ;;  %10145 = vmatprep.mubr.msk.f32.mxu0 %vm2054_vm1, %v1616_v23 }
 0x169   :  { %v1783_v34 = vpop.f32.mrf.mxu0  ;;  %v1625_v31 = vpop.f32.mrf.mxu1 }
 0x16a   :  { %v1784_v38 = vadd.f32 %v11803_v17, %v1783_v34  ;;  %10139 = vmatmul.mubr.msk.f32.vlgmr.msra.gmra.mxu1 %vm2054_vm1, %v1611_v50  ;;  %10148 = vmatprep.subr.msk.mxu1 %vm2054_vm1, %v1789_v11  ;;  %v1626_v40 = vadd.f32 %v11817_v54, %v1625_v31  ;;  %v1631_v50 = vadd.f32 %v9882_v10, %v11817_v54 }
 0x16b   :  { %v9917_v19 = vpop.f32.mrf.mxu0  ;;  %10144 = vmatpush3.xpose.msk.msra.mxu0 %vm2054_vm1, %v1774_v61  ;;  %10149 = vmatpush3.xpose.msk.msra.mxu1 %vm2054_vm1, %v1789_v11  ;;  %v9885_v60 = vpop.f32.mrf.mxu1 }
 0x16c   :  { %v1799_v46 = vadd.f32 %v9917_v19, %v11803_v17  ;;  %10150 = vmatprep.subr.msk.mxu1 %vm2054_vm1, %v1784_v38  ;;  %10152 = vmatprep.mubr.msk.f32.mxu1 %vm2054_vm1, %v1626_v40 }
 0x16d   :  { %v1793_v28 = vpop.f32.mrf.mxu0  ;;  %v1635_v23 = vpop.f32.mrf.mxu1 }
 0x16e   :  { %v1794_v8 = vadd.f32 %v11803_v17, %v1793_v28  ;;  %10146 = vmatmul.mubr.msk.f32.vlgmr.msra.gmra.mxu0 %vm2054_vm1, %v1621_v44  ;;  %10155 = vmatprep.subr.msk.mxu0 %vm2054_vm1, %v1799_v46  ;;  %v1636_v61 = vadd.f32 %v11817_v54, %v1635_v23  ;;  %v1641_v44 = vadd.f32 %v9885_v60, %v11817_v54 }
 0x16f   :  { %v9920_v11 = vpop.f32.mrf.mxu0  ;;  %10151 = vmatpush3.xpose.msk.msra.mxu1 %vm2054_vm1, %v1784_v38  ;;  %10156 = vmatpush3.xpose.msk.msra.mxu0 %vm2054_vm1, %v1799_v46  ;;  %v9888_v34 = vpop.f32.mrf.mxu1 }
 0x170   :  { %v1809_v31 = vadd.f32 %v9920_v11, %v11803_v17  ;;  %10157 = vmatprep.subr.msk.mxu0 %vm2054_vm1, %v1794_v8  ;;  %10159 = vmatprep.mubr.msk.f32.mxu0 %vm2054_vm1, %v1636_v61 }
 0x171   :  { %v1803_v10 = vpop.f32.mrf.mxu0  ;;  %v1645_v40 = vpop.f32.mrf.mxu1 }
 0x172   :  { %v1804_v19 = vadd.f32 %v11803_v17, %v1803_v10  ;;  %10153 = vmatmul.mubr.msk.f32.vlgmr.msra.gmra.mxu1 %vm2054_vm1, %v1631_v50  ;;  %10162 = vmatprep.subr.msk.mxu1 %vm2054_vm1, %v1809_v31  ;;  %v1646_v38 = vadd.f32 %v11817_v54, %v1645_v40  ;;  %v1651_v50 = vadd.f32 %v9888_v34, %v11817_v54 }
 0x173   :  { %v9923_v46 = vpop.f32.mrf.mxu0  ;;  %10158 = vmatpush3.xpose.msk.msra.mxu0 %vm2054_vm1, %v1794_v8  ;;  %10163 = vmatpush3.xpose.msk.msra.mxu1 %vm2054_vm1, %v1809_v31  ;;  %v9891_v28 = vpop.f32.mrf.mxu1  ;;  %v495_v34 = vadd.f32 %v11408_v21, %v11454_v48 }
 0x174   :  { %v1819_v23 = vadd.f32 %v9923_v46, %v11803_v17  ;;  %10164 = vmatprep.subr.msk.mxu1 %vm2054_vm1, %v1804_v19  ;;  %10166 = vmatprep.mubr.msk.f32.mxu1 %vm2054_vm1, %v1646_v38  ;;  %v1661_v46 = vadd.f32 %v9891_v28, %v11817_v54  ;;  %v490_v28 = vadd.f32 %v11454_v48, %v11411_v24 }
 0x175   :  { %v1813_v60 = vpop.f32.mrf.mxu0  ;;  %v1655_v61 = vpop.f32.mrf.mxu1 }
 0x176   :  { %v1814_v11 = vadd.f32 %v11803_v17, %v1813_v60  ;;  %10160 = vmatmul.mubr.msk.f32.vlgmr.msra.gmra.mxu0 %vm2054_vm1, %v1641_v44  ;;  %10169 = vmatprep.subr.msk.mxu0 %vm2054_vm1, %v1819_v23  ;;  %v1656_v8 = vadd.f32 %v11817_v54, %v1655_v61 }
 0x177   :  { %v9926_v31 = vpop.f32.mrf.mxu0  ;;  %10165 = vmatpush3.xpose.msk.msra.mxu1 %vm2054_vm1, %v1804_v19  ;;  %10170 = vmatpush3.xpose.msk.msra.mxu0 %vm2054_vm1, %v1819_v23  ;;  %v9894_v10 = vpop.f32.mrf.mxu1 }
 0x178   :  { %v1829_v40 = vadd.f32 %v9926_v31, %v11803_v17  ;;  %10171 = vmatprep.subr.msk.mxu0 %vm2054_vm1, %v1814_v11  ;;  %10173 = vmatprep.mubr.msk.f32.mxu0 %vm2054_vm1, %v1656_v8  ;;  %v1671_v61 = vadd.f32 %v9894_v10, %v11817_v54  ;;  %v11933_v8 = vadd.f32 %v11437_v41, %v11454_v48 }
 0x179   :  { %v1823_v44 = vpop.f32.mrf.mxu0  ;;  %v1665_v38 = vpop.f32.mrf.mxu1 }
 0x17a   :  { %10167 = vmatmul.mubr.msk.f32.vlgmr.msra.gmra.mxu1 %vm2054_vm1, %v1651_v50  ;;  %10176 = vmatprep.subr.msk.mxu1 %vm2054_vm1, %v1829_v40  ;;  %v1824_v19 = vadd.f32 %v11803_v17, %v1823_v44  ;;  %v1666_v23 = vadd.f32 %v11817_v54, %v1665_v38  ;;  %v505_v17 = vadd.f32 %v11415_v27, %v11454_v48 }
 0x17b   :  { %10172 = vmatpush3.xpose.msk.msra.mxu0 %vm2054_vm1, %v1814_v11  ;;  %10177 = vmatpush3.xpose.msk.msra.mxu1 %vm2054_vm1, %v1829_v40  ;;  %v11904_v60 = vpop.f32.mrf.mxu1  ;;  %v11921_v11 = vadd.f32 %v11424_v33, %v11454_v48  ;;  %v500_v27 = vadd.f32 %v11454_v48, %v11420_v30  ;;  %13339 = vst [vmem:[#allocation50_spill] sm:$0xff] %v11933_v8 }
 0x17c   :  { %13333 = vst [vmem:[#allocation44_spill] sm:$0xff] %v11904_v60  ;;  %10183 = vmatprep.subr.mxu0 %v495_v34  ;;  %10178 = vmatprep.subr.msk.mxu1 %vm2054_vm1, %v1824_v19 }
 0x17d   :  { %10180 = vmatprep.mubr.msk.f32.mxu1 %vm2054_vm1, %v1666_v23  ;;  %v11908_v21 = vpop.f32.mrf.mxu1  ;;  %13336 = vst [vmem:[#allocation47_spill] sm:$0xff] %v11921_v11 }
 0x17e   :  { %13334 = vst [vmem:[#allocation45_spill] sm:$0xff] %v11908_v21  ;;  %10174 = vmatmul.mubr.msk.f32.vlgmr.msra.gmra.mxu0 %vm2054_vm1, %v1661_v46  ;;  %v1991_v46 = vld [vmem:[%s13258_s9 + $0x8] sm:$0xff] }
 0x17f   :  { %10179 = vmatpush3.xpose.msk.msra.mxu1 %vm2054_vm1, %v1824_v19  ;;  %10184 = vmatpush3.msra.mxu0 %v495_v34  ;;  %v11917_v50 = vpop.f32.mrf.mxu1  ;;  %v2003_v21 = vld [vmem:[%s13258_s9 + $0x68] sm:$0xff] }
 0x180   :  { %13335 = vst [vmem:[#allocation46_spill] sm:$0xff] %v11917_v50  ;;  %10185 = vmatprep.subr.mxu0 %v490_v28  ;;  %10190 = vmatprep.subr.mxu1 %v505_v17 }
 0x181   :  { %10186 = vmatpush3.msra.mxu0 %v490_v28  ;;  %v11923_v24 = vpop.f32.mrf.mxu1  ;;  %v1990_v28 = vld [vmem:[%s13258_s9] sm:$0xff] }
 0x182   :  { %13337 = vst [vmem:[#allocation48_spill] sm:$0xff] %v11923_v24  ;;  %10181 = vmatmul.mubr.msk.f32.vlgmr.msra.gmra.mxu1 %vm2054_vm1, %v1671_v61  ;;  %10197 = vmatprep.subr.mxu0 %v11921_v11  ;;  %v2044_v11 = vld [vmem:[%s13258_s9 + $0x1b0] sm:$0xff] }
 0x183   :  { %10191 = vmatpush3.msra.mxu1 %v505_v17  ;;  %v11929_v54 = vpop.f32.mrf.mxu1 }
 0x184   :  { %13338 = vst [vmem:[#allocation49_spill] sm:$0xff] %v11929_v54  ;;  %10192 = vmatprep.subr.mxu1 %v500_v27 }
 0x185   :  { %10193 = vmatpush3.msra.mxu1 %v500_v27  ;;  %v11935_v33 = vpop.f32.mrf.mxu1 }
 0x186   :  { %13340 = vst [vmem:[#allocation51_spill] sm:$0xff] %v11935_v33  ;;  %10204 = vmatprep.subr.mxu1 %v11933_v8  ;;  %v1999_v33 = vld [vmem:[%s13258_s9 + $0x48] sm:$0xff] }
 0x187   :  { %v11938_v31 = vpop.f32.mrf.mxu1  ;;  %v2043_v8 = vld [vmem:[%s13258_s9 + $0x1a8] sm:$0xff] }
 0x188   :  { %13341 = vst [vmem:[#allocation52_spill] sm:$0xff] %v11938_v31 }
 0x189   :  { %v11940_v30 = vpop.f32.mrf.mxu1 }
 0x18a   :  { %13342 = vst [vmem:[#allocation53_spill] sm:$0xff] %v11940_v30 }
 0x18b   :  { %v11942_v10 = vpop.f32.mrf.mxu1 }
 0x18c   :  { %13343 = vst [vmem:[#allocation54_spill] sm:$0xff] %v11942_v10  ;;  %v1994_v10 = vld [vmem:[%s13258_s9 + $0x20] sm:$0xff] }
 0x18d   :  { %v11944_v40 = vpop.f32.mrf.mxu1 }
 0x18e   :  { %13344 = vst [vmem:[#allocation55_spill] sm:$0xff] %v11944_v40 }
 0x18f   :  { %v11946_v34 = vpop.f32.mrf.mxu1 }
 0x190   :  { %13345 = vst [vmem:[#allocation56_spill] sm:$0xff] %v11946_v34 }
 0x191   :  { %v11948_v44 = vpop.f32.mrf.mxu1 }
 0x192   :  { %13346 = vst [vmem:[#allocation57_spill] sm:$0xff] %v11948_v44 }
 0x193   :  { %v11950_v41 = vpop.f32.mrf.mxu1 }
 0x194   :  { %13347 = vst [vmem:[#allocation58_spill] sm:$0xff] %v11950_v41 }
 0x195   :  { %v11952_v48 = vpop.f32.mrf.mxu1 }
 0x196   :  { %13348 = vst [vmem:[#allocation59_spill] sm:$0xff] %v11952_v48 }
 0x197   :  { %v11954_v38 = vpop.f32.mrf.mxu1 }
 0x198   :  { %13349 = vst [vmem:[#allocation60_spill] sm:$0xff] %v11954_v38  ;;  %v1993_v38 = vld [vmem:[%s13258_s9 + $0x18] sm:$0xff] }
 0x199   :  { %v11959_v23 = vpop.f32.mrf.mxu1 }
 0x19a   :  { %13350 = vst [vmem:[#allocation61_spill] sm:$0xff] %v11959_v23  ;;  %v1992_v23 = vld [vmem:[%s13258_s9 + $0x10] sm:$0xff] }
 0x1a6   :  { %v9965_v19 = vpop.f32.mrf.mxu0 }
 0x1a7   :  { %v11964_v17 = vadd.f32 %v9965_v19, %v1991_v46  ;;  %v1995_v46 = vld [vmem:[%s13258_s9 + $0x28] sm:$0xff] }
 0x1a8   :  { %v2133_v61 = vpop.f32.mrf.mxu0 }
 0x1a9   :  { %v11966_v27 = vadd.f32 %v2133_v61, %v1990_v28  ;;  %v4843_v48 = vsel %vm4839_vm2, %v11964_v17, -inf }
 0x1aa   :  { %v9972_v44 = vpop.f32.mrf.mxu1  ;;  %4844 = vmax.xlane.f32.xlu0 %v4843_v48 }
 0x1ab   :  { %v11979_v19 = vadd.f32 %v9972_v44, %v1993_v38  ;;  %v4840_v61 = vsel %vm4839_vm2, %v11966_v27, -inf  ;;  %v1997_v44 = vld [vmem:[%s13258_s9 + $0x38] sm:$0xff] }
 0x1ac   :  { %v2220_v41 = vpop.f32.mrf.mxu1 }
 0x1ad   :  { %v11981_v28 = vadd.f32 %v2220_v41, %v1992_v23  ;;  %v4849_v41 = vsel %vm4839_vm2, %v11979_v19, -inf }
 0x1ae   :  { %v9979_v40 = vpop.f32.mrf.mxu0  ;;  %4841 = vmax.xlane.f32.xlu0 %v4840_v61 }
 0x1af   :  { %v11985_v34 = vadd.f32 %v9979_v40, %v1995_v46  ;;  %v4846_v48 = vsel %vm4839_vm2, %v11981_v28, -inf  ;;  %v1996_v40 = vld [vmem:[%s13258_s9 + $0x30] sm:$0xff] }
 0x1b0   :  { %4847 = vmax.xlane.f32.xlu1 %v4846_v48  ;;  %v2307_v30 = vpop.f32.mrf.mxu0 }
 0x1b1   :  { %v12000_v23 = vadd.f32 %v2307_v30, %v1994_v10  ;;  %v4855_v61 = vsel %vm4839_vm2, %v11985_v34, -inf }
 0x1b2   :  { %v9986_v38 = vpop.f32.mrf.mxu1  ;;  %4850 = vmax.xlane.f32.xlu0 %v4849_v41 }
 0x1b3   :  { %v12002_v46 = vadd.f32 %v9986_v38, %v1997_v44  ;;  %v4852_v10 = vsel %vm4839_vm2, %v12000_v23, -inf  ;;  %v1998_v38 = vld [vmem:[%s13258_s9 + $0x40] sm:$0xff] }
 0x1b4   :  { %v2394_v48 = vpop.f32.mrf.mxu1  ;;  %4856 = vmax.xlane.f32.xlu1 %v4855_v61 }
 0x1b5   :  { %v12009_v31 = vadd.f32 %v2394_v48, %v1996_v40  ;;  %v4861_v41 = vsel %vm4839_vm2, %v12002_v46, -inf  ;;  %v2001_v40 = vld [vmem:[%s13258_s9 + $0x58] sm:$0xff] }
 0x1b6   :  { %v9993_v24 = vpop.f32.mrf.mxu0  ;;  %4862 = vmax.xlane.f32.xlu0 %v4861_v41 }
 0x1b7   :  { %v12013_v30 = vadd.f32 %v9993_v24, %v1999_v33  ;;  %v4858_v61 = vsel %vm4839_vm2, %v12009_v31, -inf  ;;  %v2000_v24 = vld [vmem:[%s13258_s9 + $0x50] sm:$0xff] }
 0x1b8   :  { %v2481_v44 = vpop.f32.mrf.mxu0  ;;  %4853 = vmax.xlane.f32.xlu1 %v4852_v10 }
 0x1b9   :  { %v12028_v33 = vadd.f32 %v2481_v44, %v1998_v38  ;;  %v4867_v10 = vsel %vm4839_vm2, %v12013_v30, -inf }
 0x1ba   :  { %v10000_v48 = vpop.f32.mrf.mxu1  ;;  %4859 = vmax.xlane.f32.xlu0 %v4858_v61 }
 0x1bb   :  { %v12030_v41 = vadd.f32 %v10000_v48, %v2001_v40  ;;  %v4864_v38 = vsel %vm4839_vm2, %v12028_v33, -inf  ;;  %v2002_v48 = vld [vmem:[%s13258_s9 + $0x60] sm:$0xff] }
 0x1bc   :  { %v2568_v54 = vpop.f32.mrf.mxu1  ;;  %4868 = vmax.xlane.f32.xlu1 %v4867_v10 }
 0x1bd   :  { %v12037_v52 = vadd.f32 %v2568_v54, %v2000_v24  ;;  %v4873_v61 = vsel %vm4839_vm2, %v12030_v41, -inf  ;;  %v2005_v54 = vld [vmem:[%s13258_s9 + $0x78] sm:$0xff] }
 0x1be   :  { %v10007_v50 = vpop.f32.mrf.mxu0  ;;  %4874 = vmax.xlane.f32.xlu0 %v4873_v61 }
 0x1bf   :  { %v12041_v44 = vadd.f32 %v10007_v50, %v2003_v21  ;;  %v4870_v24 = vsel %vm4839_vm2, %v12037_v52, -inf  ;;  %v2004_v21 = vld [vmem:[%s13258_s9 + $0x70] sm:$0xff] }
 0x1c0   :  { %v2655_v40 = vpop.f32.mrf.mxu0  ;;  %4865 = vmax.xlane.f32.xlu1 %v4864_v38 }
 0x1c1   :  { %v12056_v50 = vadd.f32 %v2655_v40, %v2002_v48  ;;  %v4879_v38 = vsel %vm4839_vm2, %v12041_v44, -inf }
 0x1c2   :  { %v10014_v10 = vpop.f32.mrf.mxu1  ;;  %4871 = vmax.xlane.f32.xlu0 %v4870_v24 }
 0x1c3   :  { %v12058_v61 = vadd.f32 %v10014_v10, %v2005_v54  ;;  %v4876_v48 = vsel %vm4839_vm2, %v12056_v50, -inf  ;;  %v2006_v10 = vld [vmem:[%s13258_s9 + $0x80] sm:$0xff] }
 0x1c4   :  { %v2742_v60 = vpop.f32.mrf.mxu1  ;;  %4880 = vmax.xlane.f32.xlu1 %v4879_v38 }
 0x1c5   :  { %v12065_v58 = vadd.f32 %v2742_v60, %v2004_v21  ;;  %v4885_v24 = vsel %vm4839_vm2, %v12058_v61, -inf  ;;  %v2009_v60 = vld [vmem:[%s13258_s9 + $0x98] sm:$0xff] }
 0x1c6   :  { %v10021_v18 = vpop.f32.mrf.mxu0  ;;  %4886 = vmax.xlane.f32.xlu0 %v4885_v24 }
 0x1c7   :  { %v12069_v40 = vadd.f32 %v10021_v18, %v2007_v20  ;;  %v4882_v21 = vsel %vm4839_vm2, %v12065_v58, -inf  ;;  %v2008_v18 = vld [vmem:[%s13258_s9 + $0x90] sm:$0xff] }
 0x1c8   :  { %v2829_v54 = vpop.f32.mrf.mxu0  ;;  %4877 = vmax.xlane.f32.xlu1 %v4876_v48 }
 0x1c9   :  { %v12084_v20 = vadd.f32 %v2829_v54, %v2006_v10  ;;  %v4891_v48 = vsel %vm4839_vm2, %v12069_v40, -inf }
 0x1ca   :  { %v10028_v38 = vpop.f32.mrf.mxu1  ;;  %4883 = vmax.xlane.f32.xlu0 %v4882_v21 }
 0x1cb   :  { %v12086_v24 = vadd.f32 %v10028_v38, %v2009_v60  ;;  %v4888_v10 = vsel %vm4839_vm2, %v12084_v20, -inf  ;;  %v2010_v38 = vld [vmem:[%s13258_s9 + $0xa0] sm:$0xff] }
 0x1cc   :  { %v2916_v49 = vpop.f32.mrf.mxu1  ;;  %4892 = vmax.xlane.f32.xlu1 %v4891_v48 }
 0x1cd   :  { %v12093_v4 = vadd.f32 %v2916_v49, %v2008_v18  ;;  %v4897_v21 = vsel %vm4839_vm2, %v12086_v24, -inf  ;;  %v2013_v49 = vld [vmem:[%s13258_s9 + $0xb8] sm:$0xff] }
 0x1ce   :  { %v10035_v42 = vpop.f32.mrf.mxu0  ;;  %4898 = vmax.xlane.f32.xlu0 %v4897_v21 }
 0x1cf   :  { %v12097_v54 = vadd.f32 %v10035_v42, %v2011_v6  ;;  %v4894_v18 = vsel %vm4839_vm2, %v12093_v4, -inf  ;;  %v2012_v42 = vld [vmem:[%s13258_s9 + $0xb0] sm:$0xff] }
 0x1d0   :  { %v3003_v60 = vpop.f32.mrf.mxu0  ;;  %4889 = vmax.xlane.f32.xlu1 %v4888_v10 }
 0x1d1   :  { %v12112_v6 = vadd.f32 %v3003_v60, %v2010_v38  ;;  %v4903_v10 = vsel %vm4839_vm2, %v12097_v54, -inf }
 0x1d2   :  { %v10042_v48 = vpop.f32.mrf.mxu1  ;;  %4895 = vmax.xlane.f32.xlu0 %v4894_v18 }
 0x1d3   :  { %v12114_v21 = vadd.f32 %v10042_v48, %v2013_v49  ;;  %v4900_v38 = vsel %vm4839_vm2, %v12112_v6, -inf  ;;  %v2014_v48 = vld [vmem:[%s13258_s9 + $0xc0] sm:$0xff] }
 0x1d4   :  { %v3090_v2 = vpop.f32.mrf.mxu1  ;;  %4904 = vmax.xlane.f32.xlu1 %v4903_v10 }
 0x1d5   :  { %v12121_v3 = vadd.f32 %v3090_v2, %v2012_v42  ;;  %v4909_v18 = vsel %vm4839_vm2, %v12114_v21, -inf  ;;  %v2017_v2 = vld [vmem:[%s13258_s9 + $0xd8] sm:$0xff] }
 0x1d6   :  { %v10049_v51 = vpop.f32.mrf.mxu0  ;;  %4910 = vmax.xlane.f32.xlu0 %v4909_v18 }
 0x1d7   :  { %v12125_v60 = vadd.f32 %v10049_v51, %v2015_v57  ;;  %v4906_v42 = vsel %vm4839_vm2, %v12121_v3, -inf  ;;  %v2016_v51 = vld [vmem:[%s13258_s9 + $0xd0] sm:$0xff] }
 0x1d8   :  { %v3177_v49 = vpop.f32.mrf.mxu0  ;;  %4901 = vmax.xlane.f32.xlu1 %v4900_v38 }
 0x1d9   :  { %v12140_v57 = vadd.f32 %v3177_v49, %v2014_v48  ;;  %v4915_v38 = vsel %vm4839_vm2, %v12125_v60, -inf }
 0x1da   :  { %v10056_v10 = vpop.f32.mrf.mxu1  ;;  %4907 = vmax.xlane.f32.xlu0 %v4906_v42 }
 0x1db   :  { %v12142_v18 = vadd.f32 %v10056_v10, %v2017_v2  ;;  %v4912_v48 = vsel %vm4839_vm2, %v12140_v57, -inf  ;;  %v2018_v10 = vld [vmem:[%s13258_s9 + $0xe0] sm:$0xff] }
 0x1dc   :  { %v3264_v47 = vpop.f32.mrf.mxu1  ;;  %4916 = vmax.xlane.f32.xlu1 %v4915_v38 }
 0x1dd   :  { %v12149_v43 = vadd.f32 %v3264_v47, %v2016_v51  ;;  %v4921_v42 = vsel %vm4839_vm2, %v12142_v18, -inf  ;;  %v2021_v47 = vld [vmem:[%s13258_s9 + $0xf8] sm:$0xff] }
 0x1de   :  { %v10063_v36 = vpop.f32.mrf.mxu0  ;;  %4922 = vmax.xlane.f32.xlu0 %v4921_v42 }
 0x1df   :  { %v12153_v49 = vadd.f32 %v10063_v36, %v2019_v39  ;;  %v4918_v51 = vsel %vm4839_vm2, %v12149_v43, -inf  ;;  %v2020_v36 = vld [vmem:[%s13258_s9 + $0xf0] sm:$0xff] }
 0x1e0   :  { %v3351_v2 = vpop.f32.mrf.mxu0  ;;  %4913 = vmax.xlane.f32.xlu1 %v4912_v48 }
 0x1e1   :  { %v12168_v39 = vadd.f32 %v3351_v2, %v2018_v10  ;;  %v4927_v48 = vsel %vm4839_vm2, %v12153_v49, -inf  ;;  %v2023_v10 = vld [vmem:[%s13258_s9 + $0x108] sm:$0xff] }
 0x1e2   :  { %v10070_v38 = vpop.f32.mrf.mxu1  ;;  %4919 = vmax.xlane.f32.xlu0 %v4918_v51 }
 0x1e3   :  { %v12170_v42 = vadd.f32 %v10070_v38, %v2021_v47  ;;  %v4924_v51 = vsel %vm4839_vm2, %v12168_v39, -inf }
 0x1e4   :  { %v3438_v35 = vpop.f32.mrf.mxu1  ;;  %4928 = vmax.xlane.f32.xlu1 %v4927_v48 }
 0x1e5   :  { %v12174_v29 = vadd.f32 %v3438_v35, %v2020_v36  ;;  %v4933_v32 = vsel %vm4839_vm2, %v12170_v42, -inf  ;;  %v2022_v35 = vld [vmem:[%s13258_s9 + $0x100] sm:$0xff]  ;;  %v2025_v36 = vld [vmem:[%s13258_s9 + $0x118] sm:$0xff] }
 0x1e6   :  { %4934 = vmax.xlane.f32.xlu0 %v4933_v32 }
 0x1e7   :  { %v4930_v2 = vsel %vm4839_vm2, %v12174_v29, -inf }
 0x1e8   :  { %4925 = vmax.xlane.f32.xlu1 %v4924_v51 }
 0x1ea   :  { %4931 = vmax.xlane.f32.xlu0 %v4930_v2 }
 0x206   :  { %v10077_v47 = vpop.f32.mrf.mxu0 }
 0x207   :  { %v12188_v38 = vadd.f32 %v10077_v47, %v2023_v10  ;;  %v2027_v47 = vld [vmem:[%s13258_s9 + $0x128] sm:$0xff] }
 0x208   :  { %v3525_v32 = vpop.f32.mrf.mxu0 }
 0x209   :  { %v12193_v48 = vadd.f32 %v3525_v32, %v2022_v35  ;;  %v4939_v51 = vsel %vm4839_vm2, %v12188_v38, -inf }
 0x20a   :  { %v10084_v2 = vpop.f32.mrf.mxu1  ;;  %4940 = vmax.xlane.f32.xlu1 %v4939_v51 }
 0x20b   :  { %v12200_v22 = vadd.f32 %v10084_v2, %v2025_v36  ;;  %v4936_v35 = vsel %vm4839_vm2, %v12193_v48, -inf  ;;  %v2026_v36 = vld [vmem:[%s13258_s9 + $0x120] sm:$0xff] }
 0x20c   :  { %v3612_v10 = vpop.f32.mrf.mxu1 }
 0x20d   :  { %v12205_v15 = vadd.f32 %v3612_v10, %v2024_v13  ;;  %v4945_v32 = vsel %vm4839_vm2, %v12200_v22, -inf  ;;  %v2029_v13 = vld [vmem:[%s13258_s9 + $0x138] sm:$0xff] }
 0x20e   :  { %v10091_v51 = vpop.f32.mrf.mxu0  ;;  %4937 = vmax.xlane.f32.xlu1 %v4936_v35  ;;  %4946 = vmax.xlane.f32.xlu0 %v4945_v32 }
 0x20f   :  { %v12214_v2 = vadd.f32 %v10091_v51, %v2027_v47  ;;  %v4942_v35 = vsel %vm4839_vm2, %v12205_v15, -inf  ;;  %v2028_v47 = vld [vmem:[%s13258_s9 + $0x130] sm:$0xff] }
 0x210   :  { %v3699_v1 = vpop.f32.mrf.mxu0 }
 0x211   :  { %v12219_v10 = vadd.f32 %v3699_v1, %v2026_v36  ;;  %v4951_v9 = vsel %vm4839_vm2, %v12214_v2, -inf  ;;  %v2031_v1 = vld [vmem:[%s13258_s9 + $0x148] sm:$0xff] }
 0x212   :  { %v10098_v32 = vpop.f32.mrf.mxu1  ;;  %4952 = vmax.xlane.f32.xlu1 %v4951_v9  ;;  %4943 = vmax.xlane.f32.xlu0 %v4942_v35 }
 0x213   :  { %v12228_v51 = vadd.f32 %v10098_v32, %v2029_v13  ;;  %v4948_v63 = vsel %vm4839_vm2, %v12219_v10, -inf  ;;  %v2030_v13 = vld [vmem:[%s13258_s9 + $0x140] sm:$0xff] }
 0x214   :  { %v3786_v7 = vpop.f32.mrf.mxu1 }
 0x215   :  { %v12233_v36 = vadd.f32 %v3786_v7, %v2028_v47  ;;  %v4957_v9 = vsel %vm4839_vm2, %v12228_v51, -inf  ;;  %v2033_v7 = vld [vmem:[%s13258_s9 + $0x158] sm:$0xff] }
 0x216   :  { %v10105_v35 = vpop.f32.mrf.mxu0  ;;  %4949 = vmax.xlane.f32.xlu1 %v4948_v63  ;;  %4958 = vmax.xlane.f32.xlu0 %v4957_v9 }
 0x217   :  { %v12242_v32 = vadd.f32 %v10105_v35, %v2031_v1  ;;  %v4954_v63 = vsel %vm4839_vm2, %v12233_v36, -inf  ;;  %v2032_v1 = vld [vmem:[%s13258_s9 + $0x150] sm:$0xff] }
 0x218   :  { %v3873_v5 = vpop.f32.mrf.mxu0 }
 0x219   :  { %v12247_v47 = vadd.f32 %v3873_v5, %v2030_v13  ;;  %v4963_v59 = vsel %vm4839_vm2, %v12242_v32, -inf  ;;  %v2035_v5 = vld [vmem:[%s13258_s9 + $0x168] sm:$0xff] }
 0x21a   :  { %v10112_v9 = vpop.f32.mrf.mxu1  ;;  %4964 = vmax.xlane.f32.xlu1 %v4963_v59  ;;  %4955 = vmax.xlane.f32.xlu0 %v4954_v63 }
 0x21b   :  { %v12256_v35 = vadd.f32 %v10112_v9, %v2033_v7  ;;  %v4960_v26 = vsel %vm4839_vm2, %v12247_v47, -inf  ;;  %v2034_v7 = vld [vmem:[%s13258_s9 + $0x160] sm:$0xff] }
 0x21c   :  { %v3960_v56 = vpop.f32.mrf.mxu1 }
 0x21d   :  { %v12261_v13 = vadd.f32 %v3960_v56, %v2032_v1  ;;  %v4969_v59 = vsel %vm4839_vm2, %v12256_v35, -inf  ;;  %v2037_v56 = vld [vmem:[%s13258_s9 + $0x178] sm:$0xff] }
 0x21e   :  { %v10119_v63 = vpop.f32.mrf.mxu0  ;;  %4961 = vmax.xlane.f32.xlu1 %v4960_v26  ;;  %4970 = vmax.xlane.f32.xlu0 %v4969_v59 }
 0x21f   :  { %v12270_v9 = vadd.f32 %v10119_v63, %v2035_v5  ;;  %v4966_v26 = vsel %vm4839_vm2, %v12261_v13, -inf  ;;  %v2036_v5 = vld [vmem:[%s13258_s9 + $0x170] sm:$0xff] }
 0x220   :  { %v4047_v25 = vpop.f32.mrf.mxu0 }
 0x221   :  { %v12275_v1 = vadd.f32 %v4047_v25, %v2034_v7  ;;  %v4975_v16 = vsel %vm4839_vm2, %v12270_v9, -inf  ;;  %v2039_v25 = vld [vmem:[%s13258_s9 + $0x188] sm:$0xff] }
 0x222   :  { %v10126_v59 = vpop.f32.mrf.mxu1  ;;  %4976 = vmax.xlane.f32.xlu1 %v4975_v16  ;;  %4967 = vmax.xlane.f32.xlu0 %v4966_v26 }
 0x223   :  { %v12284_v63 = vadd.f32 %v10126_v59, %v2037_v56  ;;  %v4972_v0 = vsel %vm4839_vm2, %v12275_v1, -inf  ;;  %v2038_v56 = vld [vmem:[%s13258_s9 + $0x180] sm:$0xff] }
 0x224   :  { %v4134_v14 = vpop.f32.mrf.mxu1 }
 0x225   :  { %v12289_v7 = vadd.f32 %v4134_v14, %v2036_v5  ;;  %v4981_v16 = vsel %vm4839_vm2, %v12284_v63, -inf }
 0x226   :  { %v10133_v26 = vpop.f32.mrf.mxu0  ;;  %4973 = vmax.xlane.f32.xlu1 %v4972_v0  ;;  %4982 = vmax.xlane.f32.xlu0 %v4981_v16  ;;  %v2041_v0 = vld [vmem:[%s13258_s9 + $0x198] sm:$0xff] }
 0x227   :  { %13351 = vst [vmem:[#allocation62_spill] sm:$0xff] %v12289_v7  ;;  %v12298_v59 = vadd.f32 %v10133_v26, %v2039_v25  ;;  %v4978_v5 = vsel %vm4839_vm2, %v12289_v7, -inf  ;;  %v2040_v25 = vld [vmem:[%s13258_s9 + $0x190] sm:$0xff] }
 0x228   :  { %v4221_v12 = vpop.f32.mrf.mxu0 }
 0x229   :  { %13352 = vst [vmem:[#allocation63_spill] sm:$0xff] %v12298_v59  ;;  %v12300_v62 = vadd.f32 %v4221_v12, %v2038_v56  ;;  %v4987_v14 = vsel %vm4839_vm2, %v12298_v59, -inf  ;;  %v2049_v59 = vld [vmem:[%s13258_s9 + $0x1d8] sm:$0xff] }
 0x22a   :  { %v10140_v16 = vpop.f32.mrf.mxu1  ;;  %4988 = vmax.xlane.f32.xlu1 %v4987_v14  ;;  %4979 = vmax.xlane.f32.xlu0 %v4978_v5  ;;  %v2042_v14 = vld [vmem:[%s13258_s9 + $0x1a0] sm:$0xff] }
 0x22b   :  { %13353 = vst [vmem:[#allocation64_spill] sm:$0xff] %v12300_v62  ;;  %v12312_v12 = vadd.f32 %v10140_v16, %v2041_v0  ;;  %v4984_v55 = vsel %vm4839_vm2, %v12300_v62, -inf }
 0x22c   :  { %v4308_v26 = vpop.f32.mrf.mxu1 }
 0x22d   :  { %13354 = vst [vmem:[#allocation65_spill] sm:$0xff] %v12312_v12  ;;  %v12314_v56 = vadd.f32 %v4308_v26, %v2040_v25  ;;  %v4993_v26 = vsel %vm4839_vm2, %v12312_v12, -inf }
 0x22e   :  { %v10147_v45 = vpop.f32.mrf.mxu0  ;;  %4985 = vmax.xlane.f32.xlu1 %v4984_v55  ;;  %v2045_v55 = vld [vmem:[%s13258_s9 + $0x1b8] sm:$0xff] }
 0x22f   :  { %13355 = vst [vmem:[#allocation66_spill] sm:$0xff] %v12314_v56  ;;  %v4990_v5 = vsel %vm4839_vm2, %v12314_v56, -inf  ;;  %v12326_v16 = vadd.f32 %v10147_v45, %v2043_v8 }
 0x230   :  { %v4395_v0 = vpop.f32.mrf.mxu0  ;;  %4991 = vmax.xlane.f32.xlu0 %v4990_v5 }
 0x231   :  { %13356 = vst [vmem:[#allocation67_spill] sm:$0xff] %v12326_v16  ;;  %v12328_v25 = vadd.f32 %v4395_v0, %v2042_v14  ;;  %v4999_v12 = vsel %vm4839_vm2, %v12326_v16, -inf }
 0x232   :  { %v10154_v53 = vpop.f32.mrf.mxu1  ;;  %4994 = vmax.xlane.f32.xlu1 %v4993_v26  ;;  %v2047_v26 = vld [vmem:[%s13258_s9 + $0x1c8] sm:$0xff] }
 0x233   :  { %13357 = vst [vmem:[#allocation68_spill] sm:$0xff] %v12328_v25  ;;  %v4845_v37 = vpop.xlane.xlu0 %4844  ;;  %v4996_v45 = vsel %vm4839_vm2, %v12328_v25, -inf  ;;  %v12340_v14 = vadd.f32 %v10154_v53, %v2045_v55  ;;  %v2046_v25 = vld [vmem:[%s13258_s9 + $0x1c0] sm:$0xff] }
 0x234   :  { %v4482_v8 = vpop.f32.mrf.mxu1  ;;  %4997 = vmax.xlane.f32.xlu0 %v4996_v45  ;;  %v5033_v5 = vsub.f32 %v11964_v17, %v4845_v37 }
 0x235   :  { %13358 = vst [vmem:[#allocation69_spill] sm:$0xff] %v12340_v14  ;;  %v12343_v0 = vadd.f32 %v4482_v8, %v2044_v11 }
 0x236   :  { %v10161_v56 = vpop.f32.mrf.mxu0  ;;  %5000 = vmax.xlane.f32.xlu1 %v4999_v12  ;;  %v5098_v17 = vmul.f32 1.442695, %v5033_v5  ;;  %v5005_v12 = vsel %vm4839_vm2, %v12340_v14, -inf }
 0x237   :  { %v4842_v45 = vpop.xlane.xlu0 %4841  ;;  %v5002_v53 = vsel %vm4839_vm2, %v12343_v0, -inf  ;;  %v12356_v55 = vadd.f32 %v10161_v56, %v2047_v26 }
 0x238   :  { %v5032_v37 = vsub.f32 %v11966_v27, %v4842_v45  ;;  %v4569_v11 = vpop.f32.mrf.mxu0  ;;  %5003 = vmax.xlane.f32.xlu0 %v5002_v53  ;;  %v2048_v27 = vld [vmem:[%s13258_s9 + $0x1d0] sm:$0xff] }
 0x239   :  { %v12358_v8 = vadd.f32 %v4569_v11, %v2046_v25  ;;  %v4848_v16 = vpop.xlane.xlu1 %4847 }
 0x23a   :  { %v5096_v62 = vmul.f32 1.442695, %v5032_v37  ;;  %v10168_v7 = vpop.f32.mrf.mxu1  ;;  %5006 = vmax.xlane.f32.xlu1 %v5005_v12  ;;  %v5034_v56 = vsub.f32 %v11981_v28, %v4848_v16  ;;  %v5011_v12 = vsel %vm4839_vm2, %v12356_v55, -inf }
 0x23b   :  { %v4851_v5 = vpop.xlane.xlu0 %4850  ;;  %v5008_v25 = vsel %vm4839_vm2, %v12358_v8, -inf  ;;  %v12372_v53 = vadd.f32 %v10168_v7, %v2049_v59 }
 0x23c   :  { %10450 = vpow2.f32 %v5096_v62  ;;  %v5035_v26 = vsub.f32 %v11979_v19, %v4851_v5  ;;  %v4656_v45 = vpop.f32.mrf.mxu1  ;;  %5009 = vmax.xlane.f32.xlu0 %v5008_v25  ;;  %v2051_v62 = vld [vmem:[%s13258_s9 + $0x1e8] sm:$0xff]  ;;  %v2050_v19 = vld [vmem:[%s13258_s9 + $0x1e0] sm:$0xff]  ;;  %v5100_v7 = vmul.f32 1.442695, %v5034_v56 }
 0x23d   :  { %10452 = vpow2.f32 %v5098_v17  ;;  %v12374_v37 = vadd.f32 %v4656_v45, %v2048_v27  ;;  %v4857_v11 = vpop.xlane.xlu1 %4856 }
 0x23e   :  { %v5102_v14 = vmul.f32 1.442695, %v5035_v26  ;;  %v5037_v28 = vsub.f32 %v11985_v34, %v4857_v11  ;;  %v10175_v16 = vpop.f32.mrf.mxu0  ;;  %5012 = vmax.xlane.f32.xlu1 %v5011_v12  ;;  %v5017_v11 = vsel %vm4839_vm2, %v12372_v53, -inf }
 0x23f   :  { %v4863_v59 = vpop.xlane.xlu0 %4862  ;;  %v5014_v17 = vsel %vm4839_vm2, %v12374_v37, -inf  ;;  %v12388_v25 = vadd.f32 %v10175_v16, %v2051_v62 }
 0x240   :  { %10454 = vpow2.f32 %v5102_v14  ;;  %v5106_v27 = vmul.f32 1.442695, %v5037_v28  ;;  %v5039_v5 = vsub.f32 %v12002_v46, %v4863_v59  ;;  %v4743_v34 = vpop.f32.mrf.mxu0  ;;  %5015 = vmax.xlane.f32.xlu0 %v5014_v17  ;;  %v2053_v14 = vld [vmem:[%s13258_s9 + $0x1f8] sm:$0xff]  ;;  %v2052_v46 = vld [vmem:[%s13258_s9 + $0x1f0] sm:$0xff] }
 0x241   :  { %v12390_v26 = vadd.f32 %v4743_v34, %v2050_v19  ;;  %v4854_v45 = vpop.xlane.xlu1 %4853 }
 0x242   :  { %10456 = vpow2.f32 %v5106_v27  ;;  %v5036_v56 = vsub.f32 %v12000_v23, %v4854_v45  ;;  %v10182_v12 = vpop.f32.mrf.mxu1  ;;  %5018 = vmax.xlane.f32.xlu1 %v5017_v11  ;;  %v5110_v28 = vmul.f32 1.442695, %v5039_v5  ;;  %v5023_v45 = vsel %vm4839_vm2, %v12388_v25, -inf }
 0x243   :  { %10458 = vpow2.f32 %v5100_v7  ;;  %v4860_v62 = vpop.xlane.xlu0 %4859  ;;  %v5020_v16 = vsel %vm4839_vm2, %v12390_v26, -inf  ;;  %v12404_v17 = vadd.f32 %v10182_v12, %v2053_v14 }
 0x244   :  { %v5104_v19 = vmul.f32 1.442695, %v5036_v56  ;;  %v5038_v59 = vsub.f32 %v12009_v31, %v4860_v62  ;;  %v4830_v23 = vpop.f32.mrf.mxu1  ;;  %5021 = vmax.xlane.f32.xlu0 %v5020_v16 }
 0x245   :  { %v12406_v27 = vadd.f32 %v4830_v23, %v2052_v46  ;;  %v4869_v34 = vpop.xlane.xlu1 %4868  ;;  %v5029_v62 = vsel %vm4839_vm2, %v12404_v17, -inf }
 0x246   :  { %10460 = vpow2.f32 %v5104_v19  ;;  %v5041_v7 = vsub.f32 %v12013_v30, %v4869_v34  ;;  %5024 = vmax.xlane.f32.xlu1 %v5023_v45  ;;  %v5108_v5 = vmul.f32 1.442695, %v5038_v59 }
 0x247   :  { %10462 = vpow2.f32 %v5110_v28  ;;  %v4875_v11 = vpop.xlane.xlu0 %4874  ;;  %v5026_v31 = vsel %vm4839_vm2, %v12406_v27, -inf }
 0x248   :  { %v5114_v56 = vmul.f32 1.442695, %v5041_v7  ;;  %v5043_v14 = vsub.f32 %v12030_v41, %v4875_v11  ;;  %5027 = vmax.xlane.f32.xlu0 %v5026_v31 }
 0x249   :  { %v12414_v12 = vpop.eup %10450  ;;  %v4866_v46 = vpop.xlane.xlu1 %4865 }
 0x24a   :  { %v12418_v16 = vpop.eup %10452  ;;  %10464 = vpow2.f32 %v5114_v56  ;;  %v5040_v30 = vsub.f32 %v12028_v33, %v4866_v46  ;;  %5030 = vmax.xlane.f32.xlu1 %v5029_v62  ;;  %v5224_v28 = vsel %vm4839_vm2, %v12414_v12, 0.0  ;;  %v5118_v19 = vmul.f32 1.442695, %v5043_v14 }
 0x24b   :  { %10466 = vpow2.f32 %v5108_v5  ;;  %v4872_v59 = vpop.xlane.xlu0 %4871  ;;  %v5227_v7 = vsel %vm4839_vm2, %v12418_v16, 0.0 }
 0x24c   :  { %v5112_v41 = vmul.f32 1.442695, %v5040_v30  ;;  %v5042_v23 = vsub.f32 %v12037_v52, %v4872_v59  ;;  %5225 = vadd.xlane.f32.xlu0 %v5224_v28 }
 0x24d   :  { %v12424_v34 = vpop.eup %10454  ;;  %v4881_v45 = vpop.xlane.xlu1 %4880 }
 0x24e   :  { %10468 = vpow2.f32 %v5112_v41  ;;  %v5045_v33 = vsub.f32 %v12041_v44, %v4881_v45  ;;  %5228 = vadd.xlane.f32.xlu1 %v5227_v7  ;;  %v5233_v11 = vsel %vm4839_vm2, %v12424_v34, 0.0  ;;  %v5116_v31 = vmul.f32 1.442695, %v5042_v23 }
 0x24f   :  { %v12431_v5 = vpop.eup %10456  ;;  %10470 = vpow2.f32 %v5118_v19  ;;  %v4887_v56 = vpop.xlane.xlu0 %4886 }
 0x250   :  { %v12433_v52 = vpop.eup %10458  ;;  %v5122_v14 = vmul.f32 1.442695, %v5045_v33  ;;  %v5047_v46 = vsub.f32 %v12058_v61, %v4887_v56  ;;  %5234 = vadd.xlane.f32.xlu0 %v5233_v11  ;;  %v5239_v62 = vsel %vm4839_vm2, %v12431_v5, 0.0 }
 0x251   :  { %v4878_v30 = vpop.xlane.xlu1 %4877  ;;  %v5230_v41 = vsel %vm4839_vm2, %v12433_v52, 0.0 }
 0x252   :  { %10472 = vpow2.f32 %v5122_v14  ;;  %v5044_v44 = vsub.f32 %v12056_v50, %v4878_v30  ;;  %5240 = vadd.xlane.f32.xlu1 %v5239_v62  ;;  %v5126_v19 = vmul.f32 1.442695, %v5047_v46 }
 0x253   :  { %v12439_v28 = vpop.eup %10460  ;;  %10474 = vpow2.f32 %v5116_v31  ;;  %v4884_v59 = vpop.xlane.xlu0 %4883 }
 0x254   :  { %v12443_v23 = vpop.eup %10462  ;;  %v5120_v61 = vmul.f32 1.442695, %v5044_v44  ;;  %v5046_v45 = vsub.f32 %v12065_v58, %v4884_v59  ;;  %5231 = vadd.xlane.f32.xlu0 %v5230_v41  ;;  %v5236_v7 = vsel %vm4839_vm2, %v12439_v28, 0.0 }
 0x255   :  { %v4893_v33 = vpop.xlane.xlu1 %4892  ;;  %v5245_v14 = vsel %vm4839_vm2, %v12443_v23, 0.0 }
 0x256   :  { %10476 = vpow2.f32 %v5120_v61  ;;  %v5049_v50 = vsub.f32 %v12069_v40, %v4893_v33  ;;  %5237 = vadd.xlane.f32.xlu1 %v5236_v7  ;;  %v5124_v31 = vmul.f32 1.442695, %v5046_v45 }
 0x257   :  { %v12449_v11 = vpop.eup %10464  ;;  %10478 = vpow2.f32 %v5126_v19  ;;  %v4899_v56 = vpop.xlane.xlu0 %4898 }
 0x258   :  { %v12453_v46 = vpop.eup %10466  ;;  %v5130_v58 = vmul.f32 1.442695, %v5049_v50  ;;  %v5051_v62 = vsub.f32 %v12086_v24, %v4899_v56  ;;  %5246 = vadd.xlane.f32.xlu0 %v5245_v14  ;;  %v5251_v30 = vsel %vm4839_vm2, %v12449_v11, 0.0 }
 0x259   :  { %v4890_v44 = vpop.xlane.xlu1 %4889  ;;  %v5242_v61 = vsel %vm4839_vm2, %v12453_v46, 0.0 }
 0x25a   :  { %10480 = vpow2.f32 %v5130_v58  ;;  %v5048_v40 = vsub.f32 %v12084_v20, %v4890_v44  ;;  %5252 = vadd.xlane.f32.xlu1 %v5251_v30  ;;  %v5134_v59 = vmul.f32 1.442695, %v5051_v62 }
 0x25b   :  { %v12459_v19 = vpop.eup %10468  ;;  %10482 = vpow2.f32 %v5124_v31  ;;  %v4896_v41 = vpop.xlane.xlu0 %4895 }
 0x25c   :  { %v12463_v45 = vpop.eup %10470  ;;  %v5128_v24 = vmul.f32 1.442695, %v5048_v40  ;;  %v5050_v7 = vsub.f32 %v12093_v4, %v4896_v41  ;;  %5243 = vadd.xlane.f32.xlu0 %v5242_v61  ;;  %v5248_v33 = vsel %vm4839_vm2, %v12459_v19, 0.0 }
 0x25d   :  { %v4905_v50 = vpop.xlane.xlu1 %4904  ;;  %v5257_v58 = vsel %vm4839_vm2, %v12463_v45, 0.0 }
 0x25e   :  { %10484 = vpow2.f32 %v5128_v24  ;;  %v5053_v20 = vsub.f32 %v12097_v54, %v4905_v50  ;;  %5249 = vadd.xlane.f32.xlu1 %v5248_v33  ;;  %v5132_v56 = vmul.f32 1.442695, %v5050_v7 }
 0x25f   :  { %v12469_v31 = vpop.eup %10472  ;;  %10486 = vpow2.f32 %v5134_v59  ;;  %v4911_v14 = vpop.xlane.xlu0 %4910 }
 0x260   :  { %v12473_v62 = vpop.eup %10474  ;;  %v5138_v4 = vmul.f32 1.442695, %v5053_v20  ;;  %v5055_v30 = vsub.f32 %v12114_v21, %v4911_v14  ;;  %5258 = vadd.xlane.f32.xlu0 %v5257_v58  ;;  %v5263_v44 = vsel %vm4839_vm2, %v12469_v31, 0.0 }
 0x261   :  { %v4902_v40 = vpop.xlane.xlu1 %4901  ;;  %v5254_v24 = vsel %vm4839_vm2, %v12473_v62, 0.0 }
 0x262   :  { %10488 = vpow2.f32 %v5138_v4  ;;  %v5052_v54 = vsub.f32 %v12112_v6, %v4902_v40  ;;  %5264 = vadd.xlane.f32.xlu1 %v5263_v44  ;;  %v5142_v41 = vmul.f32 1.442695, %v5055_v30 }
 0x263   :  { %v12479_v59 = vpop.eup %10476  ;;  %10490 = vpow2.f32 %v5132_v56  ;;  %v4908_v61 = vpop.xlane.xlu0 %4907 }
 0x264   :  { %v12483_v7 = vpop.eup %10478  ;;  %v5136_v21 = vmul.f32 1.442695, %v5052_v54  ;;  %v5054_v33 = vsub.f32 %v12121_v3, %v4908_v61  ;;  %5255 = vadd.xlane.f32.xlu0 %v5254_v24  ;;  %v5260_v50 = vsel %vm4839_vm2, %v12479_v59, 0.0 }
 0x265   :  { %v4917_v20 = vpop.xlane.xlu1 %4916  ;;  %v5269_v4 = vsel %vm4839_vm2, %v12483_v7, 0.0 }
 0x266   :  { %10492 = vpow2.f32 %v5136_v21  ;;  %v5057_v6 = vsub.f32 %v12125_v60, %v4917_v20  ;;  %5261 = vadd.xlane.f32.xlu1 %v5260_v50  ;;  %v5140_v14 = vmul.f32 1.442695, %v5054_v33 }
 0x267   :  { %v12489_v56 = vpop.eup %10480  ;;  %10494 = vpow2.f32 %v5142_v41  ;;  %v4923_v58 = vpop.xlane.xlu0 %4922 }
 0x268   :  { %v12493_v30 = vpop.eup %10482  ;;  %v5146_v3 = vmul.f32 1.442695, %v5057_v6  ;;  %v5059_v44 = vsub.f32 %v12142_v18, %v4923_v58  ;;  %5270 = vadd.xlane.f32.xlu0 %v5269_v4  ;;  %v5275_v40 = vsel %vm4839_vm2, %v12489_v56, 0.0 }
 0x269   :  { %v4914_v54 = vpop.xlane.xlu1 %4913  ;;  %v5266_v21 = vsel %vm4839_vm2, %v12493_v30, 0.0 }
 0x26a   :  { %10496 = vpow2.f32 %v5146_v3  ;;  %v5056_v60 = vsub.f32 %v12140_v57, %v4914_v54  ;;  %5276 = vadd.xlane.f32.xlu1 %v5275_v40  ;;  %v5150_v61 = vmul.f32 1.442695, %v5059_v44 }
 0x26b   :  { %v12499_v41 = vpop.eup %10484  ;;  %10498 = vpow2.f32 %v5140_v14  ;;  %v4920_v24 = vpop.xlane.xlu0 %4919 }
 0x26c   :  { %v12503_v33 = vpop.eup %10486  ;;  %v5144_v18 = vmul.f32 1.442695, %v5056_v60  ;;  %v5058_v50 = vsub.f32 %v12149_v43, %v4920_v24  ;;  %5267 = vadd.xlane.f32.xlu0 %v5266_v21  ;;  %v5272_v20 = vsel %vm4839_vm2, %v12499_v41, 0.0 }
 0x26d   :  { %v4929_v6 = vpop.xlane.xlu1 %4928  ;;  %v5281_v3 = vsel %vm4839_vm2, %v12503_v33, 0.0 }
 0x26e   :  { %10500 = vpow2.f32 %v5144_v18  ;;  %v5061_v57 = vsub.f32 %v12153_v49, %v4929_v6  ;;  %5273 = vadd.xlane.f32.xlu1 %v5272_v20  ;;  %v5148_v58 = vmul.f32 1.442695, %v5058_v50 }
 0x26f   :  { %v12509_v14 = vpop.eup %10488  ;;  %10502 = vpow2.f32 %v5150_v61  ;;  %v4935_v4 = vpop.xlane.xlu0 %4934 }
 0x270   :  { %v12513_v44 = vpop.eup %10490  ;;  %v5154_v43 = vmul.f32 1.442695, %v5061_v57  ;;  %v5063_v40 = vsub.f32 %v12170_v42, %v4935_v4  ;;  %5282 = vadd.xlane.f32.xlu0 %v5281_v3  ;;  %v5287_v54 = vsel %vm4839_vm2, %v12509_v14, 0.0 }
 0x271   :  { %v4926_v60 = vpop.xlane.xlu1 %4925  ;;  %v5278_v18 = vsel %vm4839_vm2, %v12513_v44, 0.0 }
 0x272   :  { %10504 = vpow2.f32 %v5154_v43  ;;  %v5060_v49 = vsub.f32 %v12168_v39, %v4926_v60  ;;  %5288 = vadd.xlane.f32.xlu1 %v5287_v54  ;;  %v5158_v24 = vmul.f32 1.442695, %v5063_v40 }
 0x273   :  { %v12519_v61 = vpop.eup %10492  ;;  %10506 = vpow2.f32 %v5148_v58  ;;  %v4932_v21 = vpop.xlane.xlu0 %4931 }
 0x274   :  { %v12523_v50 = vpop.eup %10494  ;;  %v5152_v42 = vmul.f32 1.442695, %v5060_v49  ;;  %v5062_v20 = vsub.f32 %v12174_v29, %v4932_v21  ;;  %5279 = vadd.xlane.f32.xlu0 %v5278_v18  ;;  %v5284_v6 = vsel %vm4839_vm2, %v12519_v61, 0.0 }
 0x275   :  { %v5293_v58 = vsel %vm4839_vm2, %v12523_v50, 0.0 }
 0x276   :  { %10508 = vpow2.f32 %v5152_v42  ;;  %5285 = vadd.xlane.f32.xlu1 %v5284_v6  ;;  %v5156_v57 = vmul.f32 1.442695, %v5062_v20 }
 0x277   :  { %v12528_v39 = vpop.eup %10496  ;;  %10510 = vpow2.f32 %v5158_v24 }
 0x278   :  { %v12532_v4 = vpop.eup %10498  ;;  %5294 = vadd.xlane.f32.xlu0 %v5293_v58  ;;  %v5299_v3 = vsel %vm4839_vm2, %v12528_v39, 0.0  ;;  %10512 = vpow2.f32 %v5156_v57 }
 0x279   :  { %v5290_v43 = vsel %vm4839_vm2, %v12532_v4, 0.0 }
 0x27a   :  { %5300 = vadd.xlane.f32.xlu1 %v5299_v3 }
 0x27b   :  { %v12536_v29 = vpop.eup %10500 }
 0x27c   :  { %v12540_v40 = vpop.eup %10502  ;;  %5291 = vadd.xlane.f32.xlu0 %v5290_v43  ;;  %v5296_v54 = vsel %vm4839_vm2, %v12536_v29, 0.0 }
 0x27d   :  { %13359 = vst [vmem:[#allocation70_spill] sm:$0xff] %v12540_v40  ;;  %v5305_v49 = vsel %vm4839_vm2, %v12540_v40, 0.0 }
 0x27e   :  { %5297 = vadd.xlane.f32.xlu1 %v5296_v54 }
 0x27f   :  { %v12544_v60 = vpop.eup %10504 }
 0x280   :  { %13360 = vst [vmem:[#allocation71_spill] sm:$0xff] %v12544_v60  ;;  %v12548_v24 = vpop.eup %10506  ;;  %5306 = vadd.xlane.f32.xlu0 %v5305_v49  ;;  %v5311_v21 = vsel %vm4839_vm2, %v12544_v60, 0.0 }
 0x281   :  { %13361 = vst [vmem:[#allocation72_spill] sm:$0xff] %v12548_v24  ;;  %v5302_v42 = vsel %vm4839_vm2, %v12548_v24, 0.0 }
 0x282   :  { %5312 = vadd.xlane.f32.xlu1 %v5311_v21 }
 0x283   :  { %v12552_v18 = vpop.eup %10508 }
 0x284   :  { %13362 = vst [vmem:[#allocation73_spill] sm:$0xff] %v12552_v18  ;;  %v12556_v20 = vpop.eup %10510  ;;  %5303 = vadd.xlane.f32.xlu0 %v5302_v42  ;;  %v5308_v6 = vsel %vm4839_vm2, %v12552_v18, 0.0 }
 0x285   :  { %13363 = vst [vmem:[#allocation74_spill] sm:$0xff] %v12556_v20  ;;  %v5317_v57 = vsel %vm4839_vm2, %v12556_v20, 0.0  ;;  %v12562_v58 = vpop.eup %10512 }
 0x286   :  { %5309 = vadd.xlane.f32.xlu1 %v5308_v6  ;;  %13364 = vst [vmem:[#allocation75_spill] sm:$0xff] %v12562_v58  ;;  %v5314_v3 = vsel %vm4839_vm2, %v12562_v58, 0.0 }
 0x288   :  { %5318 = vadd.xlane.f32.xlu0 %v5317_v57 }
 0x28c   :  { %5315 = vadd.xlane.f32.xlu0 %v5314_v3 }
 0x293   :  { %v4941_v43 = vpop.xlane.xlu1 %4940 }
 0x294   :  { %v5065_v54 = vsub.f32 %v12188_v38, %v4941_v43 }
 0x296   :  { %v5162_v49 = vmul.f32 1.442695, %v5065_v54 }
 0x297   :  { %v4938_v21 = vpop.xlane.xlu1 %4937  ;;  %v4947_v42 = vpop.xlane.xlu0 %4946 }
 0x298   :  { %10514 = vpow2.f32 %v5162_v49  ;;  %v5064_v60 = vsub.f32 %v12193_v48, %v4938_v21  ;;  %v5067_v6 = vsub.f32 %v12200_v22, %v4947_v42 }
 0x29a   :  { %v5160_v18 = vmul.f32 1.442695, %v5064_v60  ;;  %v5166_v20 = vmul.f32 1.442695, %v5067_v6 }
 0x29b   :  { %v4953_v40 = vpop.xlane.xlu1 %4952  ;;  %v4944_v24 = vpop.xlane.xlu0 %4943 }
 0x29c   :  { %10516 = vpow2.f32 %v5160_v18  ;;  %v5069_v57 = vsub.f32 %v12214_v2, %v4953_v40  ;;  %v5066_v3 = vsub.f32 %v12205_v15, %v4944_v24 }
 0x29d   :  { %10518 = vpow2.f32 %v5166_v20 }
 0x29e   :  { %v5170_v58 = vmul.f32 1.442695, %v5069_v57  ;;  %v5164_v38 = vmul.f32 1.442695, %v5066_v3 }
 0x29f   :  { %v4950_v43 = vpop.xlane.xlu1 %4949  ;;  %v4959_v54 = vpop.xlane.xlu0 %4958 }
 0x2a0   :  { %10520 = vpow2.f32 %v5170_v58  ;;  %v5068_v49 = vsub.f32 %v12219_v10, %v4950_v43  ;;  %v5071_v48 = vsub.f32 %v12228_v51, %v4959_v54 }
 0x2a1   :  { %10522 = vpow2.f32 %v5164_v38 }
 0x2a2   :  { %v5168_v22 = vmul.f32 1.442695, %v5068_v49  ;;  %v5174_v60 = vmul.f32 1.442695, %v5071_v48 }
 0x2a3   :  { %v4965_v21 = vpop.xlane.xlu1 %4964  ;;  %v4956_v42 = vpop.xlane.xlu0 %4955 }
 0x2a4   :  { %10524 = vpow2.f32 %v5168_v22  ;;  %v5073_v2 = vsub.f32 %v12242_v32, %v4965_v21  ;;  %v5070_v15 = vsub.f32 %v12233_v36, %v4956_v42 }
 0x2a5   :  { %v12575_v40 = vpop.eup %10514  ;;  %10526 = vpow2.f32 %v5174_v60 }
 0x2a6   :  { %v5178_v24 = vmul.f32 1.442695, %v5073_v2  ;;  %v5172_v18 = vmul.f32 1.442695, %v5070_v15  ;;  %v5323_v10 = vsel %vm4839_vm2, %v12575_v40, 0.0 }
 0x2a7   :  { %5324 = vadd.xlane.f32.xlu1 %v5323_v10  ;;  %v4962_v51 = vpop.xlane.xlu1 %4961  ;;  %v4971_v20 = vpop.xlane.xlu0 %4970 }
 0x2a8   :  { %10528 = vpow2.f32 %v5178_v24  ;;  %v5072_v58 = vsub.f32 %v12247_v47, %v4962_v51  ;;  %v5075_v6 = vsub.f32 %v12256_v35, %v4971_v20 }
 0x2a9   :  { %v12581_v57 = vpop.eup %10516  ;;  %10530 = vpow2.f32 %v5172_v18 }
 0x2aa   :  { %v12583_v36 = vpop.eup %10518  ;;  %v5176_v32 = vmul.f32 1.442695, %v5072_v58  ;;  %v5182_v3 = vmul.f32 1.442695, %v5075_v6  ;;  %v5320_v38 = vsel %vm4839_vm2, %v12581_v57, 0.0 }
 0x2ab   :  { %5321 = vadd.xlane.f32.xlu1 %v5320_v38  ;;  %v4977_v43 = vpop.xlane.xlu1 %4976  ;;  %v5329_v54 = vsel %vm4839_vm2, %v12583_v36, 0.0  ;;  %v4968_v49 = vpop.xlane.xlu0 %4967 }
 0x2ac   :  { %10532 = vpow2.f32 %v5176_v32  ;;  %v5077_v47 = vsub.f32 %v12270_v9, %v4977_v43  ;;  %5330 = vadd.xlane.f32.xlu0 %v5329_v54  ;;  %v5074_v35 = vsub.f32 %v12261_v13, %v4968_v49  ;;  %v13366_v43 = vld [vmem:[#allocation63_spill] sm:$0xff] }
 0x2ad   :  { %v12591_v48 = vpop.eup %10520  ;;  %10534 = vpow2.f32 %v5182_v3 }
 0x2ae   :  { %v12593_v22 = vpop.eup %10522  ;;  %v5186_v60 = vmul.f32 1.442695, %v5077_v47  ;;  %v5180_v21 = vmul.f32 1.442695, %v5074_v35  ;;  %v5335_v42 = vsel %vm4839_vm2, %v12591_v48, 0.0 }
 0x2af   :  { %5336 = vadd.xlane.f32.xlu1 %v5335_v42  ;;  %v4974_v2 = vpop.xlane.xlu1 %4973  ;;  %v5326_v15 = vsel %vm4839_vm2, %v12593_v22, 0.0  ;;  %v4983_v24 = vpop.xlane.xlu0 %4982  ;;  %v13367_v42 = vld [vmem:[#allocation64_spill] sm:$0xff] }
 0x2b0   :  { %10536 = vpow2.f32 %v5186_v60  ;;  %v5076_v9 = vsub.f32 %v12275_v1, %v4974_v2  ;;  %5327 = vadd.xlane.f32.xlu0 %v5326_v15  ;;  %v5079_v13 = vsub.f32 %v12284_v63, %v4983_v24  ;;  %v13365_v1 = vld [vmem:[#allocation62_spill] sm:$0xff] }
 0x2b1   :  { %v12601_v18 = vpop.eup %10524  ;;  %10538 = vpow2.f32 %v5180_v21 }
 0x2b2   :  { %v12603_v10 = vpop.eup %10526  ;;  %v5184_v51 = vmul.f32 1.442695, %v5076_v9  ;;  %v5190_v20 = vmul.f32 1.442695, %v5079_v13  ;;  %v5332_v58 = vsel %vm4839_vm2, %v12601_v18, 0.0 }
 0x2b3   :  { %5333 = vadd.xlane.f32.xlu1 %v5332_v58  ;;  %v4989_v6 = vpop.xlane.xlu1 %4988  ;;  %v5341_v32 = vsel %vm4839_vm2, %v12603_v10, 0.0  ;;  %v4980_v3 = vpop.xlane.xlu0 %4979 }
 0x2b4   :  { %10540 = vpow2.f32 %v5184_v51  ;;  %5342 = vadd.xlane.f32.xlu0 %v5341_v32  ;;  %v5078_v63 = vsub.f32 %v13365_v1, %v4980_v3  ;;  %v5081_v54 = vsub.f32 %v13366_v43, %v4989_v6 }
 0x2b5   :  { %v12610_v38 = vpop.eup %10528  ;;  %10542 = vpow2.f32 %v5190_v20  ;;  %v13368_v20 = vld [vmem:[#allocation66_spill] sm:$0xff] }
 0x2b6   :  { %v12613_v49 = vpop.eup %10530  ;;  %v5188_v47 = vmul.f32 1.442695, %v5078_v63  ;;  %v5347_v35 = vsel %vm4839_vm2, %v12610_v38, 0.0  ;;  %v5194_v24 = vmul.f32 1.442695, %v5081_v54  ;;  %v13369_v63 = vld [vmem:[#allocation65_spill] sm:$0xff] }
 0x2b7   :  { %5348 = vadd.xlane.f32.xlu1 %v5347_v35  ;;  %v4986_v60 = vpop.xlane.xlu1 %4985  ;;  %v5338_v21 = vsel %vm4839_vm2, %v12613_v49, 0.0 }
 0x2b8   :  { %v5080_v2 = vsub.f32 %v13367_v42, %v4986_v60  ;;  %5339 = vadd.xlane.f32.xlu0 %v5338_v21  ;;  %10544 = vpow2.f32 %v5188_v47  ;;  %v13370_v21 = vld [vmem:[#allocation68_spill] sm:$0xff] }
 0x2b9   :  { %v12620_v15 = vpop.eup %10532  ;;  %v4992_v9 = vpop.xlane.xlu0 %4991 }
 0x2ba   :  { %v12622_v13 = vpop.eup %10534  ;;  %v5192_v51 = vmul.f32 1.442695, %v5080_v2  ;;  %v5082_v58 = vsub.f32 %v13368_v20, %v4992_v9  ;;  %v5344_v6 = vsel %vm4839_vm2, %v12620_v15, 0.0 }
 0x2bb   :  { %5345 = vadd.xlane.f32.xlu1 %v5344_v6  ;;  %v4995_v32 = vpop.xlane.xlu1 %4994  ;;  %v5353_v3 = vsel %vm4839_vm2, %v12622_v13, 0.0 }
 0x2bc   :  { %10546 = vpow2.f32 %v5192_v51  ;;  %v5196_v1 = vmul.f32 1.442695, %v5082_v58  ;;  %v5083_v43 = vsub.f32 %v13369_v63, %v4995_v32  ;;  %5354 = vadd.xlane.f32.xlu0 %v5353_v3  ;;  %v13371_v58 = vld [vmem:[#allocation67_spill] sm:$0xff] }
 0x2bd   :  { %v12630_v54 = vpop.eup %10536  ;;  %10548 = vpow2.f32 %v5194_v24  ;;  %v4998_v47 = vpop.xlane.xlu0 %4997 }
 0x2be   :  { %v12632_v35 = vpop.eup %10538  ;;  %10550 = vpow2.f32 %v5196_v1  ;;  %v5198_v60 = vmul.f32 1.442695, %v5083_v43  ;;  %v5084_v42 = vsub.f32 %v13370_v21, %v4998_v47  ;;  %v5359_v2 = vsel %vm4839_vm2, %v12630_v54, 0.0 }
 0x2bf   :  { %5360 = vadd.xlane.f32.xlu1 %v5359_v2  ;;  %v5001_v9 = vpop.xlane.xlu1 %5000  ;;  %v5350_v51 = vsel %vm4839_vm2, %v12632_v35, 0.0  ;;  %v13372_v2 = vld [vmem:[#allocation69_spill] sm:$0xff] }
 0x2c0   :  { %v5200_v20 = vmul.f32 1.442695, %v5084_v42  ;;  %v5085_v6 = vsub.f32 %v13371_v58, %v5001_v9  ;;  %5351 = vadd.xlane.f32.xlu0 %v5350_v51  ;;  %10552 = vpow2.f32 %v5198_v60 }
 0x2c1   :  { %v12640_v24 = vpop.eup %10540  ;;  %v5004_v32 = vpop.xlane.xlu0 %5003 }
 0x2c2   :  { %v12642_v3 = vpop.eup %10542  ;;  %10554 = vpow2.f32 %v5200_v20  ;;  %v5202_v1 = vmul.f32 1.442695, %v5085_v6  ;;  %v5086_v63 = vsub.f32 %v12343_v0, %v5004_v32  ;;  %v5356_v43 = vsel %vm4839_vm2, %v12640_v24, 0.0 }
 0x2c3   :  { %5357 = vadd.xlane.f32.xlu1 %v5356_v43  ;;  %v5007_v47 = vpop.xlane.xlu1 %5006  ;;  %v5365_v21 = vsel %vm4839_vm2, %v12642_v3, 0.0 }
 0x2c4   :  { %v5204_v42 = vmul.f32 1.442695, %v5086_v63  ;;  %v5087_v9 = vsub.f32 %v13372_v2, %v5007_v47  ;;  %5366 = vadd.xlane.f32.xlu0 %v5365_v21  ;;  %10556 = vpow2.f32 %v5202_v1 }
 0x2c5   :  { %v5010_v60 = vpop.xlane.xlu0 %5009  ;;  %v12650_v51 = vpop.eup %10544 }
 0x2c6   :  { %10558 = vpow2.f32 %v5204_v42  ;;  %v5206_v20 = vmul.f32 1.442695, %v5087_v9  ;;  %v5088_v0 = vsub.f32 %v12358_v8, %v5010_v60  ;;  %v5362_v6 = vsel %vm4839_vm2, %v12650_v51, 0.0 }
 0x2c7   :  { %v5013_v58 = vpop.xlane.xlu1 %5012 }
 0x2c8   :  { %v5208_v32 = vmul.f32 1.442695, %v5088_v0  ;;  %v5089_v43 = vsub.f32 %v12356_v55, %v5013_v58  ;;  %5363 = vadd.xlane.f32.xlu0 %v5362_v6  ;;  %10560 = vpow2.f32 %v5206_v20 }
 0x2c9   :  { %v12656_v63 = vpop.eup %10546  ;;  %v5016_v47 = vpop.xlane.xlu0 %5015 }
 0x2ca   :  { %v12658_v1 = vpop.eup %10548  ;;  %10562 = vpow2.f32 %v5208_v32  ;;  %v5210_v21 = vmul.f32 1.442695, %v5089_v43  ;;  %v5090_v42 = vsub.f32 %v12374_v37, %v5016_v47  ;;  %v5368_v8 = vsel %vm4839_vm2, %v12656_v63, 0.0 }
 0x2cb   :  { %v12663_v2 = vpop.eup %10550  ;;  %5369 = vadd.xlane.f32.xlu1 %v5368_v8  ;;  %v5019_v9 = vpop.xlane.xlu1 %5018  ;;  %v5371_v32 = vsel %vm4839_vm2, %v12658_v1, 0.0 }
 0x2cc   :  { %v5212_v60 = vmul.f32 1.442695, %v5090_v42  ;;  %v5091_v55 = vsub.f32 %v12372_v53, %v5019_v9  ;;  %v5374_v20 = vsel %vm4839_vm2, %v12663_v2, 0.0  ;;  %10564 = vpow2.f32 %v5210_v21 }
 0x2cd   :  { %5375 = vadd.xlane.f32.xlu0 %v5374_v20  ;;  %v5022_v0 = vpop.xlane.xlu0 %5021  ;;  %v12668_v58 = vpop.eup %10552 }
 0x2ce   :  { %10566 = vpow2.f32 %v5212_v60  ;;  %v5214_v37 = vmul.f32 1.442695, %v5091_v55  ;;  %v5092_v6 = vsub.f32 %v12390_v26, %v5022_v0  ;;  %v5377_v55 = vsel %vm4839_vm2, %v12668_v58, 0.0 }
 0x2cf   :  { %v12673_v43 = vpop.eup %10554  ;;  %5372 = vadd.xlane.f32.xlu1 %v5371_v32  ;;  %v5025_v47 = vpop.xlane.xlu1 %5024 }
 0x2d0   :  { %v5216_v53 = vmul.f32 1.442695, %v5092_v6  ;;  %v5093_v42 = vsub.f32 %v12388_v25, %v5025_v47  ;;  %v5380_v21 = vsel %vm4839_vm2, %v12673_v43, 0.0  ;;  %10568 = vpow2.f32 %v5214_v37 }
 0x2d1   :  { %5381 = vadd.xlane.f32.xlu0 %v5380_v21  ;;  %v5028_v8 = vpop.xlane.xlu0 %5027  ;;  %v12678_v9 = vpop.eup %10556 }
 0x2d2   :  { %10570 = vpow2.f32 %v5216_v53  ;;  %v5218_v26 = vmul.f32 1.442695, %v5093_v42  ;;  %v5094_v60 = vsub.f32 %v12406_v27, %v5028_v8  ;;  %v5383_v53 = vsel %vm4839_vm2, %v12678_v9, 0.0 }
 0x2d3   :  { %v12683_v20 = vpop.eup %10558  ;;  %5378 = vadd.xlane.f32.xlu1 %v5377_v55  ;;  %v5031_v0 = vpop.xlane.xlu1 %5030 }
 0x2d4   :  { %v5220_v25 = vmul.f32 1.442695, %v5094_v60  ;;  %v5095_v6 = vsub.f32 %v12404_v17, %v5031_v0  ;;  %v5386_v37 = vsel %vm4839_vm2, %v12683_v20, 0.0  ;;  %10572 = vpow2.f32 %v5218_v26 }
 0x2d5   :  { %5387 = vadd.xlane.f32.xlu0 %v5386_v37  ;;  %v5226_v32 = vpop.xlane.xlu0 %5225  ;;  %v12688_v47 = vpop.eup %10560 }
 0x2d6   :  { %13373 = vst [vmem:[#allocation62_spill] sm:$0xff] %v12688_v47  ;;  %10574 = vpow2.f32 %v5220_v25  ;;  %v5222_v27 = vmul.f32 1.442695, %v5095_v6  ;;  %v5389_v60 = vsel %vm4839_vm2, %v12688_v47, 0.0 }
 0x2d7   :  { %v12692_v42 = vpop.eup %10562  ;;  %10576 = vrcp.f32 %v5226_v32  ;;  %5384 = vadd.xlane.f32.xlu1 %v5383_v53  ;;  %v5229_v21 = vpop.xlane.xlu1 %5228 }
 0x2d8   :  { %v5392_v17 = vsel %vm4839_vm2, %v12692_v42, 0.0  ;;  %10578 = vrcp.f32 %v5229_v21 }
 0x2d9   :  { %5393 = vadd.xlane.f32.xlu0 %v5392_v17  ;;  %v5235_v8 = vpop.xlane.xlu0 %5234  ;;  %v12696_v26 = vpop.eup %10564  ;;  %10580 = vpow2.f32 %v5222_v27 }
 0x2da   :  { %13374 = vst [vmem:[#allocation63_spill] sm:$0xff] %v12696_v26  ;;  %10582 = vrcp.f32 %v5235_v8  ;;  %v5395_v32 = vsel %vm4839_vm2, %v12696_v26, 0.0 }
 0x2db   :  { %v12700_v55 = vpop.eup %10566  ;;  %5390 = vadd.xlane.f32.xlu1 %v5389_v60  ;;  %v5241_v0 = vpop.xlane.xlu1 %5240 }
 0x2dc   :  { %13375 = vst [vmem:[#allocation64_spill] sm:$0xff] %v12700_v55  ;;  %v5398_v25 = vsel %vm4839_vm2, %v12700_v55, 0.0 }
 0x2dd   :  { %5399 = vadd.xlane.f32.xlu0 %v5398_v25  ;;  %v5232_v6 = vpop.xlane.xlu0 %5231  ;;  %v12704_v37 = vpop.eup %10568 }
 0x2de   :  { %13376 = vst [vmem:[#allocation66_spill] sm:$0xff] %v12704_v37  ;;  %10584 = vrcp.f32 %v5232_v6  ;;  %v5401_v60 = vsel %vm4839_vm2, %v12704_v37, 0.0 }
 0x2df   :  { %v12708_v27 = vpop.eup %10570  ;;  %10586 = vrcp.f32 %v5241_v0  ;;  %5396 = vadd.xlane.f32.xlu1 %v5395_v32  ;;  %v5238_v53 = vpop.xlane.xlu1 %5237 }
 0x2e0   :  { %13377 = vst [vmem:[#allocation65_spill] sm:$0xff] %v12708_v27  ;;  %10588 = vrcp.f32 %v5238_v53  ;;  %v5404_v21 = vsel %vm4839_vm2, %v12708_v27, 0.0 }
 0x2e1   :  { %5405 = vadd.xlane.f32.xlu0 %v5404_v21  ;;  %v5247_v17 = vpop.xlane.xlu0 %5246  ;;  %v12712_v8 = vpop.eup %10572 }
 0x2e2   :  { %13378 = vst [vmem:[#allocation68_spill] sm:$0xff] %v12712_v8  ;;  %10590 = vrcp.f32 %v5247_v17  ;;  %v5407_v27 = vsel %vm4839_vm2, %v12712_v8, 0.0  ;;  %v12730_v17 = vld [vmem:[%s13257_s6] ss:$0 sm:$0xff]  ;;  %v13382_v8 = vld [vmem:[#allocation47_spill] sm:$0xff] }
 0x2e3   :  { %v12716_v25 = vpop.eup %10574  ;;  %5402 = vadd.xlane.f32.xlu1 %v5401_v60  ;;  %v5253_v6 = vpop.xlane.xlu1 %5252 }
 0x2e4   :  { %13379 = vst [vmem:[#allocation67_spill] sm:$0xff] %v12716_v25  ;;  %v10577_v26 = vpop.eup %10576  ;;  %v5410_v0 = vsel %vm4839_vm2, %v12716_v25, 0.0 }
 0x2e5   :  { %5411 = vadd.xlane.f32.xlu0 %v5410_v0  ;;  %v5244_v32 = vpop.xlane.xlu0 %5243  ;;  %v5480_v53 = vmul.f32 %v10577_v26, %v12414_v12  ;;  %v10579_v21 = vpop.eup %10578  ;;  %v13381_v12 = vld [vmem:[#allocation2_spill] sm:$0xff] }
 0x2e6   :  { %10592 = vrcp.f32 %v5244_v32  ;;  %v12723_v55 = vpop.eup %10580  ;;  %v5481_v37 = vmul.f32 %v10579_v21, %v12418_v16  ;;  %v510_v26 = vadd.f32 %v12730_v17, %v13381_v12 }
 0x2e7   :  { %13380 = vst [vmem:[#allocation69_spill] sm:$0xff] %v12723_v55  ;;  %10594 = vrcp.f32 %v5253_v6  ;;  %10187 = vmatprep.mubr.msk.f32.mxu0 %vm4839_vm2, %v5480_v53  ;;  %5408 = vadd.xlane.f32.xlu1 %v5407_v27  ;;  %v5250_v60 = vpop.xlane.xlu1 %5249  ;;  %v10583_v32 = vpop.eup %10582  ;;  %v5413_v16 = vsel %vm4839_vm2, %v12723_v55, 0.0  ;;  %v13384_v55 = vld [vmem:[#allocation3_spill] sm:$0xff] }
 0x2e8   :  { %10596 = vrcp.f32 %v5250_v60  ;;  %10188 = vmatmul.mubr.msk.f32.vlgmr.msra.gmra.mxu0 %vm4839_vm2, %v5481_v37  ;;  %v5483_v12 = vmul.f32 %v10583_v32, %v12424_v34  ;;  %v13383_v37 = vld [vmem:[#allocation4_spill] sm:$0xff]  ;;  %v13385_v34 = vld [vmem:[#allocation50_spill] sm:$0xff] }
 0x2e9   :  { %v5259_v0 = vpop.xlane.xlu0 %5258  ;;  %10198 = vmatpush3.msra.mxu0 %v13382_v8 }
 0x2ea   :  { %10199 = vmatprep.subr.mxu0 %v510_v26  ;;  %10598 = vrcp.f32 %v5259_v0 }
 0x2eb   :  { %v10585_v27 = vpop.eup %10584  ;;  %5414 = vadd.xlane.f32.xlu1 %v5413_v16  ;;  %v5265_v6 = vpop.xlane.xlu1 %5264  ;;  %10200 = vmatpush3.msra.mxu0 %v510_v26  ;;  %v520_v16 = vadd.f32 %v12730_v17, %v13384_v55  ;;  %v13387_v55 = vld [vmem:[#allocation6_spill] sm:$0xff] }
 0x2ec   :  { %v10587_v53 = vpop.eup %10586  ;;  %v5482_v21 = vmul.f32 %v10585_v27, %v12433_v52  ;;  %10211 = vmatprep.subr.mxu0 %v13383_v37  ;;  %v13386_v52 = vld [vmem:[#allocation5_spill] sm:$0xff] }
 0x2ed   :  { %v10589_v60 = vpop.eup %10588  ;;  %v5256_v25 = vpop.xlane.xlu0 %5255  ;;  %v5485_v47 = vmul.f32 %v10587_v53, %v12431_v5 }
 0x2ee   :  { %10600 = vrcp.f32 %v5256_v25  ;;  %10194 = vmatprep.mubr.msk.f32.mxu1 %vm4839_vm2, %v5482_v21  ;;  %v5484_v8 = vmul.f32 %v10589_v60, %v12439_v28  ;;  %v530_v25 = vadd.f32 %v12730_v17, %v13386_v52  ;;  %v13388_v60 = vld [vmem:[#allocation8_spill] sm:$0xff] }
 0x2ef   :  { %10602 = vrcp.f32 %v5265_v6  ;;  %v5262_v26 = vpop.xlane.xlu1 %5261  ;;  %10195 = vmatmul.mubr.msk.f32.vlgmr.msra.gmra.mxu1 %vm4839_vm2, %v5483_v12  ;;  %v10591_v0 = vpop.eup %10590 }
 0x2f0   :  { %10604 = vrcp.f32 %v5262_v26  ;;  %10205 = vmatpush3.msra.mxu1 %v13385_v34  ;;  %10201 = vmatprep.mubr.msk.f32.mxu0 %vm4839_vm2, %v5484_v8  ;;  %v5487_v21 = vmul.f32 %v10591_v0, %v12443_v23  ;;  %v12766_v23 = vld [vmem:[%s13257_s6 + $0x1] ss:$0 sm:$0xff] }
 0x2f1   :  { %10206 = vmatprep.subr.mxu1 %v520_v16  ;;  %10202 = vmatmul.mubr.msk.f32.vlgmr.msra.gmra.mxu0 %vm4839_vm2, %v5485_v47  ;;  %v5271_v28 = vpop.xlane.xlu0 %5270  ;;  %v13392_v0 = vld [vmem:[#allocation10_spill] sm:$0xff] }
 0x2f2   :  { %10207 = vmatpush3.msra.mxu1 %v520_v16  ;;  %10212 = vmatpush3.msra.mxu0 %v13383_v37  ;;  %10606 = vrcp.f32 %v5271_v28  ;;  %v13389_v37 = vld [vmem:[#allocation7_spill] sm:$0xff] }
 0x2f3   :  { %v10593_v5 = vpop.eup %10592  ;;  %10213 = vmatprep.subr.mxu0 %v530_v25  ;;  %10218 = vmatprep.subr.mxu1 %v13387_v55  ;;  %v5277_v32 = vpop.xlane.xlu1 %5276  ;;  %v540_v8 = vadd.f32 %v12730_v17, %v13389_v37 }
 0x2f4   :  { %v10595_v27 = vpop.eup %10594  ;;  %10214 = vmatpush3.msra.mxu0 %v530_v25  ;;  %v5486_v6 = vmul.f32 %v10593_v5, %v12453_v46  ;;  %v13390_v46 = vld [vmem:[#allocation9_spill] sm:$0xff]  ;;  %v13391_v25 = vld [vmem:[#allocation12_spill] sm:$0xff] }
 0x2f5   :  { %v10597_v53 = vpop.eup %10596  ;;  %10225 = vmatprep.subr.mxu0 %v13388_v60  ;;  %v5268_v47 = vpop.xlane.xlu0 %5267  ;;  %v5489_v16 = vmul.f32 %v10595_v27, %v12449_v11  ;;  %v969_v28 = vadd.f32 %v13391_v25, %v12766_v23 }
 0x2f6   :  { %10608 = vrcp.f32 %v5268_v47  ;;  %10208 = vmatprep.mubr.msk.f32.mxu1 %vm4839_vm2, %v5486_v6  ;;  %v5488_v12 = vmul.f32 %v10597_v53, %v12459_v19  ;;  %v550_v19 = vadd.f32 %v12730_v17, %v13390_v46 }
 0x2f7   :  { %10610 = vrcp.f32 %v5277_v32  ;;  %v5274_v26 = vpop.xlane.xlu1 %5273  ;;  %10209 = vmatmul.mubr.msk.f32.vlgmr.msra.gmra.mxu1 %vm4839_vm2, %v5487_v21  ;;  %v10599_v34 = vpop.eup %10598 }
 0x2f8   :  { %10612 = vrcp.f32 %v5274_v26  ;;  %10219 = vmatpush3.msra.mxu1 %v13387_v55  ;;  %10215 = vmatprep.mubr.msk.f32.mxu0 %vm4839_vm2, %v5488_v12  ;;  %v5491_v6 = vmul.f32 %v10599_v34, %v12463_v45  ;;  %v13394_v45 = vld [vmem:[#allocation13_spill] sm:$0xff]  ;;  %v13396_v26 = vld [vmem:[#allocation16_spill] sm:$0xff] }
 0x2f9   :  { %10220 = vmatprep.subr.mxu1 %v540_v8  ;;  %10216 = vmatmul.mubr.msk.f32.vlgmr.msra.gmra.mxu0 %vm4839_vm2, %v5489_v16  ;;  %v5283_v11 = vpop.xlane.xlu0 %5282  ;;  %v989_v46 = vadd.f32 %v13396_v26, %v12766_v23 }
 0x2fa   :  { %10221 = vmatpush3.msra.mxu1 %v540_v8  ;;  %10226 = vmatpush3.msra.mxu0 %v13388_v60  ;;  %10614 = vrcp.f32 %v5283_v11  ;;  %v13393_v60 = vld [vmem:[#allocation11_spill] sm:$0xff]  ;;  %v13395_v8 = vld [vmem:[#allocation14_spill] sm:$0xff] }
 0x2fb   :  { %v10601_v52 = vpop.eup %10600  ;;  %10227 = vmatprep.subr.mxu0 %v550_v19  ;;  %10232 = vmatprep.subr.mxu1 %v13392_v0  ;;  %v5289_v5 = vpop.xlane.xlu1 %5288  ;;  %v560_v47 = vadd.f32 %v12730_v17, %v13393_v60  ;;  %v13400_v60 = vld [vmem:[#allocation20_spill] sm:$0xff] }
 0x2fc   :  { %v10603_v55 = vpop.eup %10602  ;;  %10228 = vmatpush3.msra.mxu0 %v550_v19  ;;  %v5490_v32 = vmul.f32 %v10601_v52, %v12473_v62  ;;  %v964_v62 = vadd.f32 %v12766_v23, %v13394_v45 }
 0x2fd   :  { %v10605_v27 = vpop.eup %10604  ;;  %10239 = vmatprep.subr.mxu0 %v969_v28  ;;  %v5280_v53 = vpop.xlane.xlu0 %5279  ;;  %v5493_v12 = vmul.f32 %v10603_v55, %v12469_v31 }
 0x2fe   :  { %10616 = vrcp.f32 %v5280_v53  ;;  %10222 = vmatprep.mubr.msk.f32.mxu1 %vm4839_vm2, %v5490_v32  ;;  %v5492_v21 = vmul.f32 %v10605_v27, %v12479_v59  ;;  %v979_v59 = vadd.f32 %v13395_v8, %v12766_v23 }
 0x2ff   :  { %10618 = vrcp.f32 %v5289_v5  ;;  %v5286_v37 = vpop.xlane.xlu1 %5285  ;;  %10223 = vmatmul.mubr.msk.f32.vlgmr.msra.gmra.mxu1 %vm4839_vm2, %v5491_v6  ;;  %v10607_v31 = vpop.eup %10606  ;;  %v13397_v5 = vld [vmem:[#allocation15_spill] sm:$0xff]  ;;  %v13399_v6 = vld [vmem:[#allocation18_spill] sm:$0xff] }
 0x300   :  { %10620 = vrcp.f32 %v5286_v37  ;;  %10233 = vmatpush3.msra.mxu1 %v13392_v0  ;;  %10229 = vmatprep.mubr.msk.f32.mxu0 %vm4839_vm2, %v5492_v21  ;;  %v5495_v25 = vmul.f32 %v10607_v31, %v12483_v7  ;;  %v974_v55 = vadd.f32 %v12766_v23, %v13397_v5  ;;  %v13398_v7 = vld [vmem:[#allocation17_spill] sm:$0xff]  ;;  %v999_v53 = vadd.f32 %v13399_v6, %v12766_v23  ;;  %v13401_v31 = vld [vmem:[#allocation19_spill] sm:$0xff] }
 0x301   :  { %10234 = vmatprep.subr.mxu1 %v560_v47  ;;  %10230 = vmatmul.mubr.msk.f32.vlgmr.msra.gmra.mxu0 %vm4839_vm2, %v5493_v12  ;;  %v5295_v17 = vpop.xlane.xlu0 %5294 }
 0x302   :  { %10235 = vmatpush3.msra.mxu1 %v560_v47  ;;  %10240 = vmatpush3.msra.mxu0 %v969_v28  ;;  %10622 = vrcp.f32 %v5295_v17  ;;  %v1009_v47 = vadd.f32 %v13400_v60, %v12766_v23 }
 0x303   :  { %v10609_v16 = vpop.eup %10608  ;;  %10241 = vmatprep.subr.mxu0 %v964_v62  ;;  %10246 = vmatprep.subr.mxu1 %v979_v59  ;;  %v5301_v19 = vpop.xlane.xlu1 %5300 }
 0x304   :  { %v10611_v11 = vpop.eup %10610  ;;  %10242 = vmatpush3.msra.mxu0 %v964_v62  ;;  %v5494_v34 = vmul.f32 %v10609_v16, %v12493_v30  ;;  %v984_v30 = vadd.f32 %v12766_v23, %v13398_v7  ;;  %v994_v16 = vadd.f32 %v12766_v23, %v13401_v31  ;;  %v13405_v7 = vld [vmem:[#allocation23_spill] sm:$0xff] }
 0x305   :  { %v10613_v52 = vpop.eup %10612  ;;  %10253 = vmatprep.subr.mxu0 %v989_v46  ;;  %v5292_v0 = vpop.xlane.xlu0 %5291  ;;  %v5497_v32 = vmul.f32 %v10611_v11, %v12489_v56  ;;  %v13412_v31 = vld [vmem:[#allocation27_spill] sm:$0xff] }
 0x306   :  { %10624 = vrcp.f32 %v5292_v0  ;;  %10236 = vmatprep.mubr.msk.f32.mxu1 %vm4839_vm2, %v5494_v34  ;;  %v5496_v28 = vmul.f32 %v10613_v52, %v12499_v41  ;;  %v13404_v52 = vld [vmem:[#allocation24_spill] sm:$0xff] }
 0x307   :  { %10626 = vrcp.f32 %v5301_v19  ;;  %v5298_v27 = vpop.xlane.xlu1 %5297  ;;  %10237 = vmatmul.mubr.msk.f32.vlgmr.msra.gmra.mxu1 %vm4839_vm2, %v5495_v25  ;;  %v10615_v21 = vpop.eup %10614  ;;  %v13403_v19 = vld [vmem:[#allocation22_spill] sm:$0xff]  ;;  %v1029_v25 = vadd.f32 %v13404_v52, %v12766_v23  ;;  %v13417_v52 = vld [vmem:[#allocation75_spill] sm:$0xff] }
 0x308   :  { %10628 = vrcp.f32 %v5298_v27  ;;  %10247 = vmatpush3.msra.mxu1 %v979_v59  ;;  %10243 = vmatprep.mubr.msk.f32.mxu0 %vm4839_vm2, %v5496_v28  ;;  %v5499_v8 = vmul.f32 %v10615_v21, %v12503_v33  ;;  %v13402_v33 = vld [vmem:[#allocation21_spill] sm:$0xff]  ;;  %v1019_v11 = vadd.f32 %v13403_v19, %v12766_v23  ;;  %v13415_v19 = vld [vmem:[#allocation30_spill] sm:$0xff] }
 0x309   :  { %10248 = vmatprep.subr.mxu1 %v974_v55  ;;  %10244 = vmatmul.mubr.msk.f32.vlgmr.msra.gmra.mxu0 %vm4839_vm2, %v5497_v32  ;;  %v5307_v41 = vpop.xlane.xlu0 %5306 }
 0x30a   :  { %10249 = vmatpush3.msra.mxu1 %v974_v55  ;;  %10254 = vmatpush3.msra.mxu0 %v989_v46  ;;  %10630 = vrcp.f32 %v5307_v41 }
 0x30b   :  { %v10617_v56 = vpop.eup %10616  ;;  %10255 = vmatprep.subr.mxu0 %v984_v30  ;;  %10260 = vmatprep.subr.mxu1 %v999_v53  ;;  %v5313_v12 = vpop.xlane.xlu1 %5312 }
 0x30c   :  { %v10619_v37 = vpop.eup %10618  ;;  %10256 = vmatpush3.msra.mxu0 %v984_v30  ;;  %v5498_v45 = vmul.f32 %v10617_v56, %v12513_v44  ;;  %v1004_v44 = vadd.f32 %v12766_v23, %v13402_v33  ;;  %v1014_v30 = vadd.f32 %v12766_v23, %v13405_v7  ;;  %v13408_v56 = vld [vmem:[#allocation28_spill] sm:$0xff]  ;;  %v13414_v33 = vld [vmem:[#allocation29_spill] sm:$0xff] }
 0x30d   :  { %v10621_v62 = vpop.eup %10620  ;;  %10267 = vmatprep.subr.mxu0 %v1009_v47  ;;  %v5304_v59 = vpop.xlane.xlu0 %5303  ;;  %v5501_v26 = vmul.f32 %v10619_v37, %v12509_v14 }
 0x30e   :  { %10632 = vrcp.f32 %v5304_v59  ;;  %10250 = vmatprep.mubr.msk.f32.mxu1 %vm4839_vm2, %v5498_v45  ;;  %v5500_v17 = vmul.f32 %v10621_v62, %v12519_v61  ;;  %v13410_v62 = vld [vmem:[#allocation70_spill] sm:$0xff]  ;;  %v13411_v59 = vld [vmem:[#allocation73_spill] sm:$0xff] }
 0x30f   :  { %10634 = vrcp.f32 %v5313_v12  ;;  %v5310_v46 = vpop.xlane.xlu1 %5309  ;;  %10251 = vmatmul.mubr.msk.f32.vlgmr.msra.gmra.mxu1 %vm4839_vm2, %v5499_v8  ;;  %v10623_v34 = vpop.eup %10622  ;;  %v13409_v12 = vld [vmem:[#allocation72_spill] sm:$0xff] }
 0x310   :  { %10636 = vrcp.f32 %v5310_v46  ;;  %10261 = vmatpush3.msra.mxu1 %v999_v53  ;;  %10257 = vmatprep.mubr.msk.f32.mxu0 %vm4839_vm2, %v5500_v17  ;;  %v5503_v55 = vmul.f32 %v10623_v34, %v12523_v50  ;;  %v13407_v53 = vld [vmem:[#allocation26_spill] sm:$0xff]  ;;  %v13416_v34 = vld [vmem:[#allocation32_spill] sm:$0xff] }
 0x311   :  { %10262 = vmatprep.subr.mxu1 %v994_v16  ;;  %10258 = vmatmul.mubr.msk.f32.vlgmr.msra.gmra.mxu0 %vm4839_vm2, %v5501_v26  ;;  %v5319_v61 = vpop.xlane.xlu0 %5318  ;;  %v1039_v41 = vadd.f32 %v13407_v53, %v12766_v23  ;;  %v13413_v26 = vld [vmem:[#allocation71_spill] sm:$0xff] }
 0x312   :  { %10263 = vmatpush3.msra.mxu1 %v994_v16  ;;  %10268 = vmatpush3.msra.mxu0 %v1009_v47  ;;  %10638 = vrcp.f32 %v5319_v61  ;;  %v1034_v16 = vadd.f32 %v12766_v23, %v13412_v31  ;;  %v13422_v31 = vld [vmem:[#allocation36_spill] sm:$0xff] }
 0x313   :  { %v10625_v14 = vpop.eup %10624  ;;  %10269 = vmatprep.subr.mxu0 %v1004_v44  ;;  %10274 = vmatprep.subr.mxu1 %v1019_v11 }
 0x314   :  { %v10627_v0 = vpop.eup %10626  ;;  %10270 = vmatpush3.msra.mxu0 %v1004_v44  ;;  %v5502_v28 = vmul.f32 %v10625_v14, %v12532_v4  ;;  %v13406_v4 = vld [vmem:[#allocation25_spill] sm:$0xff] }
 0x315   :  { %v10629_v5 = vpop.eup %10628  ;;  %10281 = vmatprep.subr.mxu0 %v1029_v25  ;;  %v5316_v32 = vpop.xlane.xlu0 %5315  ;;  %v5505_v6 = vmul.f32 %v10627_v0, %v12528_v39  ;;  %v1024_v50 = vadd.f32 %v12766_v23, %v13406_v4  ;;  %v12843_v39 = vld [vmem:[%s13257_s6 + $0x2] ss:$0 sm:$0xff] }
 0x316   :  { %10640 = vrcp.f32 %v5316_v32  ;;  %10264 = vmatprep.mubr.msk.f32.mxu1 %vm4839_vm2, %v5502_v28  ;;  %v5504_v27 = vmul.f32 %v10629_v5, %v12536_v29  ;;  %v1443_v60 = vadd.f32 %v12843_v39, %v13408_v56  ;;  %v1438_v44 = vadd.f32 %v12843_v39, %v13414_v33  ;;  %v13418_v0 = vld [vmem:[#allocation74_spill] sm:$0xff]  ;;  %v13419_v5 = vld [vmem:[#allocation31_spill] sm:$0xff] }
 0x317   :  { %10265 = vmatmul.mubr.msk.f32.vlgmr.msra.gmra.mxu1 %vm4839_vm2, %v5503_v55  ;;  %v10631_v29 = vpop.eup %10630  ;;  %v1463_v14 = vadd.f32 %v12843_v39, %v13416_v34  ;;  %v1448_v55 = vadd.f32 %v12843_v39, %v13419_v5  ;;  %v13420_v32 = vld [vmem:[#allocation34_spill] sm:$0xff] }
 0x318   :  { %10275 = vmatpush3.msra.mxu1 %v1019_v11  ;;  %10271 = vmatprep.mubr.msk.f32.mxu0 %vm4839_vm2, %v5504_v27  ;;  %v5507_v8 = vmul.f32 %v10631_v29, %v13410_v62  ;;  %v1453_v11 = vadd.f32 %v12843_v39, %v13415_v19  ;;  %v1473_v27 = vadd.f32 %v12843_v39, %v13420_v32  ;;  %v13423_v19 = vld [vmem:[#allocation35_spill] sm:$0xff] }
 0x319   :  { %10276 = vmatprep.subr.mxu1 %v1014_v30  ;;  %10272 = vmatmul.mubr.msk.f32.vlgmr.msra.gmra.mxu0 %vm4839_vm2, %v5505_v6 }
 0x31a   :  { %10277 = vmatpush3.msra.mxu1 %v1014_v30  ;;  %10282 = vmatpush3.msra.mxu0 %v1029_v25 }
 0x31b   :  { %v10633_v21 = vpop.eup %10632  ;;  %10283 = vmatprep.subr.mxu0 %v1024_v50  ;;  %10288 = vmatprep.subr.mxu1 %v1039_v41 }
 0x31c   :  { %v10635_v47 = vpop.eup %10634  ;;  %10284 = vmatpush3.msra.mxu0 %v1024_v50  ;;  %v5506_v37 = vmul.f32 %v10633_v21, %v13409_v12 }
 0x31d   :  { %v10637_v45 = vpop.eup %10636  ;;  %10295 = vmatprep.subr.mxu0 %v1443_v60  ;;  %v5509_v46 = vmul.f32 %v10635_v47, %v13413_v26 }
 0x31e   :  { %10278 = vmatprep.mubr.msk.f32.mxu1 %vm4839_vm2, %v5506_v37  ;;  %v5508_v17 = vmul.f32 %v10637_v45, %v13411_v59 }
 0x31f   :  { %10279 = vmatmul.mubr.msk.f32.vlgmr.msra.gmra.mxu1 %vm4839_vm2, %v5507_v8  ;;  %v10639_v61 = vpop.eup %10638  ;;  %v13421_v8 = vld [vmem:[#allocation33_spill] sm:$0xff] }
 0x320   :  { %10289 = vmatpush3.msra.mxu1 %v1039_v41  ;;  %10285 = vmatprep.mubr.msk.f32.mxu0 %vm4839_vm2, %v5508_v17  ;;  %v5511_v28 = vmul.f32 %v10639_v61, %v13418_v0  ;;  %v1458_v59 = vadd.f32 %v12843_v39, %v13421_v8 }
 0x321   :  { %10290 = vmatprep.subr.mxu1 %v1034_v16  ;;  %10286 = vmatmul.mubr.msk.f32.vlgmr.msra.gmra.mxu0 %vm4839_vm2, %v5509_v46 }
 0x322   :  { %10291 = vmatpush3.msra.mxu1 %v1034_v16  ;;  %10296 = vmatpush3.msra.mxu0 %v1443_v60  ;;  %v1483_v16 = vadd.f32 %v12843_v39, %v13422_v31 }
 0x323   :  { %v10641_v23 = vpop.eup %10640  ;;  %10297 = vmatprep.subr.mxu0 %v1438_v44  ;;  %10302 = vmatprep.subr.mxu1 %v1453_v11 }
 0x324   :  { %10298 = vmatpush3.msra.mxu0 %v1438_v44  ;;  %v5510_v25 = vmul.f32 %v10641_v23, %v13417_v52  ;;  %v13424_v23 = vld [vmem:[#allocation38_spill] sm:$0xff] }
 0x325   :  { %10309 = vmatprep.subr.mxu0 %v1463_v14  ;;  %v1493_v34 = vadd.f32 %v12843_v39, %v13424_v23 }
 0x326   :  { %10292 = vmatprep.mubr.msk.f32.mxu1 %vm4839_vm2, %v5510_v25  ;;  %v13425_v25 = vld [vmem:[#allocation37_spill] sm:$0xff] }
 0x327   :  { %10293 = vmatmul.mubr.msk.f32.vlgmr.msra.gmra.mxu1 %vm4839_vm2, %v5511_v28  ;;  %v1478_v0 = vadd.f32 %v12843_v39, %v13425_v25 }
 0x328   :  { %10303 = vmatpush3.msra.mxu1 %v1453_v11  ;;  %v1468_v11 = vadd.f32 %v12843_v39, %v13423_v19 }
 0x329   :  { %10304 = vmatprep.subr.mxu1 %v1448_v55 }
 0x32a   :  { %10305 = vmatpush3.msra.mxu1 %v1448_v55 }
 0x32b   :  { %10316 = vmatprep.subr.mxu1 %v1473_v27 }
 0x330   :  { %v5325_v7 = vpop.xlane.xlu1 %5324 }
 0x331   :  { %10642 = vrcp.f32 %v5325_v7 }
 0x334   :  { %v5322_v30 = vpop.xlane.xlu1 %5321 }
 0x335   :  { %10644 = vrcp.f32 %v5322_v30  ;;  %v5331_v6 = vpop.xlane.xlu0 %5330  ;;  %v13427_v30 = vld [vmem:[#allocation39_spill] sm:$0xff] }
 0x336   :  { %10646 = vrcp.f32 %v5331_v6  ;;  %v1488_v6 = vadd.f32 %v12843_v39, %v13427_v30 }
 0x338   :  { %v5337_v4 = vpop.xlane.xlu1 %5336 }
 0x339   :  { %v5328_v50 = vpop.xlane.xlu0 %5327 }
 0x33a   :  { %10648 = vrcp.f32 %v5328_v50 }
 0x33b   :  { %10650 = vrcp.f32 %v5337_v4 }
 0x33c   :  { %v5334_v53 = vpop.xlane.xlu1 %5333 }
 0x33d   :  { %10652 = vrcp.f32 %v5334_v53  ;;  %v5343_v41 = vpop.xlane.xlu0 %5342 }
 0x33e   :  { %v10643_v21 = vpop.eup %10642  ;;  %10654 = vrcp.f32 %v5343_v41  ;;  %v12908_v41 = vld [vmem:[%s13257_s6 + $0x3] ss:$0 sm:$0xff]  ;;  %s10708_s6 = smov 8  }
 0x33f   :  { %v5513_v12 = vmul.f32 %v10643_v21, %v12575_v40  ;;  %v13429_v21 = vld [vmem:[#allocation41_spill] sm:$0xff] }
 0x340   :  { %v5349_v29 = vpop.xlane.xlu1 %5348 }
 0x341   :  { %v5340_v56 = vpop.xlane.xlu0 %5339 }
 0x342   :  { %v10645_v60 = vpop.eup %10644  ;;  %10656 = vrcp.f32 %v5340_v56 }
 0x343   :  { %v5512_v47 = vmul.f32 %v10645_v60, %v12581_v57  ;;  %10658 = vrcp.f32 %v5349_v29  ;;  %v10647_v62 = vpop.eup %10646  ;;  %v13430_v60 = vld [vmem:[#allocation44_spill] sm:$0xff] }
 0x344   :  { %v5346_v37 = vpop.xlane.xlu1 %5345  ;;  %v5515_v46 = vmul.f32 %v10647_v62, %v12583_v36 }
 0x345   :  { %10660 = vrcp.f32 %v5346_v37  ;;  %v5355_v45 = vpop.xlane.xlu0 %5354  ;;  %10299 = vmatprep.mubr.msk.f32.mxu0 %vm4839_vm2, %v5512_v47  ;;  %v1917_v47 = vadd.f32 %v13430_v60, %v12908_v41 }
 0x346   :  { %10300 = vmatmul.mubr.msk.f32.vlgmr.msra.gmra.mxu0 %vm4839_vm2, %v5513_v12  ;;  %10662 = vrcp.f32 %v5355_v45 }
 0x347   :  { %v10649_v17 = vpop.eup %10648  ;;  %10310 = vmatpush3.msra.mxu0 %v1463_v14 }
 0x348   :  { %10311 = vmatprep.subr.mxu0 %v1458_v59  ;;  %v5361_v57 = vpop.xlane.xlu1 %5360  ;;  %v5514_v40 = vmul.f32 %v10649_v17, %v12593_v22  ;;  %v10651_v26 = vpop.eup %10650 }
 0x349   :  { %10312 = vmatpush3.msra.mxu0 %v1458_v59  ;;  %v5352_v33 = vpop.xlane.xlu0 %5351  ;;  %v5517_v22 = vmul.f32 %v10651_v26, %v12591_v48  ;;  %v13426_v48 = vld [vmem:[#allocation40_spill] sm:$0xff] }
 0x34a   :  { %v10653_v44 = vpop.eup %10652  ;;  %10664 = vrcp.f32 %v5352_v33  ;;  %10306 = vmatprep.mubr.msk.f32.mxu1 %vm4839_vm2, %v5514_v40  ;;  %10323 = vmatprep.subr.mxu0 %v1483_v16  ;;  %v1503_v28 = vadd.f32 %v12843_v39, %v13426_v48  ;;  %v13433_v40 = vld [vmem:[#allocation45_spill] sm:$0xff] }
 0x34b   :  { %10307 = vmatmul.mubr.msk.f32.vlgmr.msra.gmra.mxu1 %vm4839_vm2, %v5515_v46  ;;  %v5516_v61 = vmul.f32 %v10653_v44, %v12601_v18  ;;  %10666 = vrcp.f32 %v5361_v57  ;;  %v10655_v52 = vpop.eup %10654  ;;  %v1912_v26 = vadd.f32 %v12908_v41, %v13433_v40  ;;  %v13434_v46 = vld [vmem:[#allocation49_spill] sm:$0xff] }
 0x34c   :  { %10317 = vmatpush3.msra.mxu1 %v1473_v27  ;;  %v5358_v36 = vpop.xlane.xlu1 %5357  ;;  %v5519_v32 = vmul.f32 %v10655_v52, %v12603_v10  ;;  %v13428_v10 = vld [vmem:[#allocation42_spill] sm:$0xff]  ;;  %v1937_v33 = vadd.f32 %v13434_v46, %v12908_v41 }
 0x34d   :  { %10318 = vmatprep.subr.mxu1 %v1468_v11  ;;  %10668 = vrcp.f32 %v5358_v36  ;;  %v5367_v14 = vpop.xlane.xlu0 %5366  ;;  %10313 = vmatprep.mubr.msk.f32.mxu0 %vm4839_vm2, %v5516_v61  ;;  %v1513_v53 = vadd.f32 %v12843_v39, %v13428_v10  ;;  %v13435_v36 = vld [vmem:[#allocation48_spill] sm:$0xff] }
 0x34e   :  { %10319 = vmatpush3.msra.mxu1 %v1468_v11  ;;  %10314 = vmatmul.mubr.msk.f32.vlgmr.msra.gmra.mxu0 %vm4839_vm2, %v5517_v22  ;;  %10670 = vrcp.f32 %v5367_v14  ;;  %v1922_v23 = vadd.f32 %v12908_v41, %v13435_v36  ;;  %v13452_v36 = vld [vmem:[#allocation67_spill] sm:$0xff] }
 0x34f   :  { %v10657_v18 = vpop.eup %10656  ;;  %10330 = vmatprep.subr.mxu1 %v1493_v34  ;;  %10324 = vmatpush3.msra.mxu0 %v1483_v16 }
 0x350   :  { %10325 = vmatprep.subr.mxu0 %v1478_v0  ;;  %v5518_v5 = vmul.f32 %v10657_v18, %v12613_v49  ;;  %v10659_v55 = vpop.eup %10658 }
 0x351   :  { %10326 = vmatpush3.msra.mxu0 %v1478_v0  ;;  %v5364_v27 = vpop.xlane.xlu0 %5363  ;;  %v5521_v49 = vmul.f32 %v10659_v55, %v12610_v38 }
 0x352   :  { %v10661_v7 = vpop.eup %10660  ;;  %10672 = vrcp.f32 %v5364_v27  ;;  %10320 = vmatprep.mubr.msk.f32.mxu1 %vm4839_vm2, %v5518_v5  ;;  %10337 = vmatprep.subr.mxu0 %v1503_v28  ;;  %v13437_v5 = vld [vmem:[#allocation51_spill] sm:$0xff] }
 0x353   :  { %10321 = vmatmul.mubr.msk.f32.vlgmr.msra.gmra.mxu1 %vm4839_vm2, %v5519_v32  ;;  %v5520_v4 = vmul.f32 %v10661_v7, %v12620_v15  ;;  %v10663_v29 = vpop.eup %10662  ;;  %v1498_v15 = vadd.f32 %v12843_v39, %v13429_v21  ;;  %v1932_v55 = vadd.f32 %v12908_v41, %v13437_v5  ;;  %v13438_v7 = vld [vmem:[#allocation54_spill] sm:$0xff] }
 0x354   :  { %10331 = vmatpush3.msra.mxu1 %v1493_v34  ;;  %v5370_v50 = vpop.xlane.xlu1 %5369  ;;  %v5523_v62 = vmul.f32 %v10663_v29, %v12622_v13  ;;  %v13432_v13 = vld [vmem:[#allocation43_spill] sm:$0xff] }
 0x355   :  { %10332 = vmatprep.subr.mxu1 %v1488_v6  ;;  %10674 = vrcp.f32 %v5370_v50  ;;  %10327 = vmatprep.mubr.msk.f32.mxu0 %vm4839_vm2, %v5520_v4 }
 0x356   :  { %10333 = vmatpush3.msra.mxu1 %v1488_v6  ;;  %10328 = vmatmul.mubr.msk.f32.vlgmr.msra.gmra.mxu0 %vm4839_vm2, %v5521_v49  ;;  %v5376_v38 = vpop.xlane.xlu0 %5375  ;;  %v13439_v49 = vld [vmem:[#allocation53_spill] sm:$0xff] }
 0x357   :  { %v10665_v56 = vpop.eup %10664  ;;  %10344 = vmatprep.subr.mxu1 %v1513_v53  ;;  %10338 = vmatpush3.msra.mxu0 %v1503_v28  ;;  %10676 = vrcp.f32 %v5376_v38  ;;  %v1942_v50 = vadd.f32 %v12908_v41, %v13439_v49 }
 0x358   :  { %10339 = vmatprep.subr.mxu0 %v1498_v15  ;;  %v5373_v12 = vpop.xlane.xlu1 %5372  ;;  %v5522_v37 = vmul.f32 %v10665_v56, %v12632_v35  ;;  %v10667_v45 = vpop.eup %10666  ;;  %v13431_v35 = vld [vmem:[#allocation46_spill] sm:$0xff]  ;;  %v13441_v56 = vld [vmem:[#allocation55_spill] sm:$0xff] }
 0x359   :  { %10678 = vrcp.f32 %v5373_v12  ;;  %10340 = vmatpush3.msra.mxu0 %v1498_v15  ;;  %v5525_v17 = vmul.f32 %v10667_v45, %v12630_v54  ;;  %v1927_v16 = vadd.f32 %v13431_v35, %v12908_v41  ;;  %v1952_v60 = vadd.f32 %v12908_v41, %v13441_v56  ;;  %v13446_v35 = vld [vmem:[#allocation60_spill] sm:$0xff] }
 0x35a   :  { %v10669_v39 = vpop.eup %10668  ;;  %10334 = vmatprep.mubr.msk.f32.mxu1 %vm4839_vm2, %v5522_v37  ;;  %10351 = vmatprep.subr.mxu0 %v1917_v47  ;;  %v5382_v8 = vpop.xlane.xlu0 %5381  ;;  %v13443_v37 = vld [vmem:[#allocation62_spill] sm:$0xff] }
 0x35b   :  { %10335 = vmatmul.mubr.msk.f32.vlgmr.msra.gmra.mxu1 %vm4839_vm2, %v5523_v62  ;;  %10680 = vrcp.f32 %v5382_v8  ;;  %v5524_v59 = vmul.f32 %v10669_v39, %v12640_v24  ;;  %v10671_v57 = vpop.eup %10670  ;;  %v13444_v8 = vld [vmem:[#allocation57_spill] sm:$0xff] }
 0x35c   :  { %10345 = vmatpush3.msra.mxu1 %v1513_v53  ;;  %v5379_v31 = vpop.xlane.xlu1 %5378  ;;  %v5527_v11 = vmul.f32 %v10671_v57, %v12642_v3  ;;  %v13436_v3 = vld [vmem:[#allocation52_spill] sm:$0xff] }
 0x35d   :  { %10346 = vmatprep.subr.mxu1 %v13432_v13  ;;  %10682 = vrcp.f32 %v5379_v31  ;;  %10341 = vmatprep.mubr.msk.f32.mxu0 %vm4839_vm2, %v5524_v59  ;;  %v1947_v52 = vadd.f32 %v13436_v3, %v12908_v41  ;;  %v1962_v59 = vadd.f32 %v12908_v41, %v13444_v8 }
 0x35e   :  { %10347 = vmatpush3.msra.mxu1 %v13432_v13  ;;  %10342 = vmatmul.mubr.msk.f32.vlgmr.msra.gmra.mxu0 %vm4839_vm2, %v5525_v17  ;;  %v5388_v24 = vpop.xlane.xlu0 %5387  ;;  %v13447_v13 = vld [vmem:[#allocation63_spill] sm:$0xff] }
 0x35f   :  { %v10673_v54 = vpop.eup %10672  ;;  %10358 = vmatprep.subr.mxu1 %v1927_v16  ;;  %10352 = vmatpush3.msra.mxu0 %v1917_v47  ;;  %10684 = vrcp.f32 %v5388_v24 }
 0x360   :  { %10353 = vmatprep.subr.mxu0 %v1912_v26  ;;  %v5385_v44 = vpop.xlane.xlu1 %5384  ;;  %v5526_v19 = vmul.f32 %v10673_v54, %v12650_v51  ;;  %v13449_v54 = vld [vmem:[#allocation65_spill] sm:$0xff] }
 0x361   :  { %10686 = vrcp.f32 %v5385_v44  ;;  %10354 = vmatpush3.msra.mxu0 %v1912_v26  ;;  %v13448_v26 = vld [vmem:[#allocation59_spill] sm:$0xff]  ;;  %v13450_v44 = vld [vmem:[#allocation66_spill] sm:$0xff] }
 0x362   :  { %v10675_v61 = vpop.eup %10674  ;;  %10348 = vmatprep.mubr.msk.f32.mxu1 %vm4839_vm2, %v5526_v19  ;;  %10365 = vmatprep.subr.mxu0 %v1937_v33  ;;  %v5394_v22 = vpop.xlane.xlu0 %5393  ;;  %v1972_v24 = vadd.f32 %v12908_v41, %v13448_v26 }
 0x363   :  { %10349 = vmatmul.mubr.msk.f32.vlgmr.msra.gmra.mxu1 %vm4839_vm2, %v5527_v11  ;;  %10688 = vrcp.f32 %v5394_v22  ;;  %v5528_v34 = vmul.f32 %v10675_v61, %v12656_v63  ;;  %v13451_v61 = vld [vmem:[#allocation61_spill] sm:$0xff] }
 0x364   :  { %v10677_v14 = vpop.eup %10676  ;;  %10359 = vmatpush3.msra.mxu1 %v1927_v16  ;;  %v5391_v51 = vpop.xlane.xlu1 %5390  ;;  %v1987_v16 = vadd.f32 %v13446_v35, %v12908_v41  ;;  %v1982_v22 = vadd.f32 %v12908_v41, %v13451_v61 }
 0x365   :  { %10360 = vmatprep.subr.mxu1 %v1922_v23  ;;  %10690 = vrcp.f32 %v5391_v51  ;;  %10355 = vmatprep.mubr.msk.f32.mxu0 %vm4839_vm2, %v5528_v34  ;;  %v5530_v25 = vmul.f32 %v10677_v14, %v12663_v2  ;;  %v13453_v14 = vld [vmem:[#allocation68_spill] sm:$0xff] }
 0x366   :  { %v10679_v0 = vpop.eup %10678  ;;  %10361 = vmatpush3.msra.mxu1 %v1922_v23  ;;  %v5400_v18 = vpop.xlane.xlu0 %5399 }
 0x367   :  { %v5529_v48 = vmul.f32 %v10679_v0, %v12658_v1  ;;  %10372 = vmatprep.subr.mxu1 %v1947_v52  ;;  %10692 = vrcp.f32 %v5400_v18  ;;  %10362 = vmatprep.mubr.msk.f32.mxu1 %vm4839_vm2, %v5530_v25  ;;  %v1957_v1 = vadd.f32 %v13438_v7, %v12908_v41 }
 0x368   :  { %v10681_v63 = vpop.eup %10680  ;;  %v5397_v28 = vpop.xlane.xlu1 %5396 }
 0x369   :  { %10694 = vrcp.f32 %v5397_v28  ;;  %10356 = vmatmul.mubr.msk.f32.vlgmr.msra.gmra.mxu0 %vm4839_vm2, %v5529_v48  ;;  %v5532_v32 = vmul.f32 %v10681_v63, %v12673_v43 }
 0x36a   :  { %v10683_v2 = vpop.eup %10682  ;;  %10366 = vmatpush3.msra.mxu0 %v1937_v33  ;;  %v5406_v27 = vpop.xlane.xlu0 %5405 }
 0x36b   :  { %v5531_v30 = vmul.f32 %v10683_v2, %v12668_v58  ;;  %10367 = vmatprep.subr.mxu0 %v1932_v55  ;;  %10696 = vrcp.f32 %v5406_v27  ;;  %10369 = vmatprep.mubr.msk.f32.mxu0 %vm4839_vm2, %v5532_v32  ;;  %v13440_v58 = vld [vmem:[#allocation56_spill] sm:$0xff] }
 0x36c   :  { %v10685_v6 = vpop.eup %10684  ;;  %10368 = vmatpush3.msra.mxu0 %v1932_v55  ;;  %v5403_v4 = vpop.xlane.xlu1 %5402  ;;  %v1967_v29 = vadd.f32 %v13440_v58, %v12908_v41 }
 0x36d   :  { %10698 = vrcp.f32 %v5403_v4  ;;  %10379 = vmatprep.subr.mxu0 %v1957_v1  ;;  %10363 = vmatmul.mubr.msk.f32.vlgmr.msra.gmra.mxu1 %vm4839_vm2, %v5531_v30  ;;  %v5534_v43 = vmul.f32 %v10685_v6, %v12683_v20 }
 0x36e   :  { %v10687_v10 = vpop.eup %10686  ;;  %10373 = vmatpush3.msra.mxu1 %v1947_v52  ;;  %v5412_v53 = vpop.xlane.xlu0 %5411  ;;  %v13454_v52 = vld [vmem:[#allocation69_spill] sm:$0xff] }
 0x36f   :  { %v5533_v21 = vmul.f32 %v10687_v10, %v12678_v9  ;;  %10374 = vmatprep.subr.mxu1 %v1942_v50  ;;  %10700 = vrcp.f32 %v5412_v53  ;;  %10376 = vmatprep.mubr.msk.f32.mxu1 %vm4839_vm2, %v5534_v43  ;;  %v13442_v9 = vld [vmem:[#allocation58_spill] sm:$0xff] }
 0x370   :  { %v10689_v15 = vpop.eup %10688  ;;  %10375 = vmatpush3.msra.mxu1 %v1942_v50  ;;  %v5409_v38 = vpop.xlane.xlu1 %5408  ;;  %v1977_v12 = vadd.f32 %v13442_v9, %v12908_v41 }
 0x371   :  { %10702 = vrcp.f32 %v5409_v38  ;;  %10386 = vmatprep.subr.mxu1 %v1967_v29  ;;  %10370 = vmatmul.mubr.msk.f32.vlgmr.msra.gmra.mxu0 %vm4839_vm2, %v5533_v21  ;;  %v5536_v20 = vmul.f32 %v10689_v15, %v12692_v42  ;;  %v13445_v42 = vld [vmem:[#allocation64_spill] sm:$0xff] }
 0x372   :  { %v10691_v47 = vpop.eup %10690  ;;  %10380 = vmatpush3.msra.mxu0 %v1957_v1 }
 0x373   :  { %v5535_v45 = vmul.f32 %v10691_v47, %v13443_v37  ;;  %10381 = vmatprep.subr.mxu0 %v1952_v60  ;;  %10383 = vmatprep.mubr.msk.f32.mxu0 %vm4839_vm2, %v5536_v20 }
 0x374   :  { %v10693_v62 = vpop.eup %10692  ;;  %10382 = vmatpush3.msra.mxu0 %v1952_v60  ;;  %v5415_v39 = vpop.xlane.xlu1 %5414 }
 0x375   :  { %10704 = vrcp.f32 %v5415_v39  ;;  %10393 = vmatprep.subr.mxu0 %v1977_v12  ;;  %10377 = vmatmul.mubr.msk.f32.vlgmr.msra.gmra.mxu1 %vm4839_vm2, %v5535_v45  ;;  %v5538_v17 = vmul.f32 %v10693_v62, %v13445_v42 }
 0x376   :  { %v10695_v31 = vpop.eup %10694  ;;  %10387 = vmatpush3.msra.mxu1 %v1967_v29 }
 0x377   :  { %v5537_v57 = vmul.f32 %v10695_v31, %v13447_v13  ;;  %10388 = vmatprep.subr.mxu1 %v1962_v59  ;;  %10390 = vmatprep.mubr.msk.f32.mxu1 %vm4839_vm2, %v5538_v17  ;;  %v8379_v13 = vld [vmem:[%s13259_s7 + $0x10] sm:$0xff] }
 0x378   :  { %v10697_v40 = vpop.eup %10696  ;;  %10389 = vmatpush3.msra.mxu1 %v1962_v59 }
 0x379   :  { %10400 = vmatprep.subr.mxu1 %v1987_v16  ;;  %10384 = vmatmul.mubr.msk.f32.vlgmr.msra.gmra.mxu0 %vm4839_vm2, %v5537_v57  ;;  %v5540_v46 = vmul.f32 %v10697_v40, %v13449_v54  ;;  %v8377_v54 = vld [vmem:[%s13259_s7] sm:$0xff] }
 0x37a   :  { %v10699_v33 = vpop.eup %10698  ;;  %10394 = vmatpush3.msra.mxu0 %v1977_v12 }
 0x37b   :  { %v5539_v19 = vmul.f32 %v10699_v33, %v13450_v44  ;;  %10395 = vmatprep.subr.mxu0 %v1972_v24  ;;  %10397 = vmatprep.mubr.msk.f32.mxu0 %vm4839_vm2, %v5540_v46 }
 0x37c   :  { %v10701_v11 = vpop.eup %10700  ;;  %10396 = vmatpush3.msra.mxu0 %v1972_v24  ;;  %v8378_v24 = vld [vmem:[%s13259_s7 + $0x8] sm:$0xff] }
 0x37d   :  { %10391 = vmatmul.mubr.msk.f32.vlgmr.msra.gmra.mxu1 %vm4839_vm2, %v5539_v19  ;;  %v5542_v23 = vmul.f32 %v10701_v11, %v13452_v36 }
 0x37e   :  { %v10703_v34 = vpop.eup %10702  ;;  %10401 = vmatpush3.msra.mxu1 %v1987_v16  ;;  %v8380_v16 = vld [vmem:[%s13259_s7 + $0x18] sm:$0xff] }
 0x37f   :  { %v5541_v51 = vmul.f32 %v10703_v34, %v13453_v14  ;;  %10402 = vmatprep.subr.mxu1 %v1982_v22  ;;  %10404 = vmatprep.mubr.msk.f32.mxu1 %vm4839_vm2, %v5542_v23 }
 0x380   :  { %10403 = vmatpush3.msra.mxu1 %v1982_v22  ;;  %10407 = vmatprep.subr.mxu0 %v8380_v16 }
 0x381   :  { %10398 = vmatmul.mubr.msk.f32.vlgmr.msra.gmra.mxu0 %vm4839_vm2, %v5541_v51 }
 0x382   :  { %v10705_v3 = vpop.eup %10704  ;;  %10408 = vmatpush3.msra.mxu0 %v8380_v16 }
 0x383   :  { %v5543_v25 = vmul.f32 %v10705_v3, %v13454_v52  ;;  %10409 = vmatprep.subr.mxu0 %v8379_v13 }
 0x384   :  { %10410 = vmatpush3.msra.mxu0 %v8379_v13 }
 0x385   :  { %10405 = vmatmul.mubr.msk.f32.vlgmr.msra.gmra.mxu1 %vm4839_vm2, %v5543_v25  ;;  %10411 = vmatprep.subr.mxu0 %v8378_v24 }
 0x386   :  { %10412 = vmatpush3.msra.mxu0 %v8378_v24 }
 0x387   :  { %10413 = vmatprep.subr.mxu0 %v8377_v54 }
 0x388   :  { %10414 = vmatpush3.msra.mxu0 %v8377_v54 }
 0x3a8   :  { %v12992_v41 = vpop.f32.mrf.mxu0 }
 0x3aa   :  { %v12994_v0 = vpop.f32.mrf.mxu0 }
 0x3af   :  { %v12996_v18 = vpop.f32.mrf.mxu1 }
 0x3b1   :  { %v12998_v48 = vpop.f32.mrf.mxu0  ;;  %v13000_v63 = vpop.f32.mrf.mxu1 }
 0x3b3   :  { %v13002_v28 = vpop.f32.mrf.mxu0 }
 0x3b7   :  { %v13004_v5 = vpop.f32.mrf.mxu1 }
 0x3b9   :  { %v13006_v55 = vpop.f32.mrf.mxu0  ;;  %v13008_v32 = vpop.f32.mrf.mxu1 }
 0x3bb   :  { %v13010_v2 = vpop.f32.mrf.mxu0 }
 0x3bf   :  { %v13012_v27 = vpop.f32.mrf.mxu1 }
 0x3c1   :  { %v13014_v7 = vpop.f32.mrf.mxu0  ;;  %v13016_v1 = vpop.f32.mrf.mxu1 }
 0x3c3   :  { %v13018_v30 = vpop.f32.mrf.mxu0 }
 0x3c7   :  { %v13020_v6 = vpop.f32.mrf.mxu1 }
 0x3c9   :  { %v10245_v4 = vpop.f32.mrf.mxu0  ;;  %v13024_v50 = vpop.f32.mrf.mxu1 }
 0x3ca   :  { %8154 = vrot.lane.b32.xlu1 %v10245_v4, %s10708_s6 }
 0x3cb   :  { %v6264_v49 = vpop.f32.mrf.mxu0 }
 0x3cc   :  { %8152 = vrot.lane.b32.xlu0 %v6264_v49, %s10708_s6 }
 0x3cf   :  { %v10252_v43 = vpop.f32.mrf.mxu1 }
 0x3d0   :  { %8158 = vrot.lane.b32.xlu1 %v10252_v43, %s10708_s6 }
 0x3d1   :  { %v6345_v10 = vpop.f32.mrf.mxu1  ;;  %v10259_v53 = vpop.f32.mrf.mxu0 }
 0x3d2   :  { %8156 = vrot.lane.b32.xlu0 %v6345_v10, %s10708_s6 }
 0x3d3   :  { %v6426_v58 = vpop.f32.mrf.mxu0 }
 0x3d4   :  { %8162 = vrot.lane.b32.xlu1 %v10259_v53, %s10708_s6 }
 0x3d6   :  { %8160 = vrot.lane.b32.xlu0 %v6426_v58, %s10708_s6 }
 0x3d7   :  { %v10266_v29 = vpop.f32.mrf.mxu1 }
 0x3d8   :  { %8166 = vrot.lane.b32.xlu1 %v10266_v29, %s10708_s6 }
 0x3d9   :  { %v6507_v21 = vpop.f32.mrf.mxu1  ;;  %v10273_v15 = vpop.f32.mrf.mxu0 }
 0x3da   :  { %8164 = vrot.lane.b32.xlu0 %v6507_v21, %s10708_s6 }
 0x3db   :  { %v6588_v38 = vpop.f32.mrf.mxu0 }
 0x3dc   :  { %8170 = vrot.lane.b32.xlu1 %v10273_v15, %s10708_s6 }
 0x3de   :  { %8168 = vrot.lane.b32.xlu0 %v6588_v38, %s10708_s6 }
 0x3df   :  { %v10280_v56 = vpop.f32.mrf.mxu1 }
 0x3e0   :  { %8174 = vrot.lane.b32.xlu1 %v10280_v56, %s10708_s6 }
 0x3e1   :  { %v6669_v60 = vpop.f32.mrf.mxu1  ;;  %v10287_v20 = vpop.f32.mrf.mxu0 }
 0x3e2   :  { %8172 = vrot.lane.b32.xlu0 %v6669_v60, %s10708_s6 }
 0x3e3   :  { %v6750_v47 = vpop.f32.mrf.mxu0 }
 0x3e4   :  { %8178 = vrot.lane.b32.xlu1 %v10287_v20, %s10708_s6 }
 0x3e6   :  { %8176 = vrot.lane.b32.xlu0 %v6750_v47, %s10708_s6 }
 0x3e7   :  { %v10294_v9 = vpop.f32.mrf.mxu1 }
 0x3e8   :  { %8182 = vrot.lane.b32.xlu1 %v10294_v9, %s10708_s6 }
 0x3e9   :  { %v6831_v12 = vpop.f32.mrf.mxu1 }
 0x3ea   :  { %8180 = vrot.lane.b32.xlu0 %v6831_v12, %s10708_s6 }
 0x406   :  { %v10301_v37 = vpop.f32.mrf.mxu0 }
 0x407   :  { %8218 = vrot.lane.b32.xlu1 %v10301_v37, %s10709_s14 }
 0x408   :  { %v6912_v45 = vpop.f32.mrf.mxu0 }
 0x40b   :  { %v10308_v62 = vpop.f32.mrf.mxu1  ;;  %8216 = vrot.lane.b32.xlu1 %v6912_v45, %s10709_s14 }
 0x40d   :  { %v6993_v39 = vpop.f32.mrf.mxu1 }
 0x40e   :  { %8220 = vrot.lane.b32.xlu0 %v6993_v39, %s10709_s14  ;;  %v10315_v8 = vpop.f32.mrf.mxu0 }
 0x40f   :  { %8222 = vrot.lane.b32.xlu1 %v10308_v62, %s10709_s14 }
 0x410   :  { %v7074_v59 = vpop.f32.mrf.mxu0 }
 0x412   :  { %8224 = vrot.lane.b32.xlu0 %v7074_v59, %s10709_s14 }
 0x413   :  { %v10322_v42 = vpop.f32.mrf.mxu1  ;;  %8226 = vrot.lane.b32.xlu1 %v10315_v8, %s10709_s14 }
 0x415   :  { %v7155_v17 = vpop.f32.mrf.mxu1 }
 0x416   :  { %8228 = vrot.lane.b32.xlu0 %v7155_v17, %s10709_s14  ;;  %v10329_v31 = vpop.f32.mrf.mxu0 }
 0x417   :  { %8230 = vrot.lane.b32.xlu1 %v10322_v42, %s10709_s14 }
 0x418   :  { %v7236_v35 = vpop.f32.mrf.mxu0 }
 0x41a   :  { %8232 = vrot.lane.b32.xlu0 %v7236_v35, %s10709_s14 }
 0x41b   :  { %v10336_v57 = vpop.f32.mrf.mxu1  ;;  %8234 = vrot.lane.b32.xlu1 %v10329_v31, %s10709_s14 }
 0x41d   :  { %v7317_v40 = vpop.f32.mrf.mxu1 }
 0x41e   :  { %8236 = vrot.lane.b32.xlu0 %v7317_v40, %s10709_s14  ;;  %v10343_v26 = vpop.f32.mrf.mxu0 }
 0x41f   :  { %8238 = vrot.lane.b32.xlu1 %v10336_v57, %s10709_s14 }
 0x420   :  { %v7398_v46 = vpop.f32.mrf.mxu0 }
 0x422   :  { %8240 = vrot.lane.b32.xlu0 %v7398_v46, %s10709_s14 }
 0x423   :  { %v10350_v33 = vpop.f32.mrf.mxu1  ;;  %8242 = vrot.lane.b32.xlu1 %v10343_v26, %s10709_s14 }
 0x425   :  { %v7479_v44 = vpop.f32.mrf.mxu1 }
 0x426   :  { %8244 = vrot.lane.b32.xlu0 %v7479_v44, %s10709_s14 }
 0x427   :  { %8246 = vrot.lane.b32.xlu1 %v10350_v33, %s10709_s14 }
 0x429   :  { %v10357_v19 = vpop.f32.mrf.mxu0 }
 0x42b   :  { %v7560_v11 = vpop.f32.mrf.mxu0  ;;  %8282 = vrot.lane.b32.xlu1 %v10357_v19, %s10710_s22 }
 0x42c   :  { %8280 = vrot.lane.b32.xlu0 %v7560_v11, %s10710_s22 }
 0x42d   :  { %v10364_v61 = vpop.f32.mrf.mxu1 }
 0x42f   :  { %8286 = vrot.lane.b32.xlu1 %v10364_v61, %s10710_s22  ;;  %v7641_v22 = vpop.f32.mrf.mxu1 }
 0x430   :  { %8284 = vrot.lane.b32.xlu0 %v7641_v22, %s10710_s22 }
 0x431   :  { %v10371_v36 = vpop.f32.mrf.mxu0 }
 0x433   :  { %8290 = vrot.lane.b32.xlu1 %v10371_v36, %s10710_s22  ;;  %v7722_v23 = vpop.f32.mrf.mxu0 }
 0x434   :  { %8288 = vrot.lane.b32.xlu0 %v7722_v23, %s10710_s22 }
 0x435   :  { %v10378_v34 = vpop.f32.mrf.mxu1 }
 0x437   :  { %8294 = vrot.lane.b32.xlu1 %v10378_v34, %s10710_s22  ;;  %v7803_v14 = vpop.f32.mrf.mxu1 }
 0x438   :  { %8292 = vrot.lane.b32.xlu0 %v7803_v14, %s10710_s22 }
 0x439   :  { %v10385_v51 = vpop.f32.mrf.mxu0 }
 0x43b   :  { %8298 = vrot.lane.b32.xlu1 %v10385_v51, %s10710_s22  ;;  %v7884_v3 = vpop.f32.mrf.mxu0 }
 0x43c   :  { %8296 = vrot.lane.b32.xlu0 %v7884_v3, %s10710_s22  ;;  %v8155_v53 = vpop.permute.xlu1 %8154 }
 0x43d   :  { %v10392_v52 = vpop.f32.mrf.mxu1  ;;  %v8329_v61 = vsel %vm2054_vm1, %v12992_v41, %v8155_v53 }
 0x43e   :  { %v8153_v29 = vpop.permute.xlu0 %8152 }
 0x43f   :  { %8302 = vrot.lane.b32.xlu1 %v10392_v52, %s10710_s22  ;;  %v7965_v25 = vpop.f32.mrf.mxu1  ;;  %v8328_v19 = vsel %vm2054_vm1, %v12994_v0, %v8153_v29 }
 0x440   :  { %8300 = vrot.lane.b32.xlu0 %v7965_v25, %s10710_s22 }
 0x441   :  { %v10399_v4 = vpop.f32.mrf.mxu0 }
 0x442   :  { %v8159_v58 = vpop.permute.xlu1 %8158 }
 0x443   :  { %8306 = vrot.lane.b32.xlu1 %v10399_v4, %s10710_s22  ;;  %v8046_v49 = vpop.f32.mrf.mxu0  ;;  %v8331_v41 = vsel %vm2054_vm1, %v12996_v18, %v8159_v58 }
 0x444   :  { %8304 = vrot.lane.b32.xlu0 %v8046_v49, %s10710_s22  ;;  %v8157_v15 = vpop.permute.xlu0 %8156 }
 0x445   :  { %v10406_v43 = vpop.f32.mrf.mxu1  ;;  %v8330_v51 = vsel %vm2054_vm1, %v13000_v63, %v8157_v15 }
 0x446   :  { %v8163_v21 = vpop.permute.xlu1 %8162 }
 0x447   :  { %8310 = vrot.lane.b32.xlu1 %v10406_v43, %s10710_s22  ;;  %v8127_v10 = vpop.f32.mrf.mxu1  ;;  %v8333_v18 = vsel %vm2054_vm1, %v12998_v48, %v8163_v21 }
 0x448   :  { %8308 = vrot.lane.b32.xlu0 %v8127_v10, %s10710_s22  ;;  %v8161_v56 = vpop.permute.xlu0 %8160 }
 0x449   :  { %v8332_v63 = vsel %vm2054_vm1, %v13002_v28, %v8161_v56 }
 0x44a   :  { %v8167_v38 = vpop.permute.xlu1 %8166 }
 0x44b   :  { %v8335_v48 = vsel %vm2054_vm1, %v13004_v5, %v8167_v38 }
 0x44c   :  { %v8165_v20 = vpop.permute.xlu0 %8164 }
 0x44d   :  { %v8334_v28 = vsel %vm2054_vm1, %v13008_v32, %v8165_v20 }
 0x44e   :  { %v13068_v60 = vpop.permute.xlu1 %8170 }
 0x44f   :  { %v8337_v5 = vsel %vm2054_vm1, %v13006_v55, %v13068_v60 }
 0x450   :  { %v13072_v9 = vpop.permute.xlu0 %8168 }
 0x451   :  { %v8336_v32 = vsel %vm2054_vm1, %v13010_v2, %v13072_v9 }
 0x452   :  { %v13070_v47 = vpop.permute.xlu1 %8174 }
 0x453   :  { %v8339_v55 = vsel %vm2054_vm1, %v13012_v27, %v13070_v47 }
 0x454   :  { %v13076_v37 = vpop.permute.xlu0 %8172 }
 0x455   :  { %v8338_v2 = vsel %vm2054_vm1, %v13016_v1, %v13076_v37 }
 0x456   :  { %v13074_v12 = vpop.permute.xlu1 %8178 }
 0x457   :  { %v8341_v27 = vsel %vm2054_vm1, %v13014_v7, %v13074_v12 }
 0x458   :  { %v13080_v62 = vpop.permute.xlu0 %8176 }
 0x459   :  { %v8340_v1 = vsel %vm2054_vm1, %v13018_v30, %v13080_v62 }
 0x45a   :  { %v13078_v45 = vpop.permute.xlu1 %8182 }
 0x45b   :  { %v8343_v7 = vsel %vm2054_vm1, %v13020_v6, %v13078_v45 }
 0x45c   :  { %v13082_v8 = vpop.permute.xlu0 %8180 }
 0x45d   :  { %v8342_v30 = vsel %vm2054_vm1, %v13024_v50, %v13082_v8  ;;  %v9042_v50 = vld [vmem:[%s13260_s8] ss:$0 sm:$0xff] }
 0x479   :  { %v8219_v39 = vpop.permute.xlu1 %8218 }
 0x47a   :  { %v8345_v23 = vsel %vm4839_vm2, %v8329_v61, %v8219_v39 }
 0x47d   :  { %v8217_v59 = vpop.permute.xlu1 %8216 }
 0x47e   :  { %v8344_v22 = vsel %vm4839_vm2, %v8328_v19, %v8217_v59 }
 0x480   :  { %v8221_v42 = vpop.permute.xlu0 %8220 }
 0x481   :  { %v8223_v17 = vpop.permute.xlu1 %8222  ;;  %v8346_v0 = vsel %vm4839_vm2, %v8330_v51, %v8221_v42 }
 0x482   :  { %v8347_v25 = vsel %vm4839_vm2, %v8331_v41, %v8223_v17 }
 0x484   :  { %v8225_v31 = vpop.permute.xlu0 %8224 }
 0x485   :  { %v8227_v35 = vpop.permute.xlu1 %8226  ;;  %v8348_v10 = vsel %vm4839_vm2, %v8332_v63, %v8225_v31 }
 0x486   :  { %v8349_v58 = vsel %vm4839_vm2, %v8333_v18, %v8227_v35 }
 0x488   :  { %v8229_v16 = vpop.permute.xlu0 %8228 }
 0x489   :  { %v8231_v13 = vpop.permute.xlu1 %8230  ;;  %v8350_v21 = vsel %vm4839_vm2, %v8334_v28, %v8229_v16 }
 0x48a   :  { %v8351_v59 = vsel %vm4839_vm2, %v8335_v48, %v8231_v13 }
 0x48c   :  { %v8233_v57 = vpop.permute.xlu0 %8232 }
 0x48d   :  { %v8235_v40 = vpop.permute.xlu1 %8234  ;;  %v8352_v38 = vsel %vm4839_vm2, %v8336_v32, %v8233_v57 }
 0x48e   :  { %v8353_v35 = vsel %vm4839_vm2, %v8337_v5, %v8235_v40 }
 0x490   :  { %v8237_v26 = vpop.permute.xlu0 %8236 }
 0x491   :  { %v8239_v24 = vpop.permute.xlu1 %8238  ;;  %v8354_v60 = vsel %vm4839_vm2, %v8338_v2, %v8237_v26 }
 0x492   :  { %v8355_v40 = vsel %vm4839_vm2, %v8339_v55, %v8239_v24 }
 0x494   :  { %v13084_v54 = vpop.permute.xlu0 %8240 }
 0x495   :  { %v13086_v46 = vpop.permute.xlu1 %8242  ;;  %v8356_v47 = vsel %vm4839_vm2, %v8340_v1, %v13084_v54 }
 0x496   :  { %v8357_v24 = vsel %vm4839_vm2, %v8341_v27, %v13086_v46 }
 0x498   :  { %v13090_v44 = vpop.permute.xlu0 %8244 }
 0x499   :  { %v13088_v33 = vpop.permute.xlu1 %8246  ;;  %v8358_v12 = vsel %vm4839_vm2, %v8342_v30, %v13090_v44 }
 0x49a   :  { %v8359_v46 = vsel %vm4839_vm2, %v8343_v7, %v13088_v33 }
 0x49d   :  { %v8283_v11 = vpop.permute.xlu1 %8282 }
 0x49e   :  { %v8281_v36 = vpop.permute.xlu0 %8280  ;;  %v8362_v14 = vsel %vm8360_vm3, %v8345_v23, %v8283_v11 }
 0x49f   :  { %v8361_v34 = vsel %vm8360_vm3, %v8344_v22, %v8281_v36 }
 0x4a0   :  { %10415 = vmatprep.mubr.msk.f32.mxu0 %vm62_vm0, %v8361_v34 }
 0x4a1   :  { %v8287_v3 = vpop.permute.xlu1 %8286  ;;  %10416 = vmatmul.mubr.msk.f32.vlgmr.msra.gmra.mxu0 %vm62_vm0, %v8362_v14 }
 0x4a2   :  { %v8285_v52 = vpop.permute.xlu0 %8284  ;;  %v8364_v49 = vsel %vm8360_vm3, %v8347_v25, %v8287_v3 }
 0x4a3   :  { %v8363_v4 = vsel %vm8360_vm3, %v8346_v0, %v8285_v52 }
 0x4a4   :  { %10418 = vmatprep.mubr.msk.f32.mxu0 %vm62_vm0, %v8363_v4 }
 0x4a5   :  { %v8291_v43 = vpop.permute.xlu1 %8290  ;;  %10419 = vmatmul.mubr.msk.f32.gmra.mxu0 %vm62_vm0, %v8364_v49 }
 0x4a6   :  { %v8289_v53 = vpop.permute.xlu0 %8288  ;;  %v8366_v15 = vsel %vm8360_vm3, %v8349_v58, %v8291_v43 }
 0x4a7   :  { %v8365_v29 = vsel %vm8360_vm3, %v8348_v10, %v8289_v53 }
 0x4a8   :  { %10421 = vmatprep.mubr.msk.f32.mxu0 %vm62_vm0, %v8365_v29 }
 0x4a9   :  { %v8295_v56 = vpop.permute.xlu1 %8294  ;;  %10422 = vmatmul.mubr.msk.f32.gmra.mxu0 %vm62_vm0, %v8366_v15 }
 0x4aa   :  { %v8293_v39 = vpop.permute.xlu0 %8292  ;;  %v8368_v17 = vsel %vm8360_vm3, %v8351_v59, %v8295_v56 }
 0x4ab   :  { %v8367_v42 = vsel %vm8360_vm3, %v8350_v21, %v8293_v39 }
 0x4ac   :  { %10424 = vmatprep.mubr.msk.f32.mxu0 %vm62_vm0, %v8367_v42 }
 0x4ad   :  { %v8299_v20 = vpop.permute.xlu1 %8298  ;;  %10425 = vmatmul.mubr.msk.f32.gmra.mxu0 %vm62_vm0, %v8368_v17 }
 0x4ae   :  { %v8297_v31 = vpop.permute.xlu0 %8296  ;;  %v8370_v13 = vsel %vm8360_vm3, %v8353_v35, %v8299_v20 }
 0x4af   :  { %v8369_v16 = vsel %vm8360_vm3, %v8352_v38, %v8297_v31 }
 0x4b0   :  { %10427 = vmatprep.mubr.msk.f32.mxu0 %vm62_vm0, %v8369_v16 }
 0x4b1   :  { %v8303_v9 = vpop.permute.xlu1 %8302  ;;  %10428 = vmatmul.mubr.msk.f32.gmra.mxu0 %vm62_vm0, %v8370_v13 }
 0x4b2   :  { %v8301_v57 = vpop.permute.xlu0 %8300  ;;  %v8372_v11 = vsel %vm8360_vm3, %v8355_v40, %v8303_v9 }
 0x4b3   :  { %v8371_v19 = vsel %vm8360_vm3, %v8354_v60, %v8301_v57 }
 0x4b4   :  { %10430 = vmatprep.mubr.msk.f32.mxu0 %vm62_vm0, %v8371_v19 }
 0x4b5   :  { %v8307_v37 = vpop.permute.xlu1 %8306  ;;  %10431 = vmatmul.mubr.msk.f32.gmra.mxu0 %vm62_vm0, %v8372_v11 }
 0x4b6   :  { %v8305_v26 = vpop.permute.xlu0 %8304  ;;  %v8374_v22 = vsel %vm8360_vm3, %v8357_v24, %v8307_v37 }
 0x4b7   :  { %v8373_v61 = vsel %vm8360_vm3, %v8356_v47, %v8305_v26 }
 0x4b8   :  { %10433 = vmatprep.mubr.msk.f32.mxu0 %vm62_vm0, %v8373_v61 }
 0x4b9   :  { %v8311_v62 = vpop.permute.xlu1 %8310  ;;  %10434 = vmatmul.mubr.msk.f32.gmra.mxu0 %vm62_vm0, %v8374_v22 }
 0x4ba   :  { %v8309_v54 = vpop.permute.xlu0 %8308  ;;  %v8376_v23 = vsel %vm8360_vm3, %v8359_v46, %v8311_v62 }
 0x4bb   :  { %v8375_v36 = vsel %vm8360_vm3, %v8358_v12, %v8309_v54 }
 0x4bc   :  { %10436 = vmatprep.mubr.msk.f32.mxu0 %vm62_vm0, %v8375_v36 }
 0x4bd   :  { %10437 = vmatmul.mubr.msk.f32.gmra.mxu0 %vm62_vm0, %v8376_v23 }
 0x561   :  { %v10417_v6 = vpop.f32.mrf.mxu0 }
 0x562   :  { %v8508_v45 = vadd.f32 %v10417_v6, %v9042_v50 }
 0x563   :  { %v8502_v8 = vpop.f32.mrf.mxu0 }
 0x564   :  { %8582 = vst.msk [vmem:[%s13261_s10 + $0x8] sm:$0xff] %vm62_vm0, %v8508_v45  ;;  %v8503_v33 = vadd.f32 %v9042_v50, %v8502_v8 }
 0x565   :  { %v10420_v44 = vpop.f32.mrf.mxu0 }
 0x566   :  { %8581 = vst.msk [vmem:[%s13261_s10] sm:$0xff] %vm62_vm0, %v8503_v33  ;;  %v8518_v34 = vadd.f32 %v10420_v44, %v9042_v50 }
 0x567   :  { %v8512_v14 = vpop.f32.mrf.mxu0 }
 0x568   :  { %8584 = vst.msk [vmem:[%s13261_s10 + $0x18] sm:$0xff] %vm62_vm0, %v8518_v34  ;;  %v8513_v51 = vadd.f32 %v9042_v50, %v8512_v14 }
 0x569   :  { %v10423_v3 = vpop.f32.mrf.mxu0 }
 0x56a   :  { %8583 = vst.msk [vmem:[%s13261_s10 + $0x10] sm:$0xff] %vm62_vm0, %v8513_v51  ;;  %v8528_v41 = vadd.f32 %v10423_v3, %v9042_v50 }
 0x56b   :  { %v8522_v0 = vpop.f32.mrf.mxu0 }
 0x56c   :  { %8586 = vst.msk [vmem:[%s13261_s10 + $0x28] sm:$0xff] %vm62_vm0, %v8528_v41  ;;  %v8523_v52 = vadd.f32 %v9042_v50, %v8522_v0 }
 0x56d   :  { %v10426_v25 = vpop.f32.mrf.mxu0 }
 0x56e   :  { %8585 = vst.msk [vmem:[%s13261_s10 + $0x20] sm:$0xff] %vm62_vm0, %v8523_v52  ;;  %v8538_v4 = vadd.f32 %v10426_v25, %v9042_v50 }
 0x56f   :  { %v8532_v49 = vpop.f32.mrf.mxu0 }
 0x570   :  { %8588 = vst.msk [vmem:[%s13261_s10 + $0x38] sm:$0xff] %vm62_vm0, %v8538_v4  ;;  %v8533_v63 = vadd.f32 %v9042_v50, %v8532_v49 }
 0x571   :  { %v10429_v43 = vpop.f32.mrf.mxu0 }
 0x572   :  { %8587 = vst.msk [vmem:[%s13261_s10 + $0x30] sm:$0xff] %vm62_vm0, %v8533_v63  ;;  %v8548_v18 = vadd.f32 %v10429_v43, %v9042_v50 }
 0x573   :  { %v8542_v10 = vpop.f32.mrf.mxu0 }
 0x574   :  { %8590 = vst.msk [vmem:[%s13261_s10 + $0x48] sm:$0xff] %vm62_vm0, %v8548_v18  ;;  %v8543_v53 = vadd.f32 %v9042_v50, %v8542_v10 }
 0x575   :  { %v10432_v58 = vpop.f32.mrf.mxu0 }
 0x576   :  { %8589 = vst.msk [vmem:[%s13261_s10 + $0x40] sm:$0xff] %vm62_vm0, %v8543_v53  ;;  %v8558_v29 = vadd.f32 %v10432_v58, %v9042_v50 }
 0x577   :  { %v8552_v15 = vpop.f32.mrf.mxu0 }
 0x578   :  { %8592 = vst.msk [vmem:[%s13261_s10 + $0x58] sm:$0xff] %vm62_vm0, %v8558_v29  ;;  %v8553_v28 = vadd.f32 %v9042_v50, %v8552_v15 }
 0x579   :  { %v10435_v56 = vpop.f32.mrf.mxu0 }
 0x57a   :  { %8591 = vst.msk [vmem:[%s13261_s10 + $0x50] sm:$0xff] %vm62_vm0, %v8553_v28  ;;  %v8568_v48 = vadd.f32 %v10435_v56, %v9042_v50 }
 0x57b   :  { %v8562_v21 = vpop.f32.mrf.mxu0 }
 0x57c   :  { %8594 = vst.msk [vmem:[%s13261_s10 + $0x68] sm:$0xff] %vm62_vm0, %v8568_v48  ;;  %v8563_v39 = vadd.f32 %v9042_v50, %v8562_v21 }
 0x57d   :  { %v10438_v59 = vpop.f32.mrf.mxu0 }
 0x57e   :  { %8593 = vst.msk [vmem:[%s13261_s10 + $0x60] sm:$0xff] %vm62_vm0, %v8563_v39  ;;  %v8578_v42 = vadd.f32 %v10438_v59, %v9042_v50 }
 0x57f   :  { %v8572_v17 = vpop.f32.mrf.mxu0 }
 0x580   :  { %8596 = vst.msk [vmem:[%s13261_s10 + $0x78] sm:$0xff] %vm62_vm0, %v8578_v42  ;;  %v8573_v32 = vadd.f32 %v9042_v50, %v8572_v17 }
 0x582   :  { %8595 = vst.msk [vmem:[%s13261_s10 + $0x70] sm:$0xff] %vm62_vm0, %v8573_v32 }

</bundles_post_ra>
